<compile_context>
chip_gen: v7x
topology: tpu7x:2x2x1
jax: 0.10.0
libtpu: 0.0.40
codegen_flags: <defaults>
</compile_context>

<pallas_src>
import functools
import numpy as np
import jax
import jax.numpy as jnp
from jax.experimental import pallas as pl
from jax.experimental.pallas import tpu as pltpu

VMEM = pltpu.MemorySpace.VMEM
BIG = 1.0e30   # large-but-safe penalty for invalid neighbor slots (no f32 overflow)


# --------------------------------------------------------------------------------------
# Fused forward: num_layers x (PNAConv + ReLU), then global_mean_pool + MLP.
# --------------------------------------------------------------------------------------
def pnagin_kernel(x_ref, src_ref, tgt_ref, scat_ref, sel_ref, pen_ref, hasdeg_ref, deg_ref,
                  wprei_ref, wprej_ref, bpre_ref,
                  wpx_ref, wid_ref, wamp_ref, watt_ref, bpost_ref,
                  wlin_ref, blin_ref,
                  pool_ref, w1_ref, b1_ref, w2_ref, b2_ref,
                  o_ref, *, num_layers, max_deg, n_nodes, avg_deg_log):
    f32 = jnp.float32
    bf16 = jnp.bfloat16

    deg = deg_ref[...]                               # (N,1) clamped >= 1 (PyG clamps too)
    inv_deg = 1.0 / deg
    logd = jnp.log(deg + 1.0)
    amp = logd * (1.0 / avg_deg_log)                 # (N,1) amplification scaler
    att = avg_deg_log / logd                         # (N,1) attenuation scaler
    has_edge = hasdeg_ref[...] > 0.5                 # (N,1) true in-degree > 0
    pen = pen_ref[...]                               # (max_deg*N,1) 0 for valid slot, BIG else

    src = src_ref[...]                               # (E,N)  bf16 one-hot of edge sources
    tgt = tgt_ref[...]                               # (E,N)  bf16 one-hot of edge targets
    scat = scat_ref[...]                             # (N,E)  bf16 scatter (= tgt one-hot^T)
    sel = sel_ref[...]                               # (max_deg*N, E) bf16 slot selectors

    h = x_ref[...]                                   # (N,C) f32, C padded to 128

    for l in range(num_layers):                      # static unroll, per-layer weights indexed statically
        hb = h.astype(bf16)
        x_j = jnp.dot(src, hb, preferred_element_type=f32)   # (E,C) source feats (gather)
        x_i = jnp.dot(tgt, hb, preferred_element_type=f32)   # (E,C) target feats (gather)

        # pre-MLP message, split weights (no lane concat of [x_i, x_j])
        m = (jnp.dot(x_i.astype(bf16), wprei_ref[l], preferred_element_type=f32)
             + jnp.dot(x_j.astype(bf16), wprej_ref[l], preferred_element_type=f32)
             + bpre_ref[l])                                   # (E,C) f32
        mb = m.astype(bf16)
        m2b = (m * m).astype(bf16)

        # sum / sum-of-squares: two scatter matmuls (instead of max_deg slot matmuls)
        s = jnp.dot(scat, mb, preferred_element_type=f32)     # (N,C)
        s2 = jnp.dot(scat, m2b, preferred_element_type=f32)   # (N,C)
        mean = s * inv_deg
        var = s2 * inv_deg - mean * mean
        std = jnp.sqrt(jnp.maximum(var, 0.0) + 1e-5)

        # min / max: one big gather matmul over all neighbor slots, small VPU reduce
        nbrs = jnp.dot(sel, mb, preferred_element_type=f32)   # (max_deg*N, C)
        mn = nbrs[0:n_nodes, :] + pen[0:n_nodes, :]
        mx = nbrs[0:n_nodes, :] - pen[0:n_nodes, :]
        for k in range(1, max_deg):
            lo = k * n_nodes
            blk = nbrs[lo:lo + n_nodes, :]
            pk = pen[lo:lo + n_nodes, :]
            mn = jnp.minimum(mn, blk + pk)
            mx = jnp.maximum(mx, blk - pk)
        mn = jnp.where(has_edge, mn, 0.0)                     # guard degree-0 nodes
        mx = jnp.where(has_edge, mx, 0.0)

        aggr = jnp.concatenate([mean, mn, mx, std], axis=-1).astype(bf16)   # (N,4C), 128-aligned blocks

        # post-MLP with weights split per scaler block; row scalers commute through matmul
        y = (jnp.dot(hb, wpx_ref[l], preferred_element_type=f32)
             + jnp.dot(aggr, wid_ref[l], preferred_element_type=f32)
             + amp * jnp.dot(aggr, wamp_ref[l], preferred_element_type=f32)
             + att * jnp.dot(aggr, watt_ref[l], preferred_element_type=f32)
             + bpost_ref[l])                                  # (N,H)
        y = jnp.dot(y.astype(bf16), wlin_ref[l], preferred_element_type=f32) + blin_ref[l]
        h = jnp.maximum(y, 0.0)                               # ReLU

    # epilogue: global_mean_pool + MLP (Linear -> ReLU -> Linear)
    pooled = jnp.dot(pool_ref[...], h.astype(bf16), preferred_element_type=f32)      # (Gpad,H)
    z = jnp.maximum(jnp.dot(pooled.astype(bf16), w1_ref[...],
                            preferred_element_type=f32) + b1_ref[...], 0.0)
    o_ref[...] = jnp.dot(z.astype(bf16), w2_ref[...],
                         preferred_element_type=f32) + b2_ref[...]                   # (Gpad,Cpad)


def pnagin_forward(x, graph, stacks, mlp, *, num_layers, max_deg, n_nodes,
                   avg_deg_log, g_pad, c_pad):
    kern = functools.partial(pnagin_kernel,
                             num_layers=num_layers, max_deg=max_deg,
                             n_nodes=n_nodes, avg_deg_log=float(avg_deg_log))
    return pl.pallas_call(
        kern,
        out_shape=jax.ShapeDtypeStruct((g_pad, c_pad), jnp.float32),
        in_specs=[pl.BlockSpec(memory_space=VMEM)] * 23,
        out_specs=pl.BlockSpec(memory_space=VMEM),
        compiler_params=pltpu.CompilerParams(vmem_limit_bytes=64 * 1024 * 1024),
    )(x, graph["src"], graph["tgt"], graph["scat"], graph["sel"], graph["pen"],
      graph["has_edge"], graph["deg"],
      stacks["wpre_i"], stacks["wpre_j"], stacks["bpre"],
      stacks["wpost_x"], stacks["wpost_id"], stacks["wpost_amp"],
      stacks["wpost_att"], stacks["bpost"],
      stacks["wlin"], stacks["blin"],
      graph["pool"], mlp["w1"], mlp["b1"], mlp["w2"], mlp["b2"])


# --------------------------------------------------------------------------------------
# Glue: synthetic graph + dense structure matrices + padded/split parameters.
# --------------------------------------------------------------------------------------
def build_graph(num_graphs, nodes_per_graph):
    src, dst = [], []
    for g in range(num_graphs):
        off = g * nodes_per_graph
        for j in range(nodes_per_graph):
            for t in range(1, 2 + (j % 3)):                    # node j has 1..3 in-edges
                src.append(off + (j + t) % nodes_per_graph)
                dst.append(off + j)
    batch = np.repeat(np.arange(num_graphs), nodes_per_graph)
    return np.asarray(src), np.asarray(dst), batch


def dense_graph(src, dst, batch, num_nodes, num_graphs, g_pad):
    e = len(src)
    e_pad = ((e + 7) // 8) * 8

    deg = np.zeros((num_nodes,), np.int64)
    for d in dst:
        deg[d] += 1
    max_deg = max(int(deg.max()), 1)

    src_oh = np.zeros((e_pad, num_nodes), np.float32)
    tgt_oh = np.zeros((e_pad, num_nodes), np.float32)
    src_oh[np.arange(e), src] = 1.0
    tgt_oh[np.arange(e), dst] = 1.0
    scat = np.ascontiguousarray(tgt_oh.T)                        # (N, E_pad) scatter matrix

    # slot-major selector: row k*N + n is the one-hot of node n's k-th incoming edge
    sel = np.zeros((max_deg * num_nodes, e_pad), np.float32)
    valid = np.zeros((max_deg * num_nodes,), np.float32)
    slot = np.zeros((num_nodes,), np.int64)
    for edge, d in enumerate(dst):
        sel[slot[d] * num_nodes + d, edge] = 1.0
        valid[slot[d] * num_nodes + d] = 1.0
        slot[d] += 1
    pen = ((1.0 - valid) * BIG).astype(np.float32)[:, None]      # (max_deg*N, 1)

    has_edge = (deg > 0).astype(np.float32)[:, None]
    deg_clamped = np.maximum(deg, 1).astype(np.float32)[:, None]

    counts = np.bincount(batch, minlength=num_graphs)
    pool = np.zeros((g_pad, num_nodes), np.float32)
    pool[batch, np.arange(num_nodes)] = 1.0 / counts[batch]

    graph = dict(
        src=jnp.asarray(src_oh).astype(jnp.bfloat16),
        tgt=jnp.asarray(tgt_oh).astype(jnp.bfloat16),
        scat=jnp.asarray(scat).astype(jnp.bfloat16),
        sel=jnp.asarray(sel).astype(jnp.bfloat16),
        pen=jnp.asarray(pen),
        has_edge=jnp.asarray(has_edge),
        deg=jnp.asarray(deg_clamped),
        pool=jnp.asarray(pool).astype(jnp.bfloat16),
    )
    return graph, deg, max_deg


def init_linear(key, fan_in, fan_out):
    kw, kb = jax.random.split(key)
    bound = 1.0 / np.sqrt(fan_in)
    w = jax.random.uniform(kw, (fan_in, fan_out), jnp.float32, -bound, bound)
    b = jax.random.uniform(kb, (1, fan_out), jnp.float32, -bound, bound)
    return np.asarray(w), np.asarray(b)


def pad_to(a, shape):
    a = np.asarray(a, dtype=np.float32)
    out = np.zeros(shape, np.float32)
    out[tuple(slice(0, s) for s in a.shape)] = a
    return out


if __name__ == "__main__":
    num_features, num_classes, num_layers, hidden_dim = 16, 4, 2, 32
    num_graphs, nodes_per_graph = 2, 8
    num_nodes = num_graphs * nodes_per_graph
    C_PAD = 128        # channel lane padding (features / hidden / classes)
    G_PAD = 8          # graph-count sublane padding

    src, dst, batch = build_graph(num_graphs, nodes_per_graph)
    graph, in_deg, max_deg = dense_graph(src, dst, batch, num_nodes, num_graphs, G_PAD)

    # degree histogram (stand-in for the module's hardcoded `deg = torch.tensor([...])`)
    deg_hist = np.bincount(in_deg)
    bins = np.arange(len(deg_hist), dtype=np.float64)
    avg_deg_log = float((np.log(bins + 1.0) * deg_hist).sum() / deg_hist.sum())

    key = jax.random.PRNGKey(0)
    keys = jax.random.split(key, 1 + 3 * num_layers + 2)
    x_real = np.asarray(jax.random.normal(keys[0], (num_nodes, num_features), jnp.float32))
    x = jnp.asarray(pad_to(x_real, (num_nodes, C_PAD)))

    # per-layer parameters, split + padded to the 128-lane layout, stacked over layers
    wpre_i_l, wpre_j_l, bpre_l = [], [], []
    wpx_l, wid_l, wamp_l, watt_l, bpost_l = [], [], [], [], []
    wlin_l, blin_l = [], []
    ki = 1
    for i in range(num_layers):
        c_in = num_features if i == 0 else hidden_dim
        w_pre, b_pre = init_linear(keys[ki], 2 * c_in, c_in); ki += 1
        w_post, b_post = init_linear(keys[ki], 13 * c_in, hidden_dim); ki += 1
        w_lin, b_lin = init_linear(keys[ki], hidden_dim, hidden_dim); ki += 1

        wpre_i_l.append(pad_to(w_pre[:c_in], (C_PAD, C_PAD)))
        wpre_j_l.append(pad_to(w_pre[c_in:], (C_PAD, C_PAD)))
        bpre_l.append(pad_to(b_pre, (1, C_PAD)))

        # w_post row layout (torch concat order): [x | mean,min,max,std | *amp | *att]
        wpx_l.append(pad_to(w_post[:c_in], (C_PAD, C_PAD)))

        def scaler_block(base, wp=w_post, c=c_in):
            blk = np.zeros((4 * C_PAD, C_PAD), np.float32)
            for b in range(4):
                blk[b * C_PAD: b * C_PAD + c, :hidden_dim] = wp[base + b * c: base + (b + 1) * c]
            return blk

        wid_l.append(scaler_block(c_in))
        wamp_l.append(scaler_block(5 * c_in))
        watt_l.append(scaler_block(9 * c_in))
        bpost_l.append(pad_to(b_post, (1, C_PAD)))

        wlin_l.append(pad_to(w_lin, (C_PAD, C_PAD)))
        blin_l.append(pad_to(b_lin, (1, C_PAD)))

    def stack_bf16(arrs):
        return jnp.asarray(np.stack(arrs)).astype(jnp.bfloat16)

    def stack_f32(arrs):
        return jnp.asarray(np.stack(arrs), dtype=jnp.float32)

    stacks = dict(
        wpre_i=stack_bf16(wpre_i_l), wpre_j=stack_bf16(wpre_j_l), bpre=stack_f32(bpre_l),
        wpost_x=stack_bf16(wpx_l), wpost_id=stack_bf16(wid_l),
        wpost_amp=stack_bf16(wamp_l), wpost_att=stack_bf16(watt_l), bpost=stack_f32(bpost_l),
        wlin=stack_bf16(wlin_l), blin=stack_f32(blin_l),
    )

    w1, b1 = init_linear(keys[ki], hidden_dim, hidden_dim); ki += 1
    w2, b2 = init_linear(keys[ki], hidden_dim, num_classes); ki += 1
    mlp = dict(
        w1=jnp.asarray(pad_to(w1, (C_PAD, C_PAD))).astype(jnp.bfloat16),
        b1=jnp.asarray(pad_to(b1, (1, C_PAD))),
        w2=jnp.asarray(pad_to(w2, (C_PAD, C_PAD))).astype(jnp.bfloat16),
        b2=jnp.asarray(pad_to(b2, (1, C_PAD))),
    )

    out = pnagin_forward(x, graph, stacks, mlp,
                         num_layers=num_layers, max_deg=max_deg, n_nodes=num_nodes,
                         avg_deg_log=avg_deg_log, g_pad=G_PAD, c_pad=C_PAD)
    logits = out[:num_graphs, :num_classes]

    jax.block_until_ready(logits)
    assert logits.shape == (num_graphs, num_classes)
    assert bool(jnp.all(jnp.isfinite(logits)))
    print("KERNEL_OK")
</pallas_src>

<mosaic_0001>
module attributes {stable_mosaic.version = 11 : i64} {
  func.func @pnagin_kernel(%arg0: memref<16x128xf32, #tpu.memory_space<vmem>>, %arg1: memref<32x16xbf16, #tpu.memory_space<vmem>>, %arg2: memref<32x16xbf16, #tpu.memory_space<vmem>>, %arg3: memref<16x32xbf16, #tpu.memory_space<vmem>>, %arg4: memref<48x32xbf16, #tpu.memory_space<vmem>>, %arg5: memref<48x1xf32, #tpu.memory_space<vmem>>, %arg6: memref<16x1xf32, #tpu.memory_space<vmem>>, %arg7: memref<16x1xf32, #tpu.memory_space<vmem>>, %arg8: memref<2x128x128xbf16, #tpu.memory_space<vmem>>, %arg9: memref<2x128x128xbf16, #tpu.memory_space<vmem>>, %arg10: memref<2x1x128xf32, #tpu.memory_space<vmem>>, %arg11: memref<2x128x128xbf16, #tpu.memory_space<vmem>>, %arg12: memref<2x512x128xbf16, #tpu.memory_space<vmem>>, %arg13: memref<2x512x128xbf16, #tpu.memory_space<vmem>>, %arg14: memref<2x512x128xbf16, #tpu.memory_space<vmem>>, %arg15: memref<2x1x128xf32, #tpu.memory_space<vmem>>, %arg16: memref<2x128x128xbf16, #tpu.memory_space<vmem>>, %arg17: memref<2x1x128xf32, #tpu.memory_space<vmem>>, %arg18: memref<8x16xbf16, #tpu.memory_space<vmem>>, %arg19: memref<128x128xbf16, #tpu.memory_space<vmem>>, %arg20: memref<1x128xf32, #tpu.memory_space<vmem>>, %arg21: memref<128x128xbf16, #tpu.memory_space<vmem>>, %arg22: memref<1x128xf32, #tpu.memory_space<vmem>>, %arg23: memref<8x128xf32, #tpu.memory_space<vmem>>) attributes {dimension_semantics = [], scalar_prefetch = 0 : i64, scratch_operands = 0 : i64, tpu.core_type = #tpu.core_type<tc>} {
    %c0 = arith.constant 0 : index
    %c0_0 = arith.constant 0 : index
    %0 = vector.load %arg7[%c0, %c0_0] : memref<16x1xf32, #tpu.memory_space<vmem>>, vector<16x1xf32>
    %cst = arith.constant 1.000000e+00 : f32
    %1 = vector.broadcast %cst : f32 to vector<16x1xf32>
    %2 = arith.divf %1, %0 : vector<16x1xf32>
    %cst_1 = arith.constant 1.000000e+00 : f32
    %3 = vector.broadcast %cst_1 : f32 to vector<16x1xf32>
    %4 = arith.addf %0, %3 : vector<16x1xf32>
    %5 = math.log %4 : vector<16x1xf32>
    %cst_2 = arith.constant 0.981852054 : f32
    %6 = vector.broadcast %cst_2 : f32 to vector<16x1xf32>
    %7 = arith.mulf %5, %6 : vector<16x1xf32>
    %cst_3 = arith.constant 1.0184834 : f32
    %8 = vector.broadcast %cst_3 : f32 to vector<16x1xf32>
    %9 = arith.divf %8, %5 : vector<16x1xf32>
    %c0_4 = arith.constant 0 : index
    %c0_5 = arith.constant 0 : index
    %10 = vector.load %arg6[%c0_4, %c0_5] : memref<16x1xf32, #tpu.memory_space<vmem>>, vector<16x1xf32>
    %cst_6 = arith.constant 5.000000e-01 : f32
    %11 = vector.broadcast %cst_6 : f32 to vector<16x1xf32>
    %12 = arith.cmpf ogt, %10, %11 : vector<16x1xf32>
    %c0_7 = arith.constant 0 : index
    %c0_8 = arith.constant 0 : index
    %13 = vector.load %arg5[%c0_7, %c0_8] : memref<48x1xf32, #tpu.memory_space<vmem>>, vector<48x1xf32>
    %c0_9 = arith.constant 0 : index
    %c0_10 = arith.constant 0 : index
    %14 = vector.load %arg1[%c0_9, %c0_10] : memref<32x16xbf16, #tpu.memory_space<vmem>>, vector<32x16xbf16>
    %c0_11 = arith.constant 0 : index
    %c0_12 = arith.constant 0 : index
    %15 = vector.load %arg2[%c0_11, %c0_12] : memref<32x16xbf16, #tpu.memory_space<vmem>>, vector<32x16xbf16>
    %c0_13 = arith.constant 0 : index
    %c0_14 = arith.constant 0 : index
    %16 = vector.load %arg3[%c0_13, %c0_14] : memref<16x32xbf16, #tpu.memory_space<vmem>>, vector<16x32xbf16>
    %c0_15 = arith.constant 0 : index
    %c0_16 = arith.constant 0 : index
    %17 = vector.load %arg4[%c0_15, %c0_16] : memref<48x32xbf16, #tpu.memory_space<vmem>>, vector<48x32xbf16>
    %c0_17 = arith.constant 0 : index
    %c0_18 = arith.constant 0 : index
    %18 = vector.load %arg0[%c0_17, %c0_18] : memref<16x128xf32, #tpu.memory_space<vmem>>, vector<16x128xf32>
    %19 = arith.truncf %18 : vector<16x128xf32> to vector<16x128xbf16>
    %cst_19 = arith.constant dense<0.000000e+00> : vector<32x128xf32>
    %20 = tpu.matmul %14, %19, %cst_19 {dimension_numbers = #tpu.dot_dimension_numbers<[1], [0], [0], [1], [0, 0, 1, 1], [], []>} : vector<32x16xbf16>, vector<16x128xbf16>, vector<32x128xf32> -> vector<32x128xf32>
    %cst_20 = arith.constant dense<0.000000e+00> : vector<32x128xf32>
    %21 = tpu.matmul %15, %19, %cst_20 {dimension_numbers = #tpu.dot_dimension_numbers<[1], [0], [0], [1], [0, 0, 1, 1], [], []>} : vector<32x16xbf16>, vector<16x128xbf16>, vector<32x128xf32> -> vector<32x128xf32>
    %22 = arith.truncf %21 : vector<32x128xf32> to vector<32x128xbf16>
    %c0_21 = arith.constant 0 : index
    %c0_22 = arith.constant 0 : index
    %c0_23 = arith.constant 0 : index
    %23 = vector.load %arg8[%c0_21, %c0_22, %c0_23] : memref<2x128x128xbf16, #tpu.memory_space<vmem>>, vector<1x128x128xbf16>
    %24 = vector.shape_cast %23 : vector<1x128x128xbf16> to vector<128x128xbf16>
    %cst_24 = arith.constant dense<0.000000e+00> : vector<32x128xf32>
    %25 = tpu.matmul %22, %24, %cst_24 {dimension_numbers = #tpu.dot_dimension_numbers<[1], [0], [0], [1], [0, 0, 1, 1], [], []>} : vector<32x128xbf16>, vector<128x128xbf16>, vector<32x128xf32> -> vector<32x128xf32>
    %26 = arith.truncf %20 : vector<32x128xf32> to vector<32x128xbf16>
    %c0_25 = arith.constant 0 : index
    %c0_26 = arith.constant 0 : index
    %c0_27 = arith.constant 0 : index
    %27 = vector.load %arg9[%c0_25, %c0_26, %c0_27] : memref<2x128x128xbf16, #tpu.memory_space<vmem>>, vector<1x128x128xbf16>
    %28 = vector.shape_cast %27 : vector<1x128x128xbf16> to vector<128x128xbf16>
    %cst_28 = arith.constant dense<0.000000e+00> : vector<32x128xf32>
    %29 = tpu.matmul %26, %28, %cst_28 {dimension_numbers = #tpu.dot_dimension_numbers<[1], [0], [0], [1], [0, 0, 1, 1], [], []>} : vector<32x128xbf16>, vector<128x128xbf16>, vector<32x128xf32> -> vector<32x128xf32>
    %30 = arith.addf %25, %29 : vector<32x128xf32>
    %c0_29 = arith.constant 0 : index
    %c0_30 = arith.constant 0 : index
    %c0_31 = arith.constant 0 : index
    %31 = vector.load %arg10[%c0_29, %c0_30, %c0_31] : memref<2x1x128xf32, #tpu.memory_space<vmem>>, vector<1x1x128xf32>
    %32 = vector.shape_cast %31 : vector<1x1x128xf32> to vector<1x128xf32>
    %33 = vector.broadcast %32 : vector<1x128xf32> to vector<32x128xf32>
    %34 = arith.addf %30, %33 : vector<32x128xf32>
    %35 = arith.truncf %34 : vector<32x128xf32> to vector<32x128xbf16>
    %36 = arith.mulf %34, %34 : vector<32x128xf32>
    %37 = arith.truncf %36 : vector<32x128xf32> to vector<32x128xbf16>
    %cst_32 = arith.constant dense<0.000000e+00> : vector<16x128xf32>
    %38 = tpu.matmul %16, %35, %cst_32 {dimension_numbers = #tpu.dot_dimension_numbers<[1], [0], [0], [1], [0, 0, 1, 1], [], []>} : vector<16x32xbf16>, vector<32x128xbf16>, vector<16x128xf32> -> vector<16x128xf32>
    %cst_33 = arith.constant dense<0.000000e+00> : vector<16x128xf32>
    %39 = tpu.matmul %16, %37, %cst_33 {dimension_numbers = #tpu.dot_dimension_numbers<[1], [0], [0], [1], [0, 0, 1, 1], [], []>} : vector<16x32xbf16>, vector<32x128xbf16>, vector<16x128xf32> -> vector<16x128xf32>
    %40 = vector.broadcast %2 : vector<16x1xf32> to vector<16x128xf32>
    %41 = arith.mulf %38, %40 : vector<16x128xf32>
    %42 = vector.broadcast %2 : vector<16x1xf32> to vector<16x128xf32>
    %43 = arith.mulf %39, %42 : vector<16x128xf32>
    %44 = arith.mulf %41, %41 : vector<16x128xf32>
    %45 = arith.subf %43, %44 : vector<16x128xf32>
    %cst_34 = arith.constant 0.000000e+00 : f32
    %46 = vector.broadcast %cst_34 : f32 to vector<16x128xf32>
    %47 = arith.maximumf %45, %46 : vector<16x128xf32>
    %cst_35 = arith.constant 9.99999974E-6 : f32
    %48 = vector.broadcast %cst_35 : f32 to vector<16x128xf32>
    %49 = arith.addf %47, %48 : vector<16x128xf32>
    %50 = math.sqrt %49 : vector<16x128xf32>
    %cst_36 = arith.constant dense<0.000000e+00> : vector<48x128xf32>
    %51 = tpu.matmul %17, %35, %cst_36 {dimension_numbers = #tpu.dot_dimension_numbers<[1], [0], [0], [1], [0, 0, 1, 1], [], []>} : vector<48x32xbf16>, vector<32x128xbf16>, vector<48x128xf32> -> vector<48x128xf32>
    %52 = vector.extract_strided_slice %51 {offsets = [0, 0], sizes = [16, 128], strides = [1, 1]} : vector<48x128xf32> to vector<16x128xf32>
    %53 = vector.extract_strided_slice %13 {offsets = [0, 0], sizes = [16, 1], strides = [1, 1]} : vector<48x1xf32> to vector<16x1xf32>
    %54 = vector.broadcast %53 : vector<16x1xf32> to vector<16x128xf32>
    %55 = arith.addf %52, %54 : vector<16x128xf32>
    %56 = vector.extract_strided_slice %51 {offsets = [0, 0], sizes = [16, 128], strides = [1, 1]} : vector<48x128xf32> to vector<16x128xf32>
    %57 = vector.extract_strided_slice %13 {offsets = [0, 0], sizes = [16, 1], strides = [1, 1]} : vector<48x1xf32> to vector<16x1xf32>
    %58 = vector.broadcast %57 : vector<16x1xf32> to vector<16x128xf32>
    %59 = arith.subf %56, %58 : vector<16x128xf32>
    %60 = vector.extract_strided_slice %51 {offsets = [16, 0], sizes = [16, 128], strides = [1, 1]} : vector<48x128xf32> to vector<16x128xf32>
    %61 = vector.extract_strided_slice %13 {offsets = [16, 0], sizes = [16, 1], strides = [1, 1]} : vector<48x1xf32> to vector<16x1xf32>
    %62 = vector.broadcast %61 : vector<16x1xf32> to vector<16x128xf32>
    %63 = arith.addf %60, %62 : vector<16x128xf32>
    %64 = arith.minimumf %55, %63 : vector<16x128xf32>
    %65 = vector.broadcast %61 : vector<16x1xf32> to vector<16x128xf32>
    %66 = arith.subf %60, %65 : vector<16x128xf32>
    %67 = arith.maximumf %59, %66 : vector<16x128xf32>
    %68 = vector.extract_strided_slice %51 {offsets = [32, 0], sizes = [16, 128], strides = [1, 1]} : vector<48x128xf32> to vector<16x128xf32>
    %69 = vector.extract_strided_slice %13 {offsets = [32, 0], sizes = [16, 1], strides = [1, 1]} : vector<48x1xf32> to vector<16x1xf32>
    %70 = vector.broadcast %69 : vector<16x1xf32> to vector<16x128xf32>
    %71 = arith.addf %68, %70 : vector<16x128xf32>
    %72 = arith.minimumf %64, %71 : vector<16x128xf32>
    %73 = vector.broadcast %69 : vector<16x1xf32> to vector<16x128xf32>
    %74 = arith.subf %68, %73 : vector<16x128xf32>
    %75 = arith.maximumf %67, %74 : vector<16x128xf32>
    %cst_37 = arith.constant 0.000000e+00 : f32
    %76 = vector.shape_cast %12 : vector<16x1xi1> to vector<16x1xi1>
    %77 = vector.broadcast %76 : vector<16x1xi1> to vector<16x128xi1>
    %78 = vector.broadcast %cst_37 : f32 to vector<16x128xf32>
    %79 = arith.select %77, %72, %78 : vector<16x128xi1>, vector<16x128xf32>
    %cst_38 = arith.constant 0.000000e+00 : f32
    %80 = vector.shape_cast %12 : vector<16x1xi1> to vector<16x1xi1>
    %81 = vector.broadcast %80 : vector<16x1xi1> to vector<16x128xi1>
    %82 = vector.broadcast %cst_38 : f32 to vector<16x128xf32>
    %83 = arith.select %81, %75, %82 : vector<16x128xi1>, vector<16x128xf32>
    %84 = tpu.concatenate %41, %79, %83, %50 in 1 : vector<16x128xf32>, vector<16x128xf32>, vector<16x128xf32>, vector<16x128xf32> -> vector<16x512xf32>
    %85 = arith.truncf %84 : vector<16x512xf32> to vector<16x512xbf16>
    %c0_39 = arith.constant 0 : index
    %c0_40 = arith.constant 0 : index
    %c0_41 = arith.constant 0 : index
    %86 = vector.load %arg11[%c0_39, %c0_40, %c0_41] : memref<2x128x128xbf16, #tpu.memory_space<vmem>>, vector<1x128x128xbf16>
    %87 = vector.shape_cast %86 : vector<1x128x128xbf16> to vector<128x128xbf16>
    %cst_42 = arith.constant dense<0.000000e+00> : vector<16x128xf32>
    %88 = tpu.matmul %19, %87, %cst_42 {dimension_numbers = #tpu.dot_dimension_numbers<[1], [0], [0], [1], [0, 0, 1, 1], [], []>} : vector<16x128xbf16>, vector<128x128xbf16>, vector<16x128xf32> -> vector<16x128xf32>
    %c0_43 = arith.constant 0 : index
    %c0_44 = arith.constant 0 : index
    %c0_45 = arith.constant 0 : index
    %89 = vector.load %arg12[%c0_43, %c0_44, %c0_45] : memref<2x512x128xbf16, #tpu.memory_space<vmem>>, vector<1x512x128xbf16>
    %90 = vector.shape_cast %89 : vector<1x512x128xbf16> to vector<512x128xbf16>
    %cst_46 = arith.constant dense<0.000000e+00> : vector<16x128xf32>
    %91 = tpu.matmul %85, %90, %cst_46 {dimension_numbers = #tpu.dot_dimension_numbers<[1], [0], [0], [1], [0, 0, 1, 1], [], []>} : vector<16x512xbf16>, vector<512x128xbf16>, vector<16x128xf32> -> vector<16x128xf32>
    %92 = arith.addf %88, %91 : vector<16x128xf32>
    %c0_47 = arith.constant 0 : index
    %c0_48 = arith.constant 0 : index
    %c0_49 = arith.constant 0 : index
    %93 = vector.load %arg13[%c0_47, %c0_48, %c0_49] : memref<2x512x128xbf16, #tpu.memory_space<vmem>>, vector<1x512x128xbf16>
    %94 = vector.shape_cast %93 : vector<1x512x128xbf16> to vector<512x128xbf16>
    %cst_50 = arith.constant dense<0.000000e+00> : vector<16x128xf32>
    %95 = tpu.matmul %85, %94, %cst_50 {dimension_numbers = #tpu.dot_dimension_numbers<[1], [0], [0], [1], [0, 0, 1, 1], [], []>} : vector<16x512xbf16>, vector<512x128xbf16>, vector<16x128xf32> -> vector<16x128xf32>
    %96 = vector.broadcast %7 : vector<16x1xf32> to vector<16x128xf32>
    %97 = arith.mulf %96, %95 : vector<16x128xf32>
    %98 = arith.addf %92, %97 : vector<16x128xf32>
    %c0_51 = arith.constant 0 : index
    %c0_52 = arith.constant 0 : index
    %c0_53 = arith.constant 0 : index
    %99 = vector.load %arg14[%c0_51, %c0_52, %c0_53] : memref<2x512x128xbf16, #tpu.memory_space<vmem>>, vector<1x512x128xbf16>
    %100 = vector.shape_cast %99 : vector<1x512x128xbf16> to vector<512x128xbf16>
    %cst_54 = arith.constant dense<0.000000e+00> : vector<16x128xf32>
    %101 = tpu.matmul %85, %100, %cst_54 {dimension_numbers = #tpu.dot_dimension_numbers<[1], [0], [0], [1], [0, 0, 1, 1], [], []>} : vector<16x512xbf16>, vector<512x128xbf16>, vector<16x128xf32> -> vector<16x128xf32>
    %102 = vector.broadcast %9 : vector<16x1xf32> to vector<16x128xf32>
    %103 = arith.mulf %102, %101 : vector<16x128xf32>
    %104 = arith.addf %98, %103 : vector<16x128xf32>
    %c0_55 = arith.constant 0 : index
    %c0_56 = arith.constant 0 : index
    %c0_57 = arith.constant 0 : index
    %105 = vector.load %arg15[%c0_55, %c0_56, %c0_57] : memref<2x1x128xf32, #tpu.memory_space<vmem>>, vector<1x1x128xf32>
    %106 = vector.shape_cast %105 : vector<1x1x128xf32> to vector<1x128xf32>
    %107 = vector.broadcast %106 : vector<1x128xf32> to vector<16x128xf32>
    %108 = arith.addf %104, %107 : vector<16x128xf32>
    %109 = arith.truncf %108 : vector<16x128xf32> to vector<16x128xbf16>
    %c0_58 = arith.constant 0 : index
    %c0_59 = arith.constant 0 : index
    %c0_60 = arith.constant 0 : index
    %110 = vector.load %arg16[%c0_58, %c0_59, %c0_60] : memref<2x128x128xbf16, #tpu.memory_space<vmem>>, vector<1x128x128xbf16>
    %111 = vector.shape_cast %110 : vector<1x128x128xbf16> to vector<128x128xbf16>
    %cst_61 = arith.constant dense<0.000000e+00> : vector<16x128xf32>
    %112 = tpu.matmul %109, %111, %cst_61 {dimension_numbers = #tpu.dot_dimension_numbers<[1], [0], [0], [1], [0, 0, 1, 1], [], []>} : vector<16x128xbf16>, vector<128x128xbf16>, vector<16x128xf32> -> vector<16x128xf32>
    %c0_62 = arith.constant 0 : index
    %c0_63 = arith.constant 0 : index
    %c0_64 = arith.constant 0 : index
    %113 = vector.load %arg17[%c0_62, %c0_63, %c0_64] : memref<2x1x128xf32, #tpu.memory_space<vmem>>, vector<1x1x128xf32>
    %114 = vector.shape_cast %113 : vector<1x1x128xf32> to vector<1x128xf32>
    %115 = vector.broadcast %114 : vector<1x128xf32> to vector<16x128xf32>
    %116 = arith.addf %112, %115 : vector<16x128xf32>
    %cst_65 = arith.constant 0.000000e+00 : f32
    %117 = vector.broadcast %cst_65 : f32 to vector<16x128xf32>
    %118 = arith.maximumf %116, %117 : vector<16x128xf32>
    %119 = arith.truncf %118 : vector<16x128xf32> to vector<16x128xbf16>
    %cst_66 = arith.constant dense<0.000000e+00> : vector<32x128xf32>
    %120 = tpu.matmul %14, %119, %cst_66 {dimension_numbers = #tpu.dot_dimension_numbers<[1], [0], [0], [1], [0, 0, 1, 1], [], []>} : vector<32x16xbf16>, vector<16x128xbf16>, vector<32x128xf32> -> vector<32x128xf32>
    %cst_67 = arith.constant dense<0.000000e+00> : vector<32x128xf32>
    %121 = tpu.matmul %15, %119, %cst_67 {dimension_numbers = #tpu.dot_dimension_numbers<[1], [0], [0], [1], [0, 0, 1, 1], [], []>} : vector<32x16xbf16>, vector<16x128xbf16>, vector<32x128xf32> -> vector<32x128xf32>
    %122 = arith.truncf %121 : vector<32x128xf32> to vector<32x128xbf16>
    %c1 = arith.constant 1 : index
    %c0_68 = arith.constant 0 : index
    %c0_69 = arith.constant 0 : index
    %123 = vector.load %arg8[%c1, %c0_68, %c0_69] : memref<2x128x128xbf16, #tpu.memory_space<vmem>>, vector<1x128x128xbf16>
    %124 = vector.shape_cast %123 : vector<1x128x128xbf16> to vector<128x128xbf16>
    %cst_70 = arith.constant dense<0.000000e+00> : vector<32x128xf32>
    %125 = tpu.matmul %122, %124, %cst_70 {dimension_numbers = #tpu.dot_dimension_numbers<[1], [0], [0], [1], [0, 0, 1, 1], [], []>} : vector<32x128xbf16>, vector<128x128xbf16>, vector<32x128xf32> -> vector<32x128xf32>
    %126 = arith.truncf %120 : vector<32x128xf32> to vector<32x128xbf16>
    %c1_71 = arith.constant 1 : index
    %c0_72 = arith.constant 0 : index
    %c0_73 = arith.constant 0 : index
    %127 = vector.load %arg9[%c1_71, %c0_72, %c0_73] : memref<2x128x128xbf16, #tpu.memory_space<vmem>>, vector<1x128x128xbf16>
    %128 = vector.shape_cast %127 : vector<1x128x128xbf16> to vector<128x128xbf16>
    %cst_74 = arith.constant dense<0.000000e+00> : vector<32x128xf32>
    %129 = tpu.matmul %126, %128, %cst_74 {dimension_numbers = #tpu.dot_dimension_numbers<[1], [0], [0], [1], [0, 0, 1, 1], [], []>} : vector<32x128xbf16>, vector<128x128xbf16>, vector<32x128xf32> -> vector<32x128xf32>
    %130 = arith.addf %125, %129 : vector<32x128xf32>
    %c1_75 = arith.constant 1 : index
    %c0_76 = arith.constant 0 : index
    %c0_77 = arith.constant 0 : index
    %131 = vector.load %arg10[%c1_75, %c0_76, %c0_77] : memref<2x1x128xf32, #tpu.memory_space<vmem>>, vector<1x1x128xf32>
    %132 = vector.shape_cast %131 : vector<1x1x128xf32> to vector<1x128xf32>
    %133 = vector.broadcast %132 : vector<1x128xf32> to vector<32x128xf32>
    %134 = arith.addf %130, %133 : vector<32x128xf32>
    %135 = arith.truncf %134 : vector<32x128xf32> to vector<32x128xbf16>
    %136 = arith.mulf %134, %134 : vector<32x128xf32>
    %137 = arith.truncf %136 : vector<32x128xf32> to vector<32x128xbf16>
    %cst_78 = arith.constant dense<0.000000e+00> : vector<16x128xf32>
    %138 = tpu.matmul %16, %135, %cst_78 {dimension_numbers = #tpu.dot_dimension_numbers<[1], [0], [0], [1], [0, 0, 1, 1], [], []>} : vector<16x32xbf16>, vector<32x128xbf16>, vector<16x128xf32> -> vector<16x128xf32>
    %cst_79 = arith.constant dense<0.000000e+00> : vector<16x128xf32>
    %139 = tpu.matmul %16, %137, %cst_79 {dimension_numbers = #tpu.dot_dimension_numbers<[1], [0], [0], [1], [0, 0, 1, 1], [], []>} : vector<16x32xbf16>, vector<32x128xbf16>, vector<16x128xf32> -> vector<16x128xf32>
    %140 = vector.broadcast %2 : vector<16x1xf32> to vector<16x128xf32>
    %141 = arith.mulf %138, %140 : vector<16x128xf32>
    %142 = vector.broadcast %2 : vector<16x1xf32> to vector<16x128xf32>
    %143 = arith.mulf %139, %142 : vector<16x128xf32>
    %144 = arith.mulf %141, %141 : vector<16x128xf32>
    %145 = arith.subf %143, %144 : vector<16x128xf32>
    %cst_80 = arith.constant 0.000000e+00 : f32
    %146 = vector.broadcast %cst_80 : f32 to vector<16x128xf32>
    %147 = arith.maximumf %145, %146 : vector<16x128xf32>
    %cst_81 = arith.constant 9.99999974E-6 : f32
    %148 = vector.broadcast %cst_81 : f32 to vector<16x128xf32>
    %149 = arith.addf %147, %148 : vector<16x128xf32>
    %150 = math.sqrt %149 : vector<16x128xf32>
    %cst_82 = arith.constant dense<0.000000e+00> : vector<48x128xf32>
    %151 = tpu.matmul %17, %135, %cst_82 {dimension_numbers = #tpu.dot_dimension_numbers<[1], [0], [0], [1], [0, 0, 1, 1], [], []>} : vector<48x32xbf16>, vector<32x128xbf16>, vector<48x128xf32> -> vector<48x128xf32>
    %152 = vector.extract_strided_slice %151 {offsets = [0, 0], sizes = [16, 128], strides = [1, 1]} : vector<48x128xf32> to vector<16x128xf32>
    %153 = vector.extract_strided_slice %13 {offsets = [0, 0], sizes = [16, 1], strides = [1, 1]} : vector<48x1xf32> to vector<16x1xf32>
    %154 = vector.broadcast %153 : vector<16x1xf32> to vector<16x128xf32>
    %155 = arith.addf %152, %154 : vector<16x128xf32>
    %156 = vector.extract_strided_slice %151 {offsets = [0, 0], sizes = [16, 128], strides = [1, 1]} : vector<48x128xf32> to vector<16x128xf32>
    %157 = vector.extract_strided_slice %13 {offsets = [0, 0], sizes = [16, 1], strides = [1, 1]} : vector<48x1xf32> to vector<16x1xf32>
    %158 = vector.broadcast %157 : vector<16x1xf32> to vector<16x128xf32>
    %159 = arith.subf %156, %158 : vector<16x128xf32>
    %160 = vector.extract_strided_slice %151 {offsets = [16, 0], sizes = [16, 128], strides = [1, 1]} : vector<48x128xf32> to vector<16x128xf32>
    %161 = vector.extract_strided_slice %13 {offsets = [16, 0], sizes = [16, 1], strides = [1, 1]} : vector<48x1xf32> to vector<16x1xf32>
    %162 = vector.broadcast %161 : vector<16x1xf32> to vector<16x128xf32>
    %163 = arith.addf %160, %162 : vector<16x128xf32>
    %164 = arith.minimumf %155, %163 : vector<16x128xf32>
    %165 = vector.broadcast %161 : vector<16x1xf32> to vector<16x128xf32>
    %166 = arith.subf %160, %165 : vector<16x128xf32>
    %167 = arith.maximumf %159, %166 : vector<16x128xf32>
    %168 = vector.extract_strided_slice %151 {offsets = [32, 0], sizes = [16, 128], strides = [1, 1]} : vector<48x128xf32> to vector<16x128xf32>
    %169 = vector.extract_strided_slice %13 {offsets = [32, 0], sizes = [16, 1], strides = [1, 1]} : vector<48x1xf32> to vector<16x1xf32>
    %170 = vector.broadcast %169 : vector<16x1xf32> to vector<16x128xf32>
    %171 = arith.addf %168, %170 : vector<16x128xf32>
    %172 = arith.minimumf %164, %171 : vector<16x128xf32>
    %173 = vector.broadcast %169 : vector<16x1xf32> to vector<16x128xf32>
    %174 = arith.subf %168, %173 : vector<16x128xf32>
    %175 = arith.maximumf %167, %174 : vector<16x128xf32>
    %cst_83 = arith.constant 0.000000e+00 : f32
    %176 = vector.shape_cast %12 : vector<16x1xi1> to vector<16x1xi1>
    %177 = vector.broadcast %176 : vector<16x1xi1> to vector<16x128xi1>
    %178 = vector.broadcast %cst_83 : f32 to vector<16x128xf32>
    %179 = arith.select %177, %172, %178 : vector<16x128xi1>, vector<16x128xf32>
    %cst_84 = arith.constant 0.000000e+00 : f32
    %180 = vector.shape_cast %12 : vector<16x1xi1> to vector<16x1xi1>
    %181 = vector.broadcast %180 : vector<16x1xi1> to vector<16x128xi1>
    %182 = vector.broadcast %cst_84 : f32 to vector<16x128xf32>
    %183 = arith.select %181, %175, %182 : vector<16x128xi1>, vector<16x128xf32>
    %184 = tpu.concatenate %141, %179, %183, %150 in 1 : vector<16x128xf32>, vector<16x128xf32>, vector<16x128xf32>, vector<16x128xf32> -> vector<16x512xf32>
    %185 = arith.truncf %184 : vector<16x512xf32> to vector<16x512xbf16>
    %c1_85 = arith.constant 1 : index
    %c0_86 = arith.constant 0 : index
    %c0_87 = arith.constant 0 : index
    %186 = vector.load %arg11[%c1_85, %c0_86, %c0_87] : memref<2x128x128xbf16, #tpu.memory_space<vmem>>, vector<1x128x128xbf16>
    %187 = vector.shape_cast %186 : vector<1x128x128xbf16> to vector<128x128xbf16>
    %cst_88 = arith.constant dense<0.000000e+00> : vector<16x128xf32>
    %188 = tpu.matmul %119, %187, %cst_88 {dimension_numbers = #tpu.dot_dimension_numbers<[1], [0], [0], [1], [0, 0, 1, 1], [], []>} : vector<16x128xbf16>, vector<128x128xbf16>, vector<16x128xf32> -> vector<16x128xf32>
    %c1_89 = arith.constant 1 : index
    %c0_90 = arith.constant 0 : index
    %c0_91 = arith.constant 0 : index
    %189 = vector.load %arg12[%c1_89, %c0_90, %c0_91] : memref<2x512x128xbf16, #tpu.memory_space<vmem>>, vector<1x512x128xbf16>
    %190 = vector.shape_cast %189 : vector<1x512x128xbf16> to vector<512x128xbf16>
    %cst_92 = arith.constant dense<0.000000e+00> : vector<16x128xf32>
    %191 = tpu.matmul %185, %190, %cst_92 {dimension_numbers = #tpu.dot_dimension_numbers<[1], [0], [0], [1], [0, 0, 1, 1], [], []>} : vector<16x512xbf16>, vector<512x128xbf16>, vector<16x128xf32> -> vector<16x128xf32>
    %192 = arith.addf %188, %191 : vector<16x128xf32>
    %c1_93 = arith.constant 1 : index
    %c0_94 = arith.constant 0 : index
    %c0_95 = arith.constant 0 : index
    %193 = vector.load %arg13[%c1_93, %c0_94, %c0_95] : memref<2x512x128xbf16, #tpu.memory_space<vmem>>, vector<1x512x128xbf16>
    %194 = vector.shape_cast %193 : vector<1x512x128xbf16> to vector<512x128xbf16>
    %cst_96 = arith.constant dense<0.000000e+00> : vector<16x128xf32>
    %195 = tpu.matmul %185, %194, %cst_96 {dimension_numbers = #tpu.dot_dimension_numbers<[1], [0], [0], [1], [0, 0, 1, 1], [], []>} : vector<16x512xbf16>, vector<512x128xbf16>, vector<16x128xf32> -> vector<16x128xf32>
    %196 = vector.broadcast %7 : vector<16x1xf32> to vector<16x128xf32>
    %197 = arith.mulf %196, %195 : vector<16x128xf32>
    %198 = arith.addf %192, %197 : vector<16x128xf32>
    %c1_97 = arith.constant 1 : index
    %c0_98 = arith.constant 0 : index
    %c0_99 = arith.constant 0 : index
    %199 = vector.load %arg14[%c1_97, %c0_98, %c0_99] : memref<2x512x128xbf16, #tpu.memory_space<vmem>>, vector<1x512x128xbf16>
    %200 = vector.shape_cast %199 : vector<1x512x128xbf16> to vector<512x128xbf16>
    %cst_100 = arith.constant dense<0.000000e+00> : vector<16x128xf32>
    %201 = tpu.matmul %185, %200, %cst_100 {dimension_numbers = #tpu.dot_dimension_numbers<[1], [0], [0], [1], [0, 0, 1, 1], [], []>} : vector<16x512xbf16>, vector<512x128xbf16>, vector<16x128xf32> -> vector<16x128xf32>
    %202 = vector.broadcast %9 : vector<16x1xf32> to vector<16x128xf32>
    %203 = arith.mulf %202, %201 : vector<16x128xf32>
    %204 = arith.addf %198, %203 : vector<16x128xf32>
    %c1_101 = arith.constant 1 : index
    %c0_102 = arith.constant 0 : index
    %c0_103 = arith.constant 0 : index
    %205 = vector.load %arg15[%c1_101, %c0_102, %c0_103] : memref<2x1x128xf32, #tpu.memory_space<vmem>>, vector<1x1x128xf32>
    %206 = vector.shape_cast %205 : vector<1x1x128xf32> to vector<1x128xf32>
    %207 = vector.broadcast %206 : vector<1x128xf32> to vector<16x128xf32>
    %208 = arith.addf %204, %207 : vector<16x128xf32>
    %209 = arith.truncf %208 : vector<16x128xf32> to vector<16x128xbf16>
    %c1_104 = arith.constant 1 : index
    %c0_105 = arith.constant 0 : index
    %c0_106 = arith.constant 0 : index
    %210 = vector.load %arg16[%c1_104, %c0_105, %c0_106] : memref<2x128x128xbf16, #tpu.memory_space<vmem>>, vector<1x128x128xbf16>
    %211 = vector.shape_cast %210 : vector<1x128x128xbf16> to vector<128x128xbf16>
    %cst_107 = arith.constant dense<0.000000e+00> : vector<16x128xf32>
    %212 = tpu.matmul %209, %211, %cst_107 {dimension_numbers = #tpu.dot_dimension_numbers<[1], [0], [0], [1], [0, 0, 1, 1], [], []>} : vector<16x128xbf16>, vector<128x128xbf16>, vector<16x128xf32> -> vector<16x128xf32>
    %c1_108 = arith.constant 1 : index
    %c0_109 = arith.constant 0 : index
    %c0_110 = arith.constant 0 : index
    %213 = vector.load %arg17[%c1_108, %c0_109, %c0_110] : memref<2x1x128xf32, #tpu.memory_space<vmem>>, vector<1x1x128xf32>
    %214 = vector.shape_cast %213 : vector<1x1x128xf32> to vector<1x128xf32>
    %215 = vector.broadcast %214 : vector<1x128xf32> to vector<16x128xf32>
    %216 = arith.addf %212, %215 : vector<16x128xf32>
    %cst_111 = arith.constant 0.000000e+00 : f32
    %217 = vector.broadcast %cst_111 : f32 to vector<16x128xf32>
    %218 = arith.maximumf %216, %217 : vector<16x128xf32>
    %c0_112 = arith.constant 0 : index
    %c0_113 = arith.constant 0 : index
    %219 = vector.load %arg18[%c0_112, %c0_113] : memref<8x16xbf16, #tpu.memory_space<vmem>>, vector<8x16xbf16>
    %220 = arith.truncf %218 : vector<16x128xf32> to vector<16x128xbf16>
    %cst_114 = arith.constant dense<0.000000e+00> : vector<8x128xf32>
    %221 = tpu.matmul %219, %220, %cst_114 {dimension_numbers = #tpu.dot_dimension_numbers<[1], [0], [0], [1], [0, 0, 1, 1], [], []>} : vector<8x16xbf16>, vector<16x128xbf16>, vector<8x128xf32> -> vector<8x128xf32>
    %222 = arith.truncf %221 : vector<8x128xf32> to vector<8x128xbf16>
    %c0_115 = arith.constant 0 : index
    %c0_116 = arith.constant 0 : index
    %223 = vector.load %arg19[%c0_115, %c0_116] : memref<128x128xbf16, #tpu.memory_space<vmem>>, vector<128x128xbf16>
    %cst_117 = arith.constant dense<0.000000e+00> : vector<8x128xf32>
    %224 = tpu.matmul %222, %223, %cst_117 {dimension_numbers = #tpu.dot_dimension_numbers<[1], [0], [0], [1], [0, 0, 1, 1], [], []>} : vector<8x128xbf16>, vector<128x128xbf16>, vector<8x128xf32> -> vector<8x128xf32>
    %c0_118 = arith.constant 0 : index
    %c0_119 = arith.constant 0 : index
    %225 = vector.load %arg20[%c0_118, %c0_119] : memref<1x128xf32, #tpu.memory_space<vmem>>, vector<1x128xf32>
    %226 = vector.broadcast %225 : vector<1x128xf32> to vector<8x128xf32>
    %227 = arith.addf %224, %226 : vector<8x128xf32>
    %cst_120 = arith.constant 0.000000e+00 : f32
    %228 = vector.broadcast %cst_120 : f32 to vector<8x128xf32>
    %229 = arith.maximumf %227, %228 : vector<8x128xf32>
    %230 = arith.truncf %229 : vector<8x128xf32> to vector<8x128xbf16>
    %c0_121 = arith.constant 0 : index
    %c0_122 = arith.constant 0 : index
    %231 = vector.load %arg21[%c0_121, %c0_122] : memref<128x128xbf16, #tpu.memory_space<vmem>>, vector<128x128xbf16>
    %cst_123 = arith.constant dense<0.000000e+00> : vector<8x128xf32>
    %232 = tpu.matmul %230, %231, %cst_123 {dimension_numbers = #tpu.dot_dimension_numbers<[1], [0], [0], [1], [0, 0, 1, 1], [], []>} : vector<8x128xbf16>, vector<128x128xbf16>, vector<8x128xf32> -> vector<8x128xf32>
    %c0_124 = arith.constant 0 : index
    %c0_125 = arith.constant 0 : index
    %233 = vector.load %arg22[%c0_124, %c0_125] : memref<1x128xf32, #tpu.memory_space<vmem>>, vector<1x128xf32>
    %234 = vector.broadcast %233 : vector<1x128xf32> to vector<8x128xf32>
    %235 = arith.addf %232, %234 : vector<8x128xf32>
    %c0_126 = arith.constant 0 : index
    %c0_127 = arith.constant 0 : index
    %236 = vector.load %arg23[%c0_126, %c0_127] : memref<8x128xf32, #tpu.memory_space<vmem>>, vector<8x128xf32>
    tpu.vector_store %arg23[%c0_126, %c0_127], %235 {strides = array<i32>} : memref<8x128xf32, #tpu.memory_space<vmem>>, vector<8x128xf32>,
    return
  }
}

</mosaic_0001>

<bundles_post_ra>
// kernel: tpu_custom_call.1
= control target key start
LH: loop header
LB: loop body
LE: loop exit
PB: predicated region body
PF: predicated region fallthrough
CT: control target
= control target key end

     0   :  { %s7175_s0 = inlined_call_operand.hbm [shape: f32[16,128], index: 0, kind: input, shape index: {}]   ;;  %s7176_s1 = inlined_call_operand.hbm [shape: bf16[32,16], index: 1, kind: input, shape index: {}]   ;;  %s7177_s2 = inlined_call_operand.hbm [shape: bf16[32,16], index: 2, kind: input, shape index: {}]   ;;  %s7178_s3 = inlined_call_operand.hbm [shape: bf16[16,32], index: 3, kind: input, shape index: {}]   ;;  %s7179_s4 = inlined_call_operand.hbm [shape: bf16[48,32], index: 4, kind: input, shape index: {}]   ;;  %s7180_s5 = inlined_call_operand.hbm [shape: f32[48,1], index: 5, kind: input, shape index: {}]   ;;  %s7181_s6 = inlined_call_operand.hbm [shape: f32[16,1], index: 6, kind: input, shape index: {}]   ;;  %s7182_s7 = inlined_call_operand.hbm [shape: f32[16,1], index: 7, kind: input, shape index: {}]   ;;  %s7183_s8 = inlined_call_operand.hbm [shape: bf16[2,128,128], index: 8, kind: input, shape index: {}]   ;;  %s7184_s9 = inlined_call_operand.hbm [shape: bf16[2,128,128], index: 9, kind: input, shape index: {}]   ;;  %s7185_s10 = inlined_call_operand.hbm [shape: f32[2,1,128], index: 10, kind: input, shape index: {}]   ;;  %s7186_s11 = inlined_call_operand.hbm [shape: bf16[2,128,128], index: 11, kind: input, shape index: {}]   ;;  %s7187_s12 = inlined_call_operand.hbm [shape: bf16[2,512,128], index: 12, kind: input, shape index: {}]   ;;  %s7188_s13 = inlined_call_operand.hbm [shape: bf16[2,512,128], index: 13, kind: input, shape index: {}]   ;;  %s7189_s14 = inlined_call_operand.hbm [shape: bf16[2,512,128], index: 14, kind: input, shape index: {}]   ;;  %s7190_s15 = inlined_call_operand.hbm [shape: f32[2,1,128], index: 15, kind: input, shape index: {}]   ;;  %s7191_s16 = inlined_call_operand.hbm [shape: bf16[2,128,128], index: 16, kind: input, shape index: {}]   ;;  %s7192_s17 = inlined_call_operand.hbm [shape: f32[2,1,128], index: 17, kind: input, shape index: {}]   ;;  %s7193_s18 = inlined_call_operand.hbm [shape: bf16[8,16], index: 18, kind: input, shape index: {}]   ;;  %s7194_s19 = inlined_call_operand.hbm [shape: bf16[128,128], index: 19, kind: input, shape index: {}]   ;;  %s7195_s20 = inlined_call_operand.hbm [shape: f32[1,128], index: 20, kind: input, shape index: {}]   ;;  %s7196_s21 = inlined_call_operand.hbm [shape: bf16[128,128], index: 21, kind: input, shape index: {}]   ;;  %s7197_s22 = inlined_call_operand.hbm [shape: f32[1,128], index: 22, kind: input, shape index: {}]   ;;  %s7198_s23 = inlined_call_operand.hbm [shape: f32[8,128], index: 23, kind: output, shape index: {}]  }
   0x1   :  { %7212 = sst [smem:[#allocation52_spill]] %s7175_s0 }
   0x2   :  { %7213 = sst [smem:[#allocation53_spill]] %s7176_s1 }
   0x3   :  { %7214 = sst [smem:[#allocation54_spill]] %s7177_s2 }
   0x4   :  { %7215 = sst [smem:[#allocation55_spill]] %s7178_s3 }
   0x5   :  { %7216 = sst [smem:[#allocation56_spill]] %s7179_s4 }
   0x6   :  { %7217 = sst [smem:[#allocation57_spill]] %s7180_s5 }
   0x7   :  { %7218 = sst [smem:[#allocation58_spill]] %s7181_s6 }
   0x8   :  { %7219 = sst [smem:[#allocation59_spill]] %s7182_s7 }
   0x9   :  { %7220 = sst [smem:[#allocation60_spill]] %s7195_s20 }
   0xa   :  { %7221 = sst [smem:[#allocation61_spill]] %s7197_s22 }
   0xb   :  { %7222 = sst [smem:[#allocation62_spill]] %s7198_s23 }
   0xc   :  { %28 = vsyncpa [#allocation3], 0 }
   0xd   :  { %29 = vsyncpa [#allocation6], 0 }
   0xe   :  { %30 = vsyncpa [#allocation9], 0 }
   0xf   :  { %31 = vsyncpa [#allocation12], 0 }
  0x10   :  { %32 = vsyncpa [#allocation15], 0 }
  0x11   :  { %33 = vsyncpa [#allocation18], 0 }
  0x12   :  { %34 = vsyncpa [#allocation21], 0 }
  0x13   :  { %35 = vsyncpa [#allocation24], 0 }
  0x14   :  { %36 = vsyncpa [#allocation27], 0 }
  0x15   :  { %37 = vsyncpa [#allocation30], 0 }
  0x16   :  { %38 = vsyncpa [#allocation33], 0 }
  0x17   :  { %39 = vsyncpa [#allocation36], 0 }
  0x18   :  { %40 = vsyncpa [#allocation4], 0  ;;  %s6387_s4 = smov [#allocation5]   ;;  %s7223_s5 = sld [smem:[#allocation53_spill]] }
  0x19   :  { %s58_s30 = sshll.u32 %s6387_s4, 4  ;;  %s59_s30 = int_to_ptr.vmem [resolvable:$true] %s58_s30 }
  0x1e   :  { %s5833_s1 = scalar_lea.hbm %s7223_s5, 256 }
  0x1f   :  { %p5834_p0 = scmp.ne.s32.totalorder %s7223_s5, %s5833_s1  ;;  %p5837_p1 = scmp.lt.u32.totalorder %s5833_s1, %s7223_s5 }
  0x21   :  { %p5839_p2 = pnand %p5837_p1, %p5834_p0 }
  0x23   :  { %5842 = shalt.err (!%p5839_p2)
}
  0x24   :  { %s5843_s7 = scalar_lea.vmem %s59_s30, 256  ;;  %p5848_p4 = scmp.lt.s32.totalorder %s59_s30, %s59_s30 }
  0x25   :  { %p5844_p3 = scmp.ne.s32.totalorder %s59_s30, %s5843_s7  ;;  %p5849_p5 = scmp.lt.s32.totalorder %s5843_s7, %s5843_s7 }
  0x27   :  { %p5850_p6 = por %p5849_p5, %p5848_p4 }
  0x29   :  { %p5851_p7 = pnand %p5850_p6, %p5844_p3 }
  0x2b   :  { %5854 = shalt.err (!%p5851_p7)
}
  0x2c   :  { %s7210_s28 = smov 64   ;;  %s6389_s29 = smov 4  }
  0x2d   :  { %64 = dma.hbm_to_vmem [thread:$0]  %s7223_s5, 256, %s59_s30, [#allocation6], %s7210_s28, %s7210_s28, %s6389_s29  }
  0x2e   :  { %s6390_s4 = smov [#allocation8]   ;;  %s7224_s26 = sld [smem:[#allocation55_spill]] }
  0x2f   :  { %s82_s24 = sshll.u32 %s6390_s4, 4  ;;  %s83_s24 = int_to_ptr.vmem [resolvable:$true] %s82_s24 }
  0x34   :  { %s5855_s2 = scalar_lea.hbm %s7224_s26, 128 }
  0x35   :  { %p5856_p8 = scmp.ne.s32.totalorder %s7224_s26, %s5855_s2  ;;  %p5859_p9 = scmp.lt.u32.totalorder %s5855_s2, %s7224_s26 }
  0x37   :  { %p5861_p10 = pnand %p5859_p9, %p5856_p8 }
  0x39   :  { %5864 = shalt.err (!%p5861_p10)
}
  0x3a   :  { %s5865_s22 = scalar_lea.vmem %s83_s24, 128  ;;  %p5870_p12 = scmp.lt.s32.totalorder %s83_s24, %s83_s24 }
  0x3b   :  { %p5866_p11 = scmp.ne.s32.totalorder %s83_s24, %s5865_s22  ;;  %p5871_p13 = scmp.lt.s32.totalorder %s5865_s22, %s5865_s22 }
  0x3d   :  { %p5872_p0 = por %p5871_p13, %p5870_p12 }
  0x3f   :  { %p5873_p1 = pnand %p5872_p0, %p5866_p11 }
  0x41   :  { %5876 = shalt.err (!%p5873_p1)
}
  0x42   :  { %88 = dma.hbm_to_vmem [thread:$0]  %s7224_s26, 128, %s83_s24, [#allocation9], %s7210_s28, %s7210_s28, %s6389_s29  }
  0x43   :  { %s6391_s3 = smov [#allocation11]   ;;  %s6392_s23 = smov [#allocation14]  }
  0x44   :  { %s106_s0 = sshll.u32 %s6391_s3, 4  ;;  %s130_s4 = sshll.u32 %s6392_s23, 4  ;;  %s107_s0 = int_to_ptr.vmem [resolvable:$true] %s106_s0  ;;  %s6570_s4 = int_to_ptr.vmem [resolvable:$true] %s130_s4 }
  0x45   :  { %s7225_s22 = sld [smem:[#allocation57_spill]] }
  0x4b   :  { %s5877_s2 = scalar_lea.hbm %s7225_s22, 768 }
  0x4c   :  { %p5878_p2 = scmp.ne.s32.totalorder %s7225_s22, %s5877_s2  ;;  %p5881_p3 = scmp.lt.u32.totalorder %s5877_s2, %s7225_s22 }
  0x4e   :  { %p5883_p4 = pnand %p5881_p3, %p5878_p2 }
  0x50   :  { %5886 = shalt.err (!%p5883_p4)
}
  0x51   :  { %s5887_s24 = scalar_lea.vmem %s107_s0, 768  ;;  %p5892_p6 = scmp.lt.s32.totalorder %s107_s0, %s107_s0 }
  0x52   :  { %p5888_p5 = scmp.ne.s32.totalorder %s107_s0, %s5887_s24  ;;  %p5893_p7 = scmp.lt.s32.totalorder %s5887_s24, %s5887_s24 }
  0x54   :  { %p5894_p8 = por %p5893_p7, %p5892_p6 }
  0x56   :  { %p5895_p9 = pnand %p5894_p8, %p5888_p5 }
  0x58   :  { %5898 = shalt.err (!%p5895_p9)
}
  0x59   :  { %s6393_s26 = smov 128   ;;  %s6394_s30 = smov 8  }
  0x5a   :  { %112 = dma.hbm_to_vmem [thread:$0]  %s7225_s22, 768, %s107_s0, [#allocation12], %s6393_s26, %s6393_s26, %s6394_s30  }
  0x5b   :  { %s7226_s25 = sld [smem:[#allocation59_spill]] }
  0x61   :  { %s5899_s1 = scalar_lea.hbm %s7226_s25, 256 }
  0x62   :  { %p5900_p10 = scmp.ne.s32.totalorder %s7226_s25, %s5899_s1  ;;  %p5903_p11 = scmp.lt.u32.totalorder %s5899_s1, %s7226_s25 }
  0x64   :  { %p5905_p12 = pnand %p5903_p11, %p5900_p10 }
  0x66   :  { %5908 = shalt.err (!%p5905_p12)
}
  0x67   :  { %s5909_s24 = scalar_lea.vmem %s6570_s4, 256  ;;  %p5914_p0 = scmp.lt.s32.totalorder %s6570_s4, %s6570_s4 }
  0x68   :  { %p5910_p13 = scmp.ne.s32.totalorder %s6570_s4, %s5909_s24  ;;  %p5915_p1 = scmp.lt.s32.totalorder %s5909_s24, %s5909_s24 }
  0x6a   :  { %p5916_p2 = por %p5915_p1, %p5914_p0 }
  0x6c   :  { %p5917_p3 = pnand %p5916_p2, %p5910_p13 }
  0x6e   :  { %5920 = shalt.err (!%p5917_p3)
}
  0x6f   :  { %136 = dma.hbm_to_vmem [thread:$0]  %s7226_s25, 256, %s6570_s4, [#allocation15], %s6393_s26, %s6393_s26, %s6394_s30  }
  0x70   :  { %s6395_s5 = smov [#allocation17]   ;;  %s6396_s20 = smov [#allocation20]  }
  0x71   :  { %s154_s3 = sshll.u32 %s6395_s5, 4  ;;  %s178_s23 = sshll.u32 %s6396_s20, 4  ;;  %s155_s3 = int_to_ptr.vmem [resolvable:$true] %s154_s3  ;;  %s6607_s23 = int_to_ptr.vmem [resolvable:$true] %s178_s23 }
  0x72   :  { %s5921_s6 = scalar_lea.hbm %s7184_s9, 2048 }
  0x73   :  { %p5922_p4 = scmp.ne.s32.totalorder %s7184_s9, %s5921_s6  ;;  %p5925_p5 = scmp.lt.u32.totalorder %s5921_s6, %s7184_s9 }
  0x75   :  { %p5927_p6 = pnand %p5925_p5, %p5922_p4 }
  0x77   :  { %5930 = shalt.err (!%p5927_p6)
}
  0x78   :  { %s5931_s4 = scalar_lea.vmem %s155_s3, 2048  ;;  %p5936_p8 = scmp.lt.s32.totalorder %s155_s3, %s155_s3 }
  0x79   :  { %p5932_p7 = scmp.ne.s32.totalorder %s155_s3, %s5931_s4  ;;  %p5937_p9 = scmp.lt.s32.totalorder %s5931_s4, %s5931_s4 }
  0x7b   :  { %p5938_p10 = por %p5937_p9, %p5936_p8 }
  0x7d   :  { %p5939_p11 = pnand %p5938_p10, %p5932_p7 }
  0x7f   :  { %5942 = shalt.err (!%p5939_p11)
}
  0x80   :  { %s7227_s25 = smov 64   ;;  %s5943_s28 = scalar_lea.hbm %s7186_s11, 2048 }
  0x81   :  { %160 = dma.hbm_to_vmem [thread:$0]  %s7184_s9, 2048, %s155_s3, [#allocation18], %s7227_s25, %s7227_s25, %s6389_s29  }
  0x82   :  { %p5944_p12 = scmp.ne.s32.totalorder %s7186_s11, %s5943_s28  ;;  %p5947_p13 = scmp.lt.u32.totalorder %s5943_s28, %s7186_s11 }
  0x84   :  { %p5949_p0 = pnand %p5947_p13, %p5944_p12 }
  0x86   :  { %5952 = shalt.err (!%p5949_p0)
}
  0x87   :  { %s5953_s7 = scalar_lea.vmem %s6607_s23, 2048  ;;  %p5958_p2 = scmp.lt.s32.totalorder %s6607_s23, %s6607_s23 }
  0x88   :  { %p5954_p1 = scmp.ne.s32.totalorder %s6607_s23, %s5953_s7  ;;  %p5959_p3 = scmp.lt.s32.totalorder %s5953_s7, %s5953_s7 }
  0x8a   :  { %p5960_p4 = por %p5959_p3, %p5958_p2 }
  0x8c   :  { %p5961_p5 = pnand %p5960_p4, %p5954_p1 }
  0x8e   :  { %5964 = shalt.err (!%p5961_p5)
}
  0x8f   :  { %184 = dma.hbm_to_vmem [thread:$0]  %s7186_s11, 2048, %s6607_s23, [#allocation21], %s7227_s25, %s7227_s25, %s6389_s29  }
  0x90   :  { %s6397_s24 = smov [#allocation23]   ;;  %s5965_s5 = scalar_lea.hbm %s7188_s13, 8192 }
  0x91   :  { %s202_s4 = sshll.u32 %s6397_s24, 4  ;;  %p5966_p6 = scmp.ne.s32.totalorder %s7188_s13, %s5965_s5  ;;  %s203_s4 = int_to_ptr.vmem [resolvable:$true] %s202_s4 }
  0x92   :  { %p5969_p7 = scmp.lt.u32.totalorder %s5965_s5, %s7188_s13 }
  0x94   :  { %p5971_p8 = pnand %p5969_p7, %p5966_p6 }
  0x96   :  { %5974 = shalt.err (!%p5971_p8)
}
  0x97   :  { %s5975_s6 = scalar_lea.vmem %s203_s4, 8192  ;;  %p5980_p10 = scmp.lt.s32.totalorder %s203_s4, %s203_s4 }
  0x98   :  { %p5976_p9 = scmp.ne.s32.totalorder %s203_s4, %s5975_s6  ;;  %p5981_p11 = scmp.lt.s32.totalorder %s5975_s6, %s5975_s6 }
  0x9a   :  { %p5982_p12 = por %p5981_p11, %p5980_p10 }
  0x9c   :  { %p5983_p13 = pnand %p5982_p12, %p5976_p9 }
  0x9e   :  { %5986 = shalt.err (!%p5983_p13)
}
  0x9f   :  { %208 = dma.hbm_to_vmem [thread:$0]  %s7188_s13, 8192, %s203_s4, [#allocation24], %s7227_s25, %s7227_s25, %s6389_s29  }
  0xa0   :  { %s6398_s27 = smov [#allocation26]   ;;  %s6399_s9 = smov [#allocation29]  }
  0xa1   :  { %s226_s7 = sshll.u32 %s6398_s27, 4  ;;  %s250_s3 = sshll.u32 %s6399_s9, 4  ;;  %s227_s7 = int_to_ptr.vmem [resolvable:$true] %s226_s7  ;;  %s251_s3 = int_to_ptr.vmem [resolvable:$true] %s250_s3 }
  0xa2   :  { %s5987_s22 = scalar_lea.hbm %s7190_s15, 32 }
  0xa3   :  { %p5988_p0 = scmp.ne.s32.totalorder %s7190_s15, %s5987_s22  ;;  %p5991_p1 = scmp.lt.u32.totalorder %s5987_s22, %s7190_s15 }
  0xa5   :  { %p5993_p2 = pnand %p5991_p1, %p5988_p0 }
  0xa7   :  { %5996 = shalt.err (!%p5993_p2)
}
  0xa8   :  { %s5997_s13 = scalar_lea.vmem %s227_s7, 32  ;;  %p6002_p4 = scmp.lt.s32.totalorder %s227_s7, %s227_s7 }
  0xa9   :  { %p5998_p3 = scmp.ne.s32.totalorder %s227_s7, %s5997_s13  ;;  %p6003_p5 = scmp.lt.s32.totalorder %s5997_s13, %s5997_s13 }
  0xab   :  { %p6004_p6 = por %p6003_p5, %p6002_p4 }
  0xad   :  { %p6005_p7 = pnand %p6004_p6, %p5998_p3 }
  0xaf   :  { %6008 = shalt.err (!%p6005_p7)
}
  0xb0   :  { %s6400_s4 = smov 16   ;;  %s6401_s2 = smov 1  }
  0xb1   :  { %232 = dma.hbm_to_vmem [thread:$0]  %s7190_s15, 32, %s227_s7, [#allocation27], %s6400_s4, %s6400_s4, %s6401_s2  }
  0xb2   :  { %s6009_s9 = scalar_lea.hbm %s7192_s17, 32 }
  0xb3   :  { %p6010_p8 = scmp.ne.s32.totalorder %s7192_s17, %s6009_s9  ;;  %p6013_p9 = scmp.lt.u32.totalorder %s6009_s9, %s7192_s17 }
  0xb5   :  { %p6015_p10 = pnand %p6013_p9, %p6010_p8 }
  0xb7   :  { %6018 = shalt.err (!%p6015_p10)
}
  0xb8   :  { %s6019_s20 = scalar_lea.vmem %s251_s3, 32  ;;  %p6024_p12 = scmp.lt.s32.totalorder %s251_s3, %s251_s3 }
  0xb9   :  { %p6020_p11 = scmp.ne.s32.totalorder %s251_s3, %s6019_s20  ;;  %p6025_p13 = scmp.lt.s32.totalorder %s6019_s20, %s6019_s20 }
  0xbb   :  { %p6026_p0 = por %p6025_p13, %p6024_p12 }
  0xbd   :  { %p6027_p1 = pnand %p6026_p0, %p6020_p11 }
  0xbf   :  { %6030 = shalt.err (!%p6027_p1)
}
  0xc0   :  { %256 = dma.hbm_to_vmem [thread:$0]  %s7192_s17, 32, %s251_s3, [#allocation30], %s6400_s4, %s6400_s4, %s6401_s2  }
  0xc1   :  { %s6402_s28 = smov [#allocation32]   ;;  %s6403_s13 = smov [#allocation35]  }
  0xc2   :  { %s272_s1 = sshll.u32 %s6402_s28, 4  ;;  %s294_s6 = sshll.u32 %s6403_s13, 4  ;;  %s273_s1 = int_to_ptr.vmem [resolvable:$true] %s272_s1  ;;  %s295_s6 = int_to_ptr.vmem [resolvable:$true] %s294_s6 }
  0xc3   :  { %s6031_s27 = scalar_lea.hbm %s7194_s19, 1024 }
  0xc4   :  { %p6032_p2 = scmp.ne.s32.totalorder %s7194_s19, %s6031_s27  ;;  %p6035_p3 = scmp.lt.u32.totalorder %s6031_s27, %s7194_s19 }
  0xc6   :  { %p6037_p4 = pnand %p6035_p3, %p6032_p2 }
  0xc8   :  { %6040 = shalt.err (!%p6037_p4)
}
  0xc9   :  { %s6041_s17 = scalar_lea.vmem %s273_s1, 1024  ;;  %p6046_p6 = scmp.lt.s32.totalorder %s273_s1, %s273_s1 }
  0xca   :  { %p6042_p5 = scmp.ne.s32.totalorder %s273_s1, %s6041_s17  ;;  %p6047_p7 = scmp.lt.s32.totalorder %s6041_s17, %s6041_s17 }
  0xcc   :  { %p6048_p8 = por %p6047_p7, %p6046_p6 }
  0xce   :  { %p6049_p9 = pnand %p6048_p8, %p6042_p5 }
  0xd0   :  { %6052 = shalt.err (!%p6049_p9)
}
  0xd1   :  { %278 = dma.hbm_to_vmem [thread:$0]  %s7194_s19, 1024, %s273_s1, [#allocation33], %s7227_s25, %s7227_s25, %s6389_s29  }
  0xd2   :  { %s6053_s7 = scalar_lea.hbm %s7196_s21, 1024 }
  0xd3   :  { %p6054_p10 = scmp.ne.s32.totalorder %s7196_s21, %s6053_s7  ;;  %p6057_p11 = scmp.lt.u32.totalorder %s6053_s7, %s7196_s21 }
  0xd5   :  { %p6059_p12 = pnand %p6057_p11, %p6054_p10 }
  0xd7   :  { %6062 = shalt.err (!%p6059_p12)
}
  0xd8   :  { %s6063_s27 = scalar_lea.vmem %s295_s6, 1024  ;;  %p6068_p0 = scmp.lt.s32.totalorder %s295_s6, %s295_s6 }
  0xd9   :  { %p6064_p13 = scmp.ne.s32.totalorder %s295_s6, %s6063_s27  ;;  %p6069_p1 = scmp.lt.s32.totalorder %s6063_s27, %s6063_s27 }
  0xdb   :  { %p6070_p2 = por %p6069_p1, %p6068_p0 }
  0xdd   :  { %p6071_p3 = pnand %p6070_p2, %p6064_p13 }
  0xdf   :  { %6074 = shalt.err (!%p6071_p3)
}
  0xe0   :  { %300 = dma.hbm_to_vmem [thread:$0]  %s7196_s21, 1024, %s295_s6, [#allocation36], %s7227_s25, %s7227_s25, %s6389_s29  }
  0xe1   :  { %s6404_s9 = smov [#allocation2]   ;;  %s6405_s0 = smov [#allocation7]  }
  0xe2   :  { %s46_s24 = sshll.u32 %s6404_s9, 4  ;;  %s70_s22 = sshll.u32 %s6405_s0, 4  ;;  %s47_s24 = int_to_ptr.vmem [resolvable:$true] %s46_s24  ;;  %s71_s22 = int_to_ptr.vmem [resolvable:$true] %s70_s22 }
  0xe3   :  { %s7228_s5 = sld [smem:[#allocation52_spill]] }
  0xe9   :  { %s6075_s20 = scalar_lea.hbm %s7228_s5, 256 }
  0xea   :  { %p6076_p4 = scmp.ne.s32.totalorder %s7228_s5, %s6075_s20  ;;  %p6079_p5 = scmp.lt.u32.totalorder %s6075_s20, %s7228_s5 }
  0xec   :  { %p6081_p6 = pnand %p6079_p5, %p6076_p4 }
  0xee   :  { %6084 = shalt.err (!%p6081_p6)
}
  0xef   :  { %s6085_s21 = scalar_lea.vmem %s47_s24, 256  ;;  %p6090_p8 = scmp.lt.s32.totalorder %s47_s24, %s47_s24 }
  0xf0   :  { %p6086_p7 = scmp.ne.s32.totalorder %s47_s24, %s6085_s21  ;;  %p6091_p9 = scmp.lt.s32.totalorder %s6085_s21, %s6085_s21 }
  0xf2   :  { %p6092_p10 = por %p6091_p9, %p6090_p8 }
  0xf4   :  { %p6093_p11 = pnand %p6092_p10, %p6086_p7 }
  0xf6   :  { %6096 = shalt.err (!%p6093_p11)
}
  0xf7   :  { %52 = dma.hbm_to_vmem [thread:$0]  %s7228_s5, 256, %s47_s24, [#allocation3], %s6393_s26, %s6393_s26, %s6394_s30  }
  0xf8   :  { %s7229_s19 = sld [smem:[#allocation54_spill]] }
  0xfe   :  { %s6097_s1 = scalar_lea.hbm %s7229_s19, 256 }
  0xff   :  { %p6098_p12 = scmp.ne.s32.totalorder %s7229_s19, %s6097_s1  ;;  %p6101_p13 = scmp.lt.u32.totalorder %s6097_s1, %s7229_s19 }
 0x101   :  { %p6103_p0 = pnand %p6101_p13, %p6098_p12 }
 0x103   :  { %6106 = shalt.err (!%p6103_p0)
}
 0x104   :  { %s6107_s20 = scalar_lea.vmem %s71_s22, 256  ;;  %p6112_p2 = scmp.lt.s32.totalorder %s71_s22, %s71_s22 }
 0x105   :  { %p6108_p1 = scmp.ne.s32.totalorder %s71_s22, %s6107_s20  ;;  %p6113_p3 = scmp.lt.s32.totalorder %s6107_s20, %s6107_s20 }
 0x107   :  { %p6114_p4 = por %p6113_p3, %p6112_p2 }
 0x109   :  { %p6115_p5 = pnand %p6114_p4, %p6108_p1 }
 0x10b   :  { %6118 = shalt.err (!%p6115_p5)
}
 0x10c   :  { %76 = dma.hbm_to_vmem [thread:$0]  %s7229_s19, 256, %s71_s22, [#allocation6], %s7227_s25, %s7227_s25, %s6389_s29  }
 0x10d   :  { %s6406_s15 = smov [#allocation10]   ;;  %s6407_s28 = smov [#allocation13]  }
 0x10e   :  { %s94_s7 = sshll.u32 %s6406_s15, 4  ;;  %s118_s13 = sshll.u32 %s6407_s28, 4  ;;  %s95_s7 = int_to_ptr.vmem [resolvable:$true] %s94_s7  ;;  %s119_s13 = int_to_ptr.vmem [resolvable:$true] %s118_s13 }
 0x10f   :  { %s7230_s11 = sld [smem:[#allocation56_spill]] }
 0x115   :  { %s6119_s23 = scalar_lea.hbm %s7230_s11, 384 }
 0x116   :  { %p6120_p6 = scmp.ne.s32.totalorder %s7230_s11, %s6119_s23  ;;  %p6123_p7 = scmp.lt.u32.totalorder %s6119_s23, %s7230_s11 }
 0x118   :  { %p6125_p8 = pnand %p6123_p7, %p6120_p6 }
 0x11a   :  { %6128 = shalt.err (!%p6125_p8)
}
 0x11b   :  { %s6129_s22 = scalar_lea.vmem %s95_s7, 384  ;;  %p6134_p10 = scmp.lt.s32.totalorder %s95_s7, %s95_s7 }
 0x11c   :  { %p6130_p9 = scmp.ne.s32.totalorder %s95_s7, %s6129_s22  ;;  %p6135_p11 = scmp.lt.s32.totalorder %s6129_s22, %s6129_s22 }
 0x11e   :  { %p6136_p12 = por %p6135_p11, %p6134_p10 }
 0x120   :  { %p6137_p13 = pnand %p6136_p12, %p6130_p9 }
 0x122   :  { %6140 = shalt.err (!%p6137_p13)
}
 0x123   :  { %100 = dma.hbm_to_vmem [thread:$0]  %s7230_s11, 384, %s95_s7, [#allocation9], %s7227_s25, %s7227_s25, %s6389_s29  }
 0x124   :  { %s7231_s24 = sld [smem:[#allocation58_spill]] }
 0x12a   :  { %s6141_s5 = scalar_lea.hbm %s7231_s24, 256 }
 0x12b   :  { %p6142_p0 = scmp.ne.s32.totalorder %s7231_s24, %s6141_s5  ;;  %p6145_p1 = scmp.lt.u32.totalorder %s6141_s5, %s7231_s24 }
 0x12d   :  { %p6147_p2 = pnand %p6145_p1, %p6142_p0 }
 0x12f   :  { %6150 = shalt.err (!%p6147_p2)
}
 0x130   :  { %s6151_s23 = scalar_lea.vmem %s119_s13, 256  ;;  %p6156_p4 = scmp.lt.s32.totalorder %s119_s13, %s119_s13 }
 0x131   :  { %p6152_p3 = scmp.ne.s32.totalorder %s119_s13, %s6151_s23  ;;  %p6157_p5 = scmp.lt.s32.totalorder %s6151_s23, %s6151_s23 }
 0x133   :  { %p6158_p6 = por %p6157_p5, %p6156_p4 }
 0x135   :  { %p6159_p7 = pnand %p6158_p6, %p6152_p3 }
 0x137   :  { %6162 = shalt.err (!%p6159_p7)
}
 0x138   :  { %124 = dma.hbm_to_vmem [thread:$0]  %s7231_s24, 256, %s119_s13, [#allocation12], %s6393_s26, %s6393_s26, %s6394_s30  }
 0x139   :  { %s6408_s27 = smov [#allocation16]   ;;  %s6409_s9 = smov [#allocation19]  }
 0x13a   :  { %s142_s1 = sshll.u32 %s6408_s27, 4  ;;  %s166_s0 = sshll.u32 %s6409_s9, 4  ;;  %s143_s1 = int_to_ptr.vmem [resolvable:$true] %s142_s1  ;;  %s167_s0 = int_to_ptr.vmem [resolvable:$true] %s166_s0 }
 0x13b   :  { %s6163_s17 = scalar_lea.hbm %s7183_s8, 2048 }
 0x13c   :  { %p6164_p8 = scmp.ne.s32.totalorder %s7183_s8, %s6163_s17  ;;  %p6167_p9 = scmp.lt.u32.totalorder %s6163_s17, %s7183_s8 }
 0x13e   :  { %p6169_p10 = pnand %p6167_p9, %p6164_p8 }
 0x140   :  { %6172 = shalt.err (!%p6169_p10)
}
 0x141   :  { %s6173_s26 = scalar_lea.vmem %s143_s1, 2048  ;;  %p6178_p12 = scmp.lt.s32.totalorder %s143_s1, %s143_s1 }
 0x142   :  { %p6174_p11 = scmp.ne.s32.totalorder %s143_s1, %s6173_s26  ;;  %p6179_p13 = scmp.lt.s32.totalorder %s6173_s26, %s6173_s26 }
 0x144   :  { %p6180_p0 = por %p6179_p13, %p6178_p12 }
 0x146   :  { %p6181_p1 = pnand %p6180_p0, %p6174_p11 }
 0x148   :  { %6184 = shalt.err (!%p6181_p1)
}
 0x149   :  { %148 = dma.hbm_to_vmem [thread:$0]  %s7183_s8, 2048, %s143_s1, [#allocation15], %s7227_s25, %s7227_s25, %s6389_s29  }
 0x14a   :  { %s6185_s21 = scalar_lea.hbm %s7185_s10, 32 }
 0x14b   :  { %p6186_p2 = scmp.ne.s32.totalorder %s7185_s10, %s6185_s21  ;;  %p6189_p3 = scmp.lt.u32.totalorder %s6185_s21, %s7185_s10 }
 0x14d   :  { %p6191_p4 = pnand %p6189_p3, %p6186_p2 }
 0x14f   :  { %6194 = shalt.err (!%p6191_p4)
}
 0x150   :  { %s6195_s27 = scalar_lea.vmem %s167_s0, 32  ;;  %p6200_p6 = scmp.lt.s32.totalorder %s167_s0, %s167_s0 }
 0x151   :  { %p6196_p5 = scmp.ne.s32.totalorder %s167_s0, %s6195_s27  ;;  %p6201_p7 = scmp.lt.s32.totalorder %s6195_s27, %s6195_s27 }
 0x153   :  { %p6202_p8 = por %p6201_p7, %p6200_p6 }
 0x155   :  { %p6203_p9 = pnand %p6202_p8, %p6196_p5 }
 0x157   :  { %6206 = shalt.err (!%p6203_p9)
}
 0x158   :  { %172 = dma.hbm_to_vmem [thread:$0]  %s7185_s10, 32, %s167_s0, [#allocation18], %s6400_s4, %s6400_s4, %s6401_s2  }
 0x159   :  { %s6410_s9 = smov [#allocation22]   ;;  %s6411_s19 = smov [#allocation25]  }
 0x15a   :  { %s190_s22 = sshll.u32 %s6410_s9, 4  ;;  %s214_s17 = sshll.u32 %s6411_s19, 4  ;;  %s191_s22 = int_to_ptr.vmem [resolvable:$true] %s190_s22  ;;  %s215_s17 = int_to_ptr.vmem [resolvable:$true] %s214_s17 }
 0x15b   :  { %s6207_s5 = scalar_lea.hbm %s7187_s12, 8192 }
 0x15c   :  { %p6208_p10 = scmp.ne.s32.totalorder %s7187_s12, %s6207_s5  ;;  %p6211_p11 = scmp.lt.u32.totalorder %s6207_s5, %s7187_s12 }
 0x15e   :  { %p6213_p12 = pnand %p6211_p11, %p6208_p10 }
 0x160   :  { %6216 = shalt.err (!%p6213_p12)
}
 0x161   :  { %s6217_s10 = scalar_lea.vmem %s191_s22, 8192  ;;  %p6222_p0 = scmp.lt.s32.totalorder %s191_s22, %s191_s22 }
 0x162   :  { %p6218_p13 = scmp.ne.s32.totalorder %s191_s22, %s6217_s10  ;;  %p6223_p1 = scmp.lt.s32.totalorder %s6217_s10, %s6217_s10 }
 0x164   :  { %p6224_p2 = por %p6223_p1, %p6222_p0 }
 0x166   :  { %p6225_p3 = pnand %p6224_p2, %p6218_p13 }
 0x168   :  { %6228 = shalt.err (!%p6225_p3)
}
 0x169   :  { %196 = dma.hbm_to_vmem [thread:$0]  %s7187_s12, 8192, %s191_s22, [#allocation21], %s7227_s25, %s7227_s25, %s6389_s29  }
 0x16a   :  { %s6229_s28 = scalar_lea.hbm %s7189_s14, 8192 }
 0x16b   :  { %p6230_p4 = scmp.ne.s32.totalorder %s7189_s14, %s6229_s28  ;;  %p6233_p5 = scmp.lt.u32.totalorder %s6229_s28, %s7189_s14 }
 0x16d   :  { %p6235_p6 = pnand %p6233_p5, %p6230_p4 }
 0x16f   :  { %6238 = shalt.err (!%p6235_p6)
}
 0x170   :  { %s6239_s11 = scalar_lea.vmem %s215_s17, 8192  ;;  %p6244_p8 = scmp.lt.s32.totalorder %s215_s17, %s215_s17 }
 0x171   :  { %p6240_p7 = scmp.ne.s32.totalorder %s215_s17, %s6239_s11  ;;  %p6245_p9 = scmp.lt.s32.totalorder %s6239_s11, %s6239_s11 }
 0x173   :  { %p6246_p10 = por %p6245_p9, %p6244_p8 }
 0x175   :  { %p6247_p11 = pnand %p6246_p10, %p6240_p7 }
 0x177   :  { %6250 = shalt.err (!%p6247_p11)
}
 0x178   :  { %220 = dma.hbm_to_vmem [thread:$0]  %s7189_s14, 8192, %s215_s17, [#allocation24], %s7227_s25, %s7227_s25, %s6389_s29  }
 0x179   :  { %s6412_s8 = smov [#allocation28]   ;;  %s6413_s9 = smov [#allocation31]  }
 0x17a   :  { %s238_s1 = sshll.u32 %s6412_s8, 4  ;;  %s263_s22 = sshll.u32 %s6413_s9, 4  ;;  %s239_s1 = int_to_ptr.vmem [resolvable:$true] %s238_s1  ;;  %s264_s22 = int_to_ptr.vmem [resolvable:$true] %s263_s22 }
 0x17b   :  { %s6251_s20 = scalar_lea.hbm %s7191_s16, 2048 }
 0x17c   :  { %p6252_p12 = scmp.ne.s32.totalorder %s7191_s16, %s6251_s20  ;;  %p6255_p13 = scmp.lt.u32.totalorder %s6251_s20, %s7191_s16 }
 0x17e   :  { %p6257_p0 = pnand %p6255_p13, %p6252_p12 }
 0x180   :  { %6260 = shalt.err (!%p6257_p0)
}
 0x181   :  { %s6261_s14 = scalar_lea.vmem %s239_s1, 2048  ;;  %p6266_p2 = scmp.lt.s32.totalorder %s239_s1, %s239_s1 }
 0x182   :  { %p6262_p1 = scmp.ne.s32.totalorder %s239_s1, %s6261_s14  ;;  %p6267_p3 = scmp.lt.s32.totalorder %s6261_s14, %s6261_s14 }
 0x184   :  { %p6268_p4 = por %p6267_p3, %p6266_p2 }
 0x186   :  { %p6269_p5 = pnand %p6268_p4, %p6262_p1 }
 0x188   :  { %6272 = shalt.err (!%p6269_p5)
}
 0x189   :  { %244 = dma.hbm_to_vmem [thread:$0]  %s7191_s16, 2048, %s239_s1, [#allocation27], %s7227_s25, %s7227_s25, %s6389_s29  }
 0x18a   :  { %s6273_s2 = scalar_lea.hbm %s7193_s18, 64 }
 0x18b   :  { %p6274_p6 = scmp.ne.s32.totalorder %s7193_s18, %s6273_s2  ;;  %p6277_p7 = scmp.lt.u32.totalorder %s6273_s2, %s7193_s18 }
 0x18d   :  { %p6279_p8 = pnand %p6277_p7, %p6274_p6 }
 0x18f   :  { %6282 = shalt.err (!%p6279_p8)
}
 0x190   :  { %s6283_s6 = scalar_lea.vmem %s264_s22, 64  ;;  %p6288_p10 = scmp.lt.s32.totalorder %s264_s22, %s264_s22 }
 0x191   :  { %p6284_p9 = scmp.ne.s32.totalorder %s264_s22, %s6283_s6  ;;  %p6289_p11 = scmp.lt.s32.totalorder %s6283_s6, %s6283_s6 }
 0x193   :  { %p6290_p12 = por %p6289_p11, %p6288_p10 }
 0x195   :  { %p6291_p13 = pnand %p6290_p12, %p6284_p9 }
 0x197   :  { %6294 = shalt.err (!%p6291_p13)
}
 0x198   :  { %266 = dma.hbm_to_vmem [thread:$0]  %s7193_s18, 64, %s264_s22, [#allocation30]  }
 0x199   :  { %s6414_s25 = smov [#allocation34]   ;;  %s6415_s7 = smov [#allocation37]  }
 0x19a   :  { %s285_s23 = sshll.u32 %s6414_s25, 4  ;;  %s307_s11 = sshll.u32 %s6415_s7, 4  ;;  %s286_s23 = int_to_ptr.vmem [resolvable:$true] %s285_s23  ;;  %s308_s11 = int_to_ptr.vmem [resolvable:$true] %s307_s11 }
 0x19b   :  { %s7232_s8 = sld [smem:[#allocation60_spill]] }
 0x1a1   :  { %s6295_s1 = scalar_lea.hbm %s7232_s8, 16 }
 0x1a2   :  { %p6296_p0 = scmp.ne.s32.totalorder %s7232_s8, %s6295_s1  ;;  %p6299_p1 = scmp.lt.u32.totalorder %s6295_s1, %s7232_s8 }
 0x1a4   :  { %p6301_p2 = pnand %p6299_p1, %p6296_p0 }
 0x1a6   :  { %6304 = shalt.err (!%p6301_p2)
}
 0x1a7   :  { %s6305_s18 = scalar_lea.vmem %s286_s23, 16  ;;  %s6309_s22 = scalar_lea.vmem %s286_s23, 32 }
 0x1a8   :  { %p6306_p3 = scmp.ne.s32.totalorder %s286_s23, %s6305_s18  ;;  %p6310_p4 = scmp.lt.s32.totalorder %s286_s23, %s286_s23 }
 0x1a9   :  { %p6311_p5 = scmp.lt.s32.totalorder %s6309_s22, %s6305_s18 }
 0x1ab   :  { %p6312_p6 = por %p6311_p5, %p6310_p4 }
 0x1ad   :  { %p6313_p7 = pnand %p6312_p6, %p6306_p3 }
 0x1af   :  { %6316 = shalt.err (!%p6313_p7)
}
 0x1b0   :  { %288 = dma.hbm_to_vmem [thread:$0]  %s7232_s8, 16, %s286_s23, [#allocation33]  }
 0x1b1   :  { %s7233_s14 = sld [smem:[#allocation61_spill]] }
 0x1b7   :  { %s6317_s17 = scalar_lea.hbm %s7233_s14, 16 }
 0x1b8   :  { %p6318_p8 = scmp.ne.s32.totalorder %s7233_s14, %s6317_s17  ;;  %p6321_p9 = scmp.lt.u32.totalorder %s6317_s17, %s7233_s14 }
 0x1ba   :  { %p6323_p10 = pnand %p6321_p9, %p6318_p8 }
 0x1bc   :  { %6326 = shalt.err (!%p6323_p10)
}
 0x1bd   :  { %s6327_s0 = scalar_lea.vmem %s308_s11, 16  ;;  %s6331_s24 = scalar_lea.vmem %s308_s11, 32 }
 0x1be   :  { %p6328_p11 = scmp.ne.s32.totalorder %s308_s11, %s6327_s0  ;;  %p6332_p12 = scmp.lt.s32.totalorder %s308_s11, %s308_s11 }
 0x1bf   :  { %p6333_p13 = scmp.lt.s32.totalorder %s6331_s24, %s6327_s0 }
 0x1c1   :  { %p6334_p0 = por %p6333_p13, %p6332_p12 }
 0x1c3   :  { %p6335_p1 = pnand %p6334_p0, %p6328_p11 }
 0x1c5   :  { %6338 = shalt.err (!%p6335_p1)
}
 0x1c6   :  { %310 = dma.hbm_to_vmem [thread:$0]  %s7233_s14, 16, %s308_s11, [#allocation36]  }
 0x1c7   :  { %6361 = dma.done.wait [#allocation3], 256  }
 0x1c8   :  { %6362 = vsyncadd [#allocation3], 4294967040 }
 0x1c9   :  { %6363 = dma.done.wait [#allocation6], 512  }
 0x1ca   :  { %6364 = vsyncadd [#allocation6], 4294966784 }
 0x1cb   :  { %6365 = dma.done.wait [#allocation9], 512  }
 0x1cc   :  { %6366 = vsyncadd [#allocation9], 4294966784 }
 0x1cd   :  { %6367 = dma.done.wait [#allocation12], 1024  }
 0x1ce   :  { %6368 = vsyncadd [#allocation12], 4294966272 }
 0x1cf   :  { %6369 = dma.done.wait [#allocation15], 2304  }
 0x1d0   :  { %6370 = vsyncadd [#allocation15], 4294964992 }
 0x1d1   :  { %6371 = dma.done.wait [#allocation18], 2080  }
 0x1d2   :  { %6372 = vsyncadd [#allocation18], 4294965216 }
 0x1d3   :  { %6373 = dma.done.wait [#allocation21], 10240  }
 0x1d4   :  { %6374 = vsyncadd [#allocation21], 4294957056 }
 0x1d5   :  { %6375 = dma.done.wait [#allocation24], 16384  }
 0x1d6   :  { %6376 = vsyncadd [#allocation24], 4294950912 }
 0x1d7   :  { %6377 = dma.done.wait [#allocation27], 2080  }
 0x1d8   :  { %6378 = vsyncadd [#allocation27], 4294965216 }
 0x1d9   :  { %6379 = dma.done.wait [#allocation30], 96  }
 0x1da   :  { %6380 = vsyncadd [#allocation30], 4294967200 }
 0x1db   :  { %6381 = dma.done.wait [#allocation33], 1040  }
 0x1dc   :  { %6382 = vsyncadd [#allocation33], 4294966256 }
 0x1dd   :  { %6383 = dma.done.wait [#allocation36], 1040  }
 0x1de   :  { %6384 = vsyncadd [#allocation36], 4294966256  ;;  %v425_v0 = vld [vmem:[#allocation2] sm:$0xff]  ;;  %v426_v1 = vld [vmem:[#allocation2 + $0x8] sm:$0xff]  ;;  %vm438_vm0 = vcmask 130048   ;;  %v6416_v35 = vmov 0.0  }
 0x1df   :  { %v6890_v2 = vpack.c.bf16 %v426_v1, %v425_v0  ;;  %v5528_v3 = vld [vmem:[#allocation5] sm:$0xff]   ;;  %v5529_v4 = vld [vmem:[#allocation5 + $0x8] sm:$0xff]   ;;  %v5530_v5 = vld [vmem:[#allocation7] sm:$0xff]   ;;  %vm6417_vm1 = vmmov 0   ;;  %v6418_v38 = vmov 0   ;;  %vm813_vm4 = vcmask 261120  }
 0x1e0   :  { %5193 = vmatprep.mubr.msk.bf16.mxu0 %vm438_vm0, %v5528_v3  ;;  %v5531_v6 = vld [vmem:[#allocation7 + $0x8] sm:$0xff]   ;;  %5199 = vmatprep.mubr.msk.bf16.mxu1 %vm438_vm0, %v5530_v5  ;;  %v5532_v7 = vld [vmem:[#allocation17] sm:$0xff]   ;;  %v5534_v9 = vld [vmem:[#allocation17 + $0x10] sm:$0xff]   ;;  %s6419_s6 = smov [#allocation38]  }
 0x1e1   :  { %5191 = vmatprep.subr.bf16.mxu0 %v6890_v2  ;;  %5197 = vmatprep.subr.bf16.mxu1 %v6890_v2  ;;  %v5533_v8 = vld [vmem:[#allocation17 + $0x8] sm:$0xff]   ;;  %v5535_v10 = vld [vmem:[#allocation17 + $0x18] sm:$0xff]   ;;  %v5536_v11 = vld [vmem:[#allocation17 + $0x20] sm:$0xff]   ;;  %s4434_s16 = sshll.u32 %s6419_s6, 4  ;;  %s4435_s16 = int_to_ptr.vmem [resolvable:$true] %s4434_s16 }
 0x1e2   :  { %5192 = vmatpush3.bf16.msra.mxu0 %v6890_v2  ;;  %5198 = vmatpush3.bf16.msra.mxu1 %v6890_v2  ;;  %v5537_v12 = vld [vmem:[#allocation17 + $0x28] sm:$0xff]   ;;  %v5538_v13 = vld [vmem:[#allocation17 + $0x30] sm:$0xff]   ;;  %v5539_v14 = vld [vmem:[#allocation17 + $0x38] sm:$0xff]   ;;  %s6339_s29 = scalar_lea.vmem %s4435_s16, 128  ;;  %p6344_p3 = scmp.lt.s32.totalorder %s4435_s16, %s4435_s16 }
 0x1e3   :  { %5203 = vmatprep.subr.bf16.mxu0 %v5532_v7  ;;  %v5540_v15 = vld [vmem:[#allocation16] sm:$0xff]   ;;  %v5541_v27 = vld [vmem:[#allocation16 + $0x8] sm:$0xff]   ;;  %v5542_v29 = vld [vmem:[#allocation16 + $0x10] sm:$0xff]   ;;  %5243 = vmatprep.subr.bf16.mxu1 %v6416_v35  ;;  %p6340_p2 = scmp.ne.s32.totalorder %s4435_s16, %s6339_s29  ;;  %p6345_p4 = scmp.lt.s32.totalorder %s6339_s29, %s6339_s29 }
 0x1e4   :  { %v5543_v30 = vld [vmem:[#allocation16 + $0x18] sm:$0xff]   ;;  %v5544_v31 = vld [vmem:[#allocation16 + $0x20] sm:$0xff]   ;;  %v5545_v32 = vld [vmem:[#allocation16 + $0x28] sm:$0xff]   ;;  %5526 = vset.pattern.permute.xlu0 %v6418_v38  ;;  %5527 = vset.pattern.permute.xlu1 %v6418_v38 }
 0x1e5   :  { %5194 = vmatmul.mubr.msk.bf16.vlgmr.msra.gmra.mrb[0].mxu0 %vm438_vm0, %v5529_v4  ;;  %5200 = vmatmul.mubr.msk.bf16.vlgmr.msra.gmra.mrb[0].mxu1 %vm438_vm0, %v5531_v6  ;;  %v5546_v33 = vld [vmem:[#allocation16 + $0x30] sm:$0xff]   ;;  %v5547_v34 = vld [vmem:[#allocation16 + $0x38] sm:$0xff]   ;;  %v405_v37 = vld [vmem:[#allocation11 + $0x10] sm:$0xff]  ;;  %p6346_p5 = por %p6345_p4, %p6344_p3 }
 0x1e6   :  { %5204 = vmatpush3.bf16.msra.mxu0 %v5532_v7  ;;  %5247 = vmatprep.mubr.msk.bf16.mxu1 %vm6417_vm1, %v6416_v35  ;;  %v403_v36 = vld [vmem:[#allocation11] sm:$0xff]  ;;  %v382_v40 = vld [vmem:[#allocation14 + $0x8] sm:$0xff]  ;;  %v406_v42 = vld [vmem:[#allocation11 + $0x18] sm:$0xff] }
 0x1e7   :  { %5205 = vmatprep.subr.bf16.mxu0 %v5533_v8  ;;  %1018 = vperm.xlu0 %5526, %v403_v36   ;;  %v381_v39 = vld [vmem:[#allocation14] sm:$0xff]  ;;  %v404_v41 = vld [vmem:[#allocation11 + $0x8] sm:$0xff]  ;;  %v388_v43 = vadd.f32 1.0, %v382_v40  ;;  %v5552_v45 = vld [vmem:[#allocation20] sm:$0xff]   ;;  %p6347_p6 = pnand %p6346_p5, %p6340_p2 }
 0x1e8   :  { %1032 = vperm.xlu1 %5527, %v405_v37   ;;  %5808 = vrcp.f32 %v381_v39  ;;  %v387_v44 = vadd.f32 1.0, %v381_v39  ;;  %v5553_v46 = vld [vmem:[#allocation20 + $0x8] sm:$0xff]   ;;  %v408_v48 = vld [vmem:[#allocation11 + $0x28] sm:$0xff]  ;;  %v399_v49 = vld [vmem:[#allocation13] sm:$0xff] }
 0x1e9   :  { %5810 = vrcp.f32 %v382_v40  ;;  %v407_v47 = vld [vmem:[#allocation11 + $0x20] sm:$0xff]  ;;  %v400_v51 = vld [vmem:[#allocation13 + $0x8] sm:$0xff]  ;;  %vm401_vm2 = vcmp.gt.f32.partialorder %v399_v49, 0.5  ;;  %v5555_v53 = vld [vmem:[#allocation20 + $0x18] sm:$0xff]  }
 0x1ea   :  { %5206 = vmatpush3.bf16.msra.mxu0 %v5533_v8  ;;  %5812 = vlog2.f32 %v388_v43  ;;  %v5554_v50 = vld [vmem:[#allocation20 + $0x10] sm:$0xff]   ;;  %vm402_vm3 = vcmp.gt.f32.partialorder %v400_v51, 0.5  ;;  %v1066_v56 = vsel %vm401_vm2, 1, %v6418_v38  ;;  %v5556_v61 = vld [vmem:[#allocation20 + $0x20] sm:$0xff]   ;;  %v5557_v0 = vld [vmem:[#allocation20 + $0x28] sm:$0xff]  }
 0x1eb   :  { %5207 = vmatprep.subr.bf16.mxu0 %v5534_v9  ;;  %1023 = vperm.xlu0 %5526, %v404_v41   ;;  %5814 = vlog2.f32 %v387_v44  ;;  %v1067_v58 = vsel %vm402_vm3, 1, %v6418_v38  ;;  %v4478_v6 = vld [vmem:[#allocation19] ss:$0 sm:$0xff]  ;;  %v5566_v36 = vld [vmem:[#allocation23 + $0x88] sm:$0xff]   ;;  %v5568_v38 = vld [vmem:[#allocation23 + $0xd0] sm:$0xff]  }
 0x1ec   :  { %1037 = vperm.xlu1 %5527, %v406_v42   ;;  %v5567_v37 = vld [vmem:[#allocation22 + $0x8] sm:$0xff]   ;;  %v5569_v39 = vld [vmem:[#allocation22 + $0x50] sm:$0xff]   ;;  %v5573_v42 = vld [vmem:[#allocation22 + $0x58] sm:$0xff]  }
 0x1ed   :  { %v5570_v40 = vld [vmem:[#allocation23 + $0x90] sm:$0xff]   ;;  %v5574_v43 = vld [vmem:[#allocation23 + $0x98] sm:$0xff]   ;;  %v5580_v49 = vld [vmem:[#allocation23 + $0xe8] sm:$0xff]  }
 0x1ee   :  { %5208 = vmatpush3.bf16.msra.mxu0 %v5534_v9  ;;  %v5571_v41 = vld [vmem:[#allocation22 + $0x10] sm:$0xff]   ;;  %v5575_v44 = vld [vmem:[#allocation22 + $0x18] sm:$0xff]   ;;  %v5582_v51 = vld [vmem:[#allocation23 + $0xa8] sm:$0xff]  }
 0x1ef   :  { %5209 = vmatprep.subr.bf16.mxu0 %v5535_v10  ;;  %1050 = vperm.xlu0 %5526, %v407_v47   ;;  %v5578_v47 = vld [vmem:[#allocation23 + $0xa0] sm:$0xff]  }
 0x1f0   :  { %1055 = vperm.xlu1 %5527, %v408_v48   ;;  %v5579_v48 = vld [vmem:[#allocation22 + $0x20] sm:$0xff]  }
 0x1f2   :  { %5210 = vmatpush3.bf16.msra.mxu0 %v5535_v10  ;;  %v5809_v52 = vpop.eup %5808 }
 0x1f3   :  { %5211 = vmatprep.subr.bf16.mxu0 %v5536_v11  ;;  %v5811_v54 = vpop.eup %5810  ;;  %901 = vperm.xlu0 %5526, %v5809_v52   ;;  %v5583_v52 = vld [vmem:[#allocation22 + $0x28] sm:$0xff]  }
 0x1f4   :  { %v5813_v55 = vpop.eup %5812  ;;  %906 = vperm.xlu1 %5527, %v5811_v54   ;;  %v5585_v54 = vld [vmem:[#allocation22 + $0x70] sm:$0xff]  }
 0x1f5   :  { %v5815_v57 = vpop.eup %5814  ;;  %v392_v59 = vmul.f32 0.6931472, %v5813_v55  ;;  %v5586_v55 = vld [vmem:[#allocation23 + $0xb0] sm:$0xff]  }
 0x1f6   :  { %5212 = vmatpush3.bf16.msra.mxu0 %v5536_v11  ;;  %v390_v60 = vmul.f32 0.6931472, %v5815_v57  ;;  %v5588_v57 = vld [vmem:[#allocation23 + $0xf8] sm:$0xff]  }
 0x1f7   :  { %5213 = vmatprep.subr.bf16.mxu0 %v5537_v12  ;;  %1069 = vperm.xlu0 %5526, %v1066_v56   ;;  %5816 = vrcp.f32 %v392_v59  ;;  %v394_v62 = vmul.f32 0.98185205, %v392_v59  ;;  %v5587_v56 = vld [vmem:[#allocation22 + $0x30] sm:$0xff]   ;;  %v5590_v59 = vld [vmem:[#allocation23 + $0xb8] sm:$0xff]  }
 0x1f8   :  { %1072 = vperm.xlu1 %5527, %v1067_v58   ;;  %v393_v63 = vmul.f32 0.98185205, %v390_v60  ;;  %5818 = vrcp.f32 %v390_v60  ;;  %v5589_v58 = vld [vmem:[#allocation22 + $0x78] sm:$0xff]  }
 0x1f9   :  { %v5591_v60 = vld [vmem:[#allocation22 + $0x38] sm:$0xff]  }
 0x1fa   :  { %5214 = vmatpush3.bf16.msra.mxu0 %v5537_v12 }
 0x1fb   :  { %5215 = vmatprep.subr.bf16.mxu0 %v5538_v13  ;;  %1867 = vperm.xlu0 %5526, %v393_v63  }
 0x1fc   :  { %1872 = vperm.xlu1 %5527, %v394_v62   ;;  %v5593_v62 = vld [vmem:[#allocation22 + $0xc0] sm:$0xff]  }
 0x1fe   :  { %5216 = vmatpush3.bf16.msra.mxu0 %v5538_v13 }
 0x1ff   :  { %5217 = vmatprep.subr.bf16.mxu0 %v5539_v14 }
 0x201   :  { %v5817_v1 = vpop.eup %5816 }
 0x202   :  { %5218 = vmatpush3.bf16.msra.mxu0 %v5539_v14  ;;  %v5819_v3 = vpop.eup %5818  ;;  %v398_v4 = vmul.f32 1.0184834, %v5817_v1 }
 0x203   :  { %5223 = vmatprep.subr.bf16.mxu0 %v5540_v15  ;;  %v396_v5 = vmul.f32 1.0184834, %v5819_v3 }
 0x204   :  { %2224 = vperm.xlu1 %5527, %v398_v4  }
 0x205   :  { %2219 = vperm.xlu0 %5526, %v396_v5  }
 0x266   :  { %v6941_v63 = vpop.permute.xlu0 %1018 }
 0x26a   :  { %v6945_v1 = vpop.permute.xlu0 %1023 }
 0x26e   :  { %v6949_v4 = vpop.permute.xlu0 %1050 }
 0x2b8   :  { %v5195_v16 = vpop.f32.mrb[0].mxu0  ;;  %v5201_v18 = vpop.f32.mrb[0].mxu1 }
 0x2b9   :  { %v479_v17 = vpop.f32.mrb[1].mxu0  ;;  %v544_v20 = vpop.f32.mrb[1].mxu1 }
 0x2ba   :  { %v5196_v19 = vpop.f32.mrb[2].mxu0  ;;  %v5202_v23 = vpop.f32.mrb[2].mxu1 }
 0x2bb   :  { %v578_v21 = vpack.c.bf16 %v5196_v19, %v5195_v16  ;;  %v482_v22 = vpop.f32.mrb[3].mxu0  ;;  %v560_v25 = vpack.c.bf16 %v5202_v23, %v5201_v18  ;;  %v547_v26 = vpop.f32.mrb[3].mxu1  ;;  %v5548_v23 = vld [vmem:[#allocation8] sm:$0xff]  }
 0x2bc   :  { %v577_v24 = vpack.c.bf16 %v482_v22, %v479_v17  ;;  %v559_v28 = vpack.c.bf16 %v547_v26, %v544_v20  ;;  %v6935_v26 = vld [vmem:[#allocation10 + $0x10] sm:$0xff]  }
 0x2be   :  { %5219 = vmatprep.mubr.bf16.mxu0 %v577_v24  ;;  %v6923_v24 = vld [vmem:[#allocation10] sm:$0xff]  }
 0x2bf   :  { %5220 = vmatmul.mubr.bf16.vlgmr.msra.gmra.mrb[4].mxu0 %v578_v21 }
 0x2c0   :  { %5224 = vmatpush3.bf16.msra.mxu0 %v5540_v15  ;;  %5239 = vmatprep.mubr.bf16.mxu0 %v559_v28  ;;  %v5559_v28 = vld [vmem:[#allocation20 + $0x38] sm:$0xff]  }
 0x2c1   :  { %5225 = vmatprep.subr.bf16.mxu0 %v5541_v27 }
 0x2c4   :  { %5226 = vmatpush3.bf16.msra.mxu0 %v5541_v27  ;;  %v5558_v27 = vld [vmem:[#allocation20 + $0x30] sm:$0xff]  }
 0x2c5   :  { %5227 = vmatprep.subr.bf16.mxu0 %v5542_v29 }
 0x2c8   :  { %5228 = vmatpush3.bf16.msra.mxu0 %v5542_v29  ;;  %v5560_v29 = vld [vmem:[#allocation23 + $0xc0] sm:$0xff]  }
 0x2c9   :  { %5229 = vmatprep.subr.bf16.mxu0 %v5543_v30 }
 0x2cc   :  { %5230 = vmatpush3.bf16.msra.mxu0 %v5543_v30  ;;  %v5561_v30 = vld [vmem:[#allocation22 + $0x40] sm:$0xff]  }
 0x2cd   :  { %5231 = vmatprep.subr.bf16.mxu0 %v5544_v31 }
 0x2d0   :  { %5232 = vmatpush3.bf16.msra.mxu0 %v5544_v31  ;;  %v5562_v31 = vld [vmem:[#allocation23 + $0x80] sm:$0xff]  }
 0x2d1   :  { %5233 = vmatprep.subr.bf16.mxu0 %v5545_v32 }
 0x2d4   :  { %5234 = vmatpush3.bf16.msra.mxu0 %v5545_v32  ;;  %v5563_v32 = vld [vmem:[#allocation22] sm:$0xff]  }
 0x2d5   :  { %5235 = vmatprep.subr.bf16.mxu0 %v5546_v33 }
 0x2d8   :  { %5236 = vmatpush3.bf16.msra.mxu0 %v5546_v33  ;;  %v5564_v33 = vld [vmem:[#allocation23 + $0xc8] sm:$0xff]  }
 0x2d9   :  { %5237 = vmatprep.subr.bf16.mxu0 %v5547_v34 }
 0x2dc   :  { %5238 = vmatpush3.bf16.msra.mxu0 %v5547_v34  ;;  %v5565_v34 = vld [vmem:[#allocation22 + $0x48] sm:$0xff]  }
 0x2dd   :  { %5275 = vmatprep.subr.bf16.mxu0 %v6416_v35 }
 0x2df   :  { %5240 = vmatmul.mubr.bf16.vlgmr.msra.gmra.mrb[4].mxu0 %v560_v25  ;;  %v6929_v25 = vld [vmem:[#allocation10 + $0x8] sm:$0xff]  }
 0x2e0   :  { %5291 = vmatprep.mubr.msk.bf16.mxu0 %vm6417_vm1, %v6416_v35  ;;  %5276 = vmatpush3.bf16.msra.mxu0 %v5552_v45  ;;  %v5576_v45 = vld [vmem:[#allocation23 + $0xe0] sm:$0xff]  }
 0x2e1   :  { %5277 = vmatprep.subr.bf16.mxu0 %v6416_v35 }
 0x2e4   :  { %5278 = vmatpush3.bf16.msra.mxu0 %v5553_v46  ;;  %v5577_v46 = vld [vmem:[#allocation22 + $0x60] sm:$0xff]  }
 0x2e5   :  { %5279 = vmatprep.subr.bf16.mxu0 %v6416_v35 }
 0x2e8   :  { %5280 = vmatpush3.bf16.msra.mxu0 %v5554_v50  ;;  %v5581_v50 = vld [vmem:[#allocation22 + $0x68] sm:$0xff]  }
 0x2e9   :  { %5281 = vmatprep.subr.bf16.mxu0 %v6416_v35 }
 0x2ec   :  { %5282 = vmatpush3.bf16.msra.mxu0 %v5555_v53  ;;  %v5584_v53 = vld [vmem:[#allocation23 + $0xf0] sm:$0xff]  }
 0x2ed   :  { %5283 = vmatprep.subr.bf16.mxu0 %v6416_v35 }
 0x2f0   :  { %5284 = vmatpush3.bf16.msra.mxu0 %v5556_v61  ;;  %v5592_v61 = vld [vmem:[#allocation25 + $0xc0] sm:$0xff]  }
 0x2f1   :  { %5285 = vmatprep.subr.bf16.mxu0 %v6416_v35 }
 0x2f4   :  { %5286 = vmatpush3.bf16.msra.mxu0 %v5557_v0  ;;  %v6943_v0 = vpop.permute.xlu1 %1032 }
 0x2f5   :  { %5287 = vmatprep.subr.bf16.mxu0 %v6416_v35 }
 0x2f8   :  { %5288 = vmatpush3.bf16.msra.mxu0 %v5558_v27  ;;  %v6947_v3 = vpop.permute.xlu1 %1037 }
 0x2f9   :  { %5289 = vmatprep.subr.bf16.mxu0 %v6416_v35 }
 0x2fc   :  { %5290 = vmatpush3.bf16.msra.mxu0 %v5559_v28  ;;  %v6951_v5 = vpop.permute.xlu1 %1055 }
 0x2fd   :  { %4909 = vmatprep.subr.bf16.mxu0 %v5560_v29 }
 0x2ff   :  { %5292 = vmatmul.mubr.bf16.vlgmr.msra.gmra.mrb[8].mxu0 %v6890_v2  ;;  %v5572_v2 = vld [vmem:[#allocation23 + $0xd8] sm:$0xff]  }
 0x300   :  { %4910 = vmatpush3.bf16.msra.mxu0 %v5562_v31 }
 0x301   :  { %4911 = vmatprep.subr.bf16.mxu0 %v5564_v33 }
 0x304   :  { %4912 = vmatpush3.bf16.msra.mxu0 %v5566_v36 }
 0x305   :  { %4913 = vmatprep.subr.bf16.mxu0 %v5568_v38 }
 0x308   :  { %4914 = vmatpush3.bf16.msra.mxu0 %v5570_v40 }
 0x309   :  { %4915 = vmatprep.subr.bf16.mxu0 %v5572_v2 }
 0x30c   :  { %4916 = vmatpush3.bf16.msra.mxu0 %v5574_v43 }
 0x30d   :  { %4917 = vmatprep.subr.bf16.mxu0 %v5576_v45 }
 0x310   :  { %4918 = vmatpush3.bf16.msra.mxu0 %v5578_v47 }
 0x311   :  { %4919 = vmatprep.subr.bf16.mxu0 %v5580_v49 }
 0x314   :  { %4920 = vmatpush3.bf16.msra.mxu0 %v5582_v51 }
 0x315   :  { %4921 = vmatprep.subr.bf16.mxu0 %v5584_v53 }
 0x318   :  { %4922 = vmatpush3.bf16.msra.mxu0 %v5586_v55 }
 0x319   :  { %4923 = vmatprep.subr.bf16.mxu0 %v5588_v57 }
 0x31c   :  { %4924 = vmatpush3.bf16.msra.mxu0 %v5590_v59 }
 0x31d   :  { %4953 = vmatprep.subr.bf16.mxu0 %v5592_v61 }
 0x3b2   :  { %v5241_v7 = vpop.f32.mrb[4].mxu0 }
 0x3b3   :  { %v798_v8 = vadd.f32 %v5241_v7, %v4478_v6  ;;  %v774_v9 = vpop.f32.mrb[5].mxu0 }
 0x3b4   :  { %v796_v10 = vadd.f32 %v4478_v6, %v774_v9  ;;  %v5242_v11 = vpop.f32.mrb[6].mxu0 }
 0x3b5   :  { %v799_v12 = vadd.f32 %v5242_v11, %v4478_v6  ;;  %v777_v13 = vpop.f32.mrb[7].mxu0  ;;  %v804_v15 = vmul.f32 %v798_v8, %v798_v8 }
 0x3b6   :  { %v797_v14 = vadd.f32 %v4478_v6, %v777_v13  ;;  %v802_v18 = vmul.f32 %v796_v10, %v796_v10  ;;  %v6953_v6 = vpop.permute.xlu0 %901 }
 0x3b7   :  { %v801_v16 = vpack.c.bf16 %v799_v12, %v798_v8  ;;  %v805_v17 = vmul.f32 %v799_v12, %v799_v12  ;;  %v6955_v8 = vpop.permute.xlu1 %906 }
 0x3b8   :  { %v800_v19 = vpack.c.bf16 %v797_v14, %v796_v10  ;;  %v803_v20 = vmul.f32 %v797_v14, %v797_v14 }
 0x3b9   :  { %v807_v21 = vpack.c.bf16 %v805_v17, %v804_v15 }
 0x3ba   :  { %v806_v22 = vpack.c.bf16 %v803_v20, %v802_v18  ;;  %5244 = vmatpush3.bf16.msra.mxu1 %v800_v19 }
 0x3bb   :  { %5245 = vmatprep.subr.bf16.mxu1 %v6416_v35 }
 0x3be   :  { %5246 = vmatpush3.bf16.msra.mxu1 %v801_v16 }
 0x3bf   :  { %5251 = vmatprep.subr.bf16.mxu1 %v6416_v35 }
 0x3c1   :  { %5248 = vmatmul.mubr.msk.bf16.vlgmr.msra.gmra.mrb[4].mxu1 %vm813_vm4, %v5548_v23 }
 0x3c2   :  { %5252 = vmatpush3.bf16.msra.mxu1 %v806_v22  ;;  %5255 = vmatprep.mubr.msk.bf16.mxu1 %vm6417_vm1, %v6416_v35 }
 0x3c3   :  { %5253 = vmatprep.subr.bf16.mxu1 %v6416_v35 }
 0x3c6   :  { %5254 = vmatpush3.bf16.msra.mxu1 %v807_v21 }
 0x3c7   :  { %5259 = vmatprep.subr.bf16.mxu1 %v6416_v35 }
 0x3c9   :  { %5256 = vmatmul.mubr.msk.bf16.vlgmr.msra.gmra.mrb[8].mxu1 %vm813_vm4, %v5548_v23 }
 0x3ca   :  { %5260 = vmatpush3.bf16.msra.mxu1 %v800_v19  ;;  %5263 = vmatprep.mubr.msk.bf16.mxu1 %vm6417_vm1, %v6416_v35 }
 0x3cb   :  { %5261 = vmatprep.subr.bf16.mxu1 %v6416_v35 }
 0x3ce   :  { %5262 = vmatpush3.bf16.msra.mxu1 %v801_v16 }
 0x3cf   :  { %4834 = vmatprep.subr.bf16.mxu1 %v5561_v30 }
 0x3d1   :  { %5264 = vmatmul.mubr.msk.bf16.vlgmr.msra.gmra.mrb[12].mxu1 %vm813_vm4, %v6923_v24 }
 0x3d2   :  { %5267 = vmatprep.mubr.msk.bf16.mxu1 %vm6417_vm1, %v6416_v35  ;;  %4835 = vmatpush3.bf16.msra.mxu1 %v5563_v32 }
 0x3d3   :  { %4836 = vmatprep.subr.bf16.mxu1 %v5565_v34 }
 0x3d6   :  { %4837 = vmatpush3.bf16.msra.mxu1 %v5567_v37 }
 0x3d7   :  { %4838 = vmatprep.subr.bf16.mxu1 %v5569_v39 }
 0x3d9   :  { %5268 = vmatmul.mubr.msk.bf16.gmra.mrb[16].mxu1 %vm813_vm4, %v6929_v25 }
 0x3da   :  { %5271 = vmatprep.mubr.msk.bf16.mxu1 %vm6417_vm1, %v6416_v35  ;;  %4839 = vmatpush3.bf16.msra.mxu1 %v5571_v41 }
 0x3db   :  { %4840 = vmatprep.subr.bf16.mxu1 %v5573_v42 }
 0x3de   :  { %4841 = vmatpush3.bf16.msra.mxu1 %v5575_v44 }
 0x3df   :  { %4842 = vmatprep.subr.bf16.mxu1 %v5577_v46 }
 0x3e1   :  { %5272 = vmatmul.mubr.msk.bf16.gmra.mrb[20].mxu1 %vm813_vm4, %v6935_v26 }
 0x3e2   :  { %4843 = vmatpush3.bf16.msra.mxu1 %v5579_v48 }
 0x3e3   :  { %4844 = vmatprep.subr.bf16.mxu1 %v5581_v50 }
 0x3e6   :  { %4845 = vmatpush3.bf16.msra.mxu1 %v5583_v52 }
 0x3e7   :  { %4846 = vmatprep.subr.bf16.mxu1 %v5585_v54 }
 0x3ea   :  { %4847 = vmatpush3.bf16.msra.mxu1 %v5587_v56 }
 0x3eb   :  { %4848 = vmatprep.subr.bf16.mxu1 %v5589_v58 }
 0x3ee   :  { %4849 = vmatpush3.bf16.msra.mxu1 %v5591_v60 }
 0x3ef   :  { %4856 = vmatprep.subr.bf16.mxu1 %v5593_v62 }
 0x494   :  { %v851_v7 = vpop.f32.mrb[4].mxu1 }
 0x495   :  { %v5249_v9 = vpop.f32.mrb[5].mxu1  ;;  %v909_v11 = vmul.f32 %v6953_v6, %v851_v7 }
 0x496   :  { %v854_v10 = vpop.f32.mrb[6].mxu1 }
 0x497   :  { %v910_v12 = vmul.f32 %v6955_v8, %v854_v10  ;;  %v5250_v13 = vpop.f32.mrb[7].mxu1  ;;  %v913_v17 = vmul.f32 %v909_v11, %v909_v11 }
 0x499   :  { %v6959_v14 = vpack.c.bf16 %v910_v12, %v909_v11  ;;  %v914_v22 = vmul.f32 %v910_v12, %v910_v12 }
 0x49c   :  { %v892_v15 = vpop.f32.mrb[8].mxu1 }
 0x49d   :  { %v911_v16 = vmul.f32 %v6953_v6, %v892_v15  ;;  %v5257_v18 = vpop.f32.mrb[9].mxu1 }
 0x49e   :  { %v895_v19 = vpop.f32.mrb[10].mxu1 }
 0x49f   :  { %v915_v20 = vsub.f32 %v911_v16, %v913_v17  ;;  %v912_v21 = vmul.f32 %v6955_v8, %v895_v19  ;;  %v5258_v23 = vpop.f32.mrb[11].mxu1  ;;  %v1073_v19 = vpop.permute.xlu1 %1072 }
 0x4a0   :  { %vm1075_vm9 = vcmp.eq.s32.totalorder %v1073_v19, 1  ;;  %v5594_v23 = vld [vmem:[#allocation25 + $0x80] sm:$0xff]   ;;  %v5636_v19 = vld [vmem:[#allocation23 + $0x70] sm:$0xff]  }
 0x4a1   :  { %v917_v27 = vmax.f32 %v915_v20, 0.0  ;;  %v916_v28 = vsub.f32 %v912_v21, %v914_v22  ;;  %v1070_v20 = vpop.permute.xlu0 %1069 }
 0x4a2   :  { %vm1074_vm10 = vcmp.eq.s32.totalorder %v1070_v20, 1 }
 0x4a3   :  { %v919_v29 = vadd.f32 1e-05, %v917_v27  ;;  %v918_v30 = vmax.f32 %v916_v28, 0.0  ;;  %vm6979_vm11 = vmpackc.low %vm1075_vm9, %vm1074_vm10 }
 0x4a4   :  { %v993_v31 = vpop.f32.mrb[12].mxu1 }
 0x4a5   :  { %5820 = vrsqrt.f32 %v919_v29  ;;  %v920_v32 = vadd.f32 1e-05, %v918_v30  ;;  %v5265_v33 = vpop.f32.mrb[13].mxu1  ;;  %v1026_v38 = vadd.f32 %v6941_v63, %v993_v31  ;;  %v1028_v39 = vsub.f32 %v993_v31, %v6941_v63  ;;  %v5596_v31 = vld [vmem:[#allocation25 + $0xc8] sm:$0xff]  }
 0x4a6   :  { %v996_v34 = vpop.f32.mrb[14].mxu1  ;;  %vm923_vm5 = vcmp.eq.f32.partialorder %v919_v29, inf  ;;  %v926_v57 = vand.u32 2147483648, %v919_v29  ;;  %vm925_vm7 = vcmp.eq.f32.partialorder %v919_v29, 0.0  ;;  %v5598_v33 = vld [vmem:[#allocation25 + $0x88] sm:$0xff]  }
 0x4a7   :  { %5822 = vrsqrt.f32 %v920_v32  ;;  %v5266_v36 = vpop.f32.mrb[15].mxu1  ;;  %v1027_v42 = vadd.f32 %v6945_v1, %v996_v34  ;;  %v1029_v43 = vsub.f32 %v996_v34, %v6945_v1  ;;  %vm930_vm6 = vcmp.eq.f32.partialorder %v920_v32, inf  ;;  %v5599_v34 = vld [vmem:[#allocation22 + $0x88] sm:$0xff]  }
 0x4a8   :  { %v933_v58 = vand.u32 2147483648, %v920_v32  ;;  %vm932_vm8 = vcmp.eq.f32.partialorder %v920_v32, 0.0  ;;  %v5600_v36 = vld [vmem:[#allocation25 + $0xd0] sm:$0xff]   ;;  %v5788_v30 = vld [vmem:[#allocation28 + $0x60] sm:$0xff]  }
 0x4ac   :  { %v1001_v37 = vpop.f32.mrb[16].mxu1 }
 0x4ad   :  { %v1040_v40 = vadd.f32 %v6943_v0, %v1001_v37  ;;  %v1044_v41 = vsub.f32 %v1001_v37, %v6943_v0  ;;  %v5269_v2 = vpop.f32.mrb[17].mxu1  ;;  %v5601_v37 = vld [vmem:[#allocation22 + $0xd0] sm:$0xff]  }
 0x4ae   :  { %v1004_v44 = vpop.f32.mrb[18].mxu1  ;;  %v5606_v2 = vld [vmem:[#allocation25 + $0x98] sm:$0xff]  }
 0x4af   :  { %v5821_v45 = vpop.eup %5820  ;;  %v1042_v46 = vmin.f32 %v1026_v38, %v1040_v40  ;;  %v1046_v47 = vmax.f32 %v1028_v39, %v1044_v41  ;;  %v1041_v48 = vadd.f32 %v6947_v3, %v1004_v44  ;;  %v1045_v49 = vsub.f32 %v1004_v44, %v6947_v3  ;;  %v5270_v50 = vpop.f32.mrb[19].mxu1  ;;  %v5602_v38 = vld [vmem:[#allocation25 + $0x90] sm:$0xff]   ;;  %v5604_v40 = vld [vmem:[#allocation25 + $0xd8] sm:$0xff]   ;;  %v5609_v44 = vld [vmem:[#allocation22 + $0xe0] sm:$0xff]  }
 0x4b0   :  { %v922_v51 = vmul.f32 %v5821_v45, %v919_v29  ;;  %v5603_v39 = vld [vmem:[#allocation22 + $0x90] sm:$0xff]   ;;  %v5605_v41 = vld [vmem:[#allocation22 + $0xd8] sm:$0xff]   ;;  %v5610_v45 = vld [vmem:[#allocation25 + $0xa0] sm:$0xff]  }
 0x4b1   :  { %v5823_v52 = vpop.eup %5822  ;;  %v1043_v53 = vmin.f32 %v1027_v42, %v1041_v48  ;;  %v1047_v54 = vmax.f32 %v1029_v43, %v1045_v49  ;;  %v5607_v42 = vld [vmem:[#allocation22 + $0x98] sm:$0xff]   ;;  %v5608_v43 = vld [vmem:[#allocation25 + $0xe0] sm:$0xff]   ;;  %v5613_v48 = vld [vmem:[#allocation22 + $0xe8] sm:$0xff]  }
 0x4b2   :  { %v924_v55 = vsel %vm923_vm5, %v919_v29, %v922_v51  ;;  %v929_v56 = vmul.f32 %v5823_v52, %v920_v32  ;;  %v5595_v29 = vld [vmem:[#allocation22 + $0x80] sm:$0xff]   ;;  %v5614_v49 = vld [vmem:[#allocation25 + $0xa8] sm:$0xff]   ;;  %v5616_v51 = vld [vmem:[#allocation25 + $0xf0] sm:$0xff]  }
 0x4b3   :  { %v927_v9 = vsel %vm925_vm7, %v926_v57, %v924_v55  ;;  %v5615_v50 = vld [vmem:[#allocation22 + $0xa8] sm:$0xff]   ;;  %v5617_v52 = vld [vmem:[#allocation22 + $0xf0] sm:$0xff]   ;;  %v5620_v55 = vld [vmem:[#allocation25 + $0xf8] sm:$0xff]  }
 0x4b4   :  { %v1009_v59 = vpop.f32.mrb[20].mxu1  ;;  %v931_v60 = vsel %vm930_vm6, %v920_v32, %v929_v56  ;;  %v5597_v32 = vld [vmem:[#allocation22 + $0xc8] sm:$0xff]   ;;  %v5621_v56 = vld [vmem:[#allocation22 + $0xf8] sm:$0xff]  }
 0x4b5   :  { %v1058_v61 = vadd.f32 %v6949_v4, %v1009_v59  ;;  %v1062_v62 = vsub.f32 %v1009_v59, %v6949_v4  ;;  %v5273_v7 = vpop.f32.mrb[21].mxu1  ;;  %v934_v10 = vsel %vm932_vm8, %v933_v58, %v931_v60  ;;  %v5622_v57 = vld [vmem:[#allocation25 + $0xb8] sm:$0xff]   ;;  %v5624_v59 = vld [vmem:[#allocation23 + $0x40] sm:$0xff]  }
 0x4b6   :  { %v1012_v11 = vpop.f32.mrb[22].mxu1  ;;  %v1083_v12 = vpack.c.bf16 %v934_v10, %v927_v9  ;;  %v5623_v58 = vld [vmem:[#allocation22 + $0xb8] sm:$0xff]   ;;  %v5625_v60 = vld [vmem:[#allocation23] sm:$0xff]   ;;  %v5627_v7 = vld [vmem:[#allocation23 + $0x8] sm:$0xff]  }
 0x4b7   :  { %v1060_v13 = vmin.f32 %v1042_v46, %v1058_v61  ;;  %v1064_v15 = vmax.f32 %v1046_v47, %v1062_v62  ;;  %v1059_v16 = vadd.f32 %v6951_v5, %v1012_v11  ;;  %v1063_v17 = vsub.f32 %v1012_v11, %v6951_v5  ;;  %v5274_v18 = vpop.f32.mrb[23].mxu1  ;;  %v5611_v46 = vld [vmem:[#allocation22 + $0xa0] sm:$0xff]   ;;  %v5612_v47 = vld [vmem:[#allocation25 + $0xe8] sm:$0xff]   ;;  %v5628_v9 = vld [vmem:[#allocation23 + $0x50] sm:$0xff]  }
 0x4b8   :  { %1856 = vmatprep.mubr.bf16.mxu0 %v1083_v12  ;;  %v5626_v61 = vld [vmem:[#allocation23 + $0x48] sm:$0xff]   ;;  %v5828_v62 = vld [vmem:[#allocation7] sm:$0xff]   ;;  %v5629_v10 = vld [vmem:[#allocation23 + $0x10] sm:$0xff]   ;;  %v7000_v18 = vpop.f32.mrb[8].mxu0 }
 0x4b9   :  { %v1061_v21 = vmin.f32 %v1043_v53, %v1059_v16  ;;  %v1065_v22 = vmax.f32 %v1047_v54, %v1063_v17  ;;  %v5618_v53 = vld [vmem:[#allocation25 + $0xb0] sm:$0xff]   ;;  %v5630_v11 = vld [vmem:[#allocation23 + $0x58] sm:$0xff]   ;;  %v5634_v16 = vld [vmem:[#allocation23 + $0x68] sm:$0xff]   ;;  %v5293_v20 = vpop.f32.mrb[9].mxu0 }
 0x4ba   :  { %v5619_v54 = vld [vmem:[#allocation22 + $0xb0] sm:$0xff]   ;;  %v5635_v17 = vld [vmem:[#allocation23 + $0x28] sm:$0xff]  }
 0x4bb   :  { %v6975_v27 = vpack.c.bf16 %v1061_v21, %v1060_v13  ;;  %v6977_v28 = vpack.c.bf16 %v1065_v22, %v1064_v15  ;;  %v5632_v13 = vld [vmem:[#allocation23 + $0x60] sm:$0xff]   ;;  %v7002_v21 = vpop.f32.mrb[10].mxu0 }
 0x4bc   :  { %v5633_v15 = vld [vmem:[#allocation23 + $0x20] sm:$0xff]   ;;  %v5294_v22 = vpop.f32.mrb[11].mxu0 }
 0x4bd   :  { %4522 = vmatprep.mubr.msk.bf16.mxu1 %vm6979_vm11, %v6975_v27  ;;  %4571 = vmatmul.mubr.msk.bf16.vlgmr.msra.gmra.mrb[12].mxu0 %vm6979_vm11, %v6977_v28 }
 0x4be   :  { %4954 = vmatpush3.bf16.msra.mxu0 %v5594_v23  ;;  %1389 = vmatmul.mubr.bf16.vlgmr.msra.gmra.mrb[24].mxu1 %v6959_v14  ;;  %v5637_v23 = vld [vmem:[#allocation23 + $0x30] sm:$0xff]  }
 0x4bf   :  { %4857 = vmatpush3.bf16.msra.mxu1 %v5595_v29  ;;  %2208 = vmatprep.mubr.bf16.mxu0 %v1083_v12  ;;  %v5639_v29 = vld [vmem:[#allocation23 + $0x38] sm:$0xff]  }
 0x4c0   :  { %1429 = vmatprep.mubr.bf16.mxu1 %v1083_v12  ;;  %4955 = vmatprep.subr.bf16.mxu0 %v5596_v31  ;;  %v5631_v12 = vld [vmem:[#allocation23 + $0x18] sm:$0xff]   ;;  %v5640_v31 = vld [vmem:[#allocation25 + $0x40] sm:$0xff]  }
 0x4c1   :  { %4858 = vmatprep.subr.bf16.mxu1 %v5597_v32  ;;  %v5641_v32 = vld [vmem:[#allocation25] sm:$0xff]  }
 0x4c2   :  { %4956 = vmatpush3.bf16.msra.mxu0 %v5598_v33  ;;  %v5642_v33 = vld [vmem:[#allocation25 + $0x48] sm:$0xff]  }
 0x4c3   :  { %4859 = vmatpush3.bf16.msra.mxu1 %v5599_v34  ;;  %4957 = vmatprep.subr.bf16.mxu0 %v5600_v36  ;;  %v5643_v34 = vld [vmem:[#allocation25 + $0x8] sm:$0xff]   ;;  %v5644_v36 = vld [vmem:[#allocation25 + $0x50] sm:$0xff]  }
 0x4c4   :  { %4860 = vmatprep.subr.bf16.mxu1 %v5601_v37  ;;  %v5645_v37 = vld [vmem:[#allocation25 + $0x10] sm:$0xff]  }
 0x4c6   :  { %4958 = vmatpush3.bf16.msra.mxu0 %v5602_v38  ;;  %v5646_v38 = vld [vmem:[#allocation25 + $0x58] sm:$0xff]  }
 0x4c7   :  { %4861 = vmatpush3.bf16.msra.mxu1 %v5603_v39  ;;  %4959 = vmatprep.subr.bf16.mxu0 %v5604_v40  ;;  %v5647_v39 = vld [vmem:[#allocation25 + $0x18] sm:$0xff]   ;;  %v5648_v40 = vld [vmem:[#allocation25 + $0x60] sm:$0xff]  }
 0x4c8   :  { %4862 = vmatprep.subr.bf16.mxu1 %v5605_v41  ;;  %v5649_v41 = vld [vmem:[#allocation25 + $0x20] sm:$0xff]  }
 0x4ca   :  { %4960 = vmatpush3.bf16.msra.mxu0 %v5606_v2  ;;  %v5650_v2 = vld [vmem:[#allocation25 + $0x68] sm:$0xff]  }
 0x4cb   :  { %4863 = vmatpush3.bf16.msra.mxu1 %v5607_v42  ;;  %4961 = vmatprep.subr.bf16.mxu0 %v5608_v43  ;;  %v5651_v42 = vld [vmem:[#allocation25 + $0x28] sm:$0xff]   ;;  %v5652_v43 = vld [vmem:[#allocation25 + $0x70] sm:$0xff]  }
 0x4cc   :  { %4864 = vmatprep.subr.bf16.mxu1 %v5609_v44  ;;  %v5654_v44 = vld [vmem:[#allocation25 + $0x78] sm:$0xff]  }
 0x4ce   :  { %4962 = vmatpush3.bf16.msra.mxu0 %v5610_v45  ;;  %v5655_v45 = vld [vmem:[#allocation25 + $0x38] sm:$0xff]  }
 0x4cf   :  { %4865 = vmatpush3.bf16.msra.mxu1 %v5611_v46  ;;  %4963 = vmatprep.subr.bf16.mxu0 %v5612_v47  ;;  %v5656_v46 = vld [vmem:[#allocation28] sm:$0xff]   ;;  %v5657_v47 = vld [vmem:[#allocation28 + $0x8] sm:$0xff]  }
 0x4d0   :  { %4866 = vmatprep.subr.bf16.mxu1 %v5613_v48  ;;  %v5658_v48 = vld [vmem:[#allocation28 + $0x10] sm:$0xff]  }
 0x4d2   :  { %4964 = vmatpush3.bf16.msra.mxu0 %v5614_v49  ;;  %v5659_v49 = vld [vmem:[#allocation28 + $0x18] sm:$0xff]  }
 0x4d3   :  { %4867 = vmatpush3.bf16.msra.mxu1 %v5615_v50  ;;  %4965 = vmatprep.subr.bf16.mxu0 %v5616_v51  ;;  %v5661_v50 = vld [vmem:[#allocation28 + $0x28] sm:$0xff]   ;;  %v5662_v51 = vld [vmem:[#allocation28 + $0x30] sm:$0xff]  }
 0x4d4   :  { %4868 = vmatprep.subr.bf16.mxu1 %v5617_v52  ;;  %v5663_v52 = vld [vmem:[#allocation28 + $0x38] sm:$0xff]  }
 0x4d6   :  { %4966 = vmatpush3.bf16.msra.mxu0 %v5618_v53 }
 0x4d7   :  { %4869 = vmatpush3.bf16.msra.mxu1 %v5619_v54  ;;  %4967 = vmatprep.subr.bf16.mxu0 %v5620_v55 }
 0x4d8   :  { %4870 = vmatprep.subr.bf16.mxu1 %v5621_v56 }
 0x4da   :  { %4968 = vmatpush3.bf16.msra.mxu0 %v5622_v57 }
 0x4db   :  { %4871 = vmatpush3.bf16.msra.mxu1 %v5623_v58 }
 0x4dc   :  { %4887 = vmatprep.subr.bf16.mxu1 %v5624_v59 }
 0x4dd   :  { %4609 = vmatmul.mubr.msk.bf16.vlgmr.msra.gmra.mrb[16].mxu0 %vm6979_vm11, %v6977_v28 }
 0x4de   :  { %4525 = vmatmul.mubr.msk.bf16.vlgmr.msra.gmra.mrb[28].mxu1 %vm6979_vm11, %v6977_v28  ;;  %5323 = vmatprep.mubr.msk.bf16.mxu0 %vm438_vm0, %v5828_v62  ;;  %v5638_v28 = vld [vmem:[#allocation23 + $0x78] sm:$0xff]  }
 0x4df   :  { %4888 = vmatpush3.bf16.msra.mxu1 %v5625_v60  ;;  %4568 = vmatprep.mubr.msk.bf16.mxu1 %vm6979_vm11, %v6975_v27 }
 0x4e0   :  { %4889 = vmatprep.subr.bf16.mxu1 %v5626_v61 }
 0x4e3   :  { %4890 = vmatpush3.bf16.msra.mxu1 %v5627_v7 }
 0x4e4   :  { %4891 = vmatprep.subr.bf16.mxu1 %v5628_v9 }
 0x4e7   :  { %4892 = vmatpush3.bf16.msra.mxu1 %v5629_v10 }
 0x4e8   :  { %4893 = vmatprep.subr.bf16.mxu1 %v5630_v11 }
 0x4eb   :  { %4894 = vmatpush3.bf16.msra.mxu1 %v5631_v12 }
 0x4ec   :  { %4895 = vmatprep.subr.bf16.mxu1 %v5632_v13 }
 0x4ef   :  { %4896 = vmatpush3.bf16.msra.mxu1 %v5633_v15 }
 0x4f0   :  { %4897 = vmatprep.subr.bf16.mxu1 %v5634_v16 }
 0x4f3   :  { %4898 = vmatpush3.bf16.msra.mxu1 %v5635_v17 }
 0x4f4   :  { %4899 = vmatprep.subr.bf16.mxu1 %v5636_v19 }
 0x4f7   :  { %4900 = vmatpush3.bf16.msra.mxu1 %v5637_v23 }
 0x4f8   :  { %4901 = vmatprep.subr.bf16.mxu1 %v5638_v28 }
 0x4fb   :  { %4902 = vmatpush3.bf16.msra.mxu1 %v5639_v29 }
 0x4fc   :  { %4931 = vmatprep.subr.bf16.mxu1 %v5640_v31 }
 0x4fe   :  { %1816 = vmatmul.mubr.bf16.vlgmr.msra.gmra.mrb[32].mxu1 %v6959_v14 }
 0x4ff   :  { %4932 = vmatpush3.bf16.msra.mxu1 %v5641_v32  ;;  %4606 = vmatprep.mubr.msk.bf16.mxu1 %vm6979_vm11, %v6975_v27  ;;  %v5653_v27 = vld [vmem:[#allocation25 + $0x30] sm:$0xff]  }
 0x500   :  { %4933 = vmatprep.subr.bf16.mxu1 %v5642_v33 }
 0x503   :  { %4934 = vmatpush3.bf16.msra.mxu1 %v5643_v34 }
 0x504   :  { %4935 = vmatprep.subr.bf16.mxu1 %v5644_v36 }
 0x507   :  { %4936 = vmatpush3.bf16.msra.mxu1 %v5645_v37 }
 0x508   :  { %4937 = vmatprep.subr.bf16.mxu1 %v5646_v38 }
 0x50b   :  { %4938 = vmatpush3.bf16.msra.mxu1 %v5647_v39 }
 0x50c   :  { %4939 = vmatprep.subr.bf16.mxu1 %v5648_v40 }
 0x50f   :  { %4940 = vmatpush3.bf16.msra.mxu1 %v5649_v41 }
 0x510   :  { %4941 = vmatprep.subr.bf16.mxu1 %v5650_v2  ;;  %v7021_v2 = vpop.permute.xlu0 %1867 }
 0x513   :  { %4942 = vmatpush3.bf16.msra.mxu1 %v5651_v42 }
 0x514   :  { %4943 = vmatprep.subr.bf16.mxu1 %v5652_v43 }
 0x517   :  { %4944 = vmatpush3.bf16.msra.mxu1 %v5653_v27  ;;  %v7024_v27 = vpop.permute.xlu1 %1872 }
 0x518   :  { %4945 = vmatprep.subr.bf16.mxu1 %v5654_v44 }
 0x51b   :  { %4946 = vmatpush3.bf16.msra.mxu1 %v5655_v45 }
 0x51c   :  { %5295 = vmatprep.subr.bf16.mxu1 %v6416_v35 }
 0x51e   :  { %2168 = vmatmul.mubr.bf16.vlgmr.msra.gmra.mrb[36].mxu1 %v6959_v14  ;;  %v5660_v14 = vld [vmem:[#allocation28 + $0x20] sm:$0xff]  }
 0x51f   :  { %5311 = vmatprep.mubr.msk.bf16.mxu1 %vm6417_vm1, %v6416_v35  ;;  %5296 = vmatpush3.bf16.msra.mxu1 %v5656_v46 }
 0x520   :  { %5297 = vmatprep.subr.bf16.mxu1 %v6416_v35 }
 0x523   :  { %5298 = vmatpush3.bf16.msra.mxu1 %v5657_v47 }
 0x524   :  { %5299 = vmatprep.subr.bf16.mxu1 %v6416_v35 }
 0x527   :  { %5300 = vmatpush3.bf16.msra.mxu1 %v5658_v48 }
 0x528   :  { %5301 = vmatprep.subr.bf16.mxu1 %v6416_v35 }
 0x52b   :  { %5302 = vmatpush3.bf16.msra.mxu1 %v5659_v49 }
 0x52c   :  { %5303 = vmatprep.subr.bf16.mxu1 %v6416_v35 }
 0x52f   :  { %5304 = vmatpush3.bf16.msra.mxu1 %v5660_v14 }
 0x530   :  { %5305 = vmatprep.subr.bf16.mxu1 %v6416_v35 }
 0x533   :  { %5306 = vmatpush3.bf16.msra.mxu1 %v5661_v50 }
 0x534   :  { %5307 = vmatprep.subr.bf16.mxu1 %v6416_v35 }
 0x537   :  { %5308 = vmatpush3.bf16.msra.mxu1 %v5662_v51  ;;  %v7027_v51 = vpop.permute.xlu0 %2219 }
 0x538   :  { %5309 = vmatprep.subr.bf16.mxu1 %v6416_v35 }
 0x53b   :  { %5310 = vmatpush3.bf16.msra.mxu1 %v5663_v52 }
 0x590   :  { %v4925_v53 = vpop.f32.mrb[12].mxu0 }
 0x591   :  { %v4850_v54 = vpop.f32.mrb[24].mxu1  ;;  %v4926_v55 = vpop.f32.mrb[13].mxu0 }
 0x592   :  { %v4927_v56 = vadd.f32 %v4926_v55, %v4925_v53  ;;  %v4851_v57 = vpop.f32.mrb[25].mxu1  ;;  %v4928_v58 = vpop.f32.mrb[14].mxu0 }
 0x593   :  { %v4852_v59 = vadd.f32 %v4851_v57, %v4850_v54  ;;  %v4853_v60 = vpop.f32.mrb[26].mxu1  ;;  %v4929_v61 = vpop.f32.mrb[15].mxu0  ;;  %v4610_v57 = vld [vmem:[#allocation26] ss:$0 sm:$0xff] }
 0x594   :  { %v4930_v62 = vadd.f32 %v4929_v61, %v4928_v58  ;;  %v4854_v7 = vpop.f32.mrb[27].mxu1  ;;  %v7030_v54 = vpop.permute.xlu1 %2224 }
 0x595   :  { %v4855_v9 = vadd.f32 %v4854_v7, %v4853_v60  ;;  %v4611_v7 = vld [vmem:[#allocation29] ss:$0 sm:$0xff] }
 0x5b0   :  { %v4969_v10 = vpop.f32.mrb[16].mxu0 }
 0x5b1   :  { %v4872_v11 = vpop.f32.mrb[28].mxu1  ;;  %v4970_v12 = vpop.f32.mrb[17].mxu0 }
 0x5b2   :  { %v4971_v13 = vadd.f32 %v4970_v12, %v4969_v10  ;;  %v4873_v15 = vpop.f32.mrb[29].mxu1  ;;  %v4972_v16 = vpop.f32.mrb[18].mxu0 }
 0x5b3   :  { %v4874_v17 = vadd.f32 %v4873_v15, %v4872_v11  ;;  %v4875_v19 = vpop.f32.mrb[30].mxu1  ;;  %v4973_v20 = vpop.f32.mrb[19].mxu0 }
 0x5b4   :  { %v4974_v22 = vadd.f32 %v4973_v20, %v4972_v16  ;;  %v4876_v23 = vpop.f32.mrb[31].mxu1  ;;  %v5664_v20 = vld [vmem:[#allocation17 + $0x40] sm:$0xff]  }
 0x5b5   :  { %v1432_v28 = vadd.f32 %v4874_v17, %v4852_v59  ;;  %v4877_v29 = vadd.f32 %v4876_v23, %v4875_v19  ;;  %v5830_v23 = vld [vmem:[#allocation5 + $0x8] sm:$0xff]  }
 0x5b7   :  { %v1521_v31 = vadd.f32 %v7000_v18, %v1432_v28  ;;  %v1435_v32 = vadd.f32 %v4877_v29, %v4855_v9  ;;  %v5831_v28 = vld [vmem:[#allocation7 + $0x8] sm:$0xff]   ;;  %v5666_v29 = vld [vmem:[#allocation17 + $0x50] sm:$0xff]  }
 0x5b9   :  { %v1524_v33 = vadd.f32 %v7002_v21, %v1435_v32  ;;  %v5668_v32 = vld [vmem:[#allocation17 + $0x60] sm:$0xff]  }
 0x5d1   :  { %v4903_v34 = vpop.f32.mrb[32].mxu1 }
 0x5d2   :  { %v4904_v36 = vpop.f32.mrb[33].mxu1 }
 0x5d3   :  { %v4905_v37 = vadd.f32 %v4904_v36, %v4903_v34  ;;  %v4906_v38 = vpop.f32.mrb[34].mxu1  ;;  %v5670_v34 = vld [vmem:[#allocation17 + $0x70] sm:$0xff]   ;;  %v5671_v36 = vld [vmem:[#allocation17 + $0x78] sm:$0xff]  }
 0x5d4   :  { %v4907_v39 = vpop.f32.mrb[35].mxu1 }
 0x5d5   :  { %v1859_v40 = vadd.f32 %v4927_v56, %v4905_v37  ;;  %v4908_v41 = vadd.f32 %v4907_v39, %v4906_v38  ;;  %v5672_v37 = vld [vmem:[#allocation16 + $0x40] sm:$0xff]  }
 0x5d7   :  { %v1875_v42 = vmul.f32 %v7021_v2, %v1859_v40  ;;  %v1862_v43 = vadd.f32 %v4930_v62, %v4908_v41  ;;  %v5829_v62 = vld [vmem:[#allocation5] sm:$0xff]  }
 0x5d9   :  { %v1877_v44 = vadd.f32 %v1875_v42, %v1521_v31  ;;  %v1876_v18 = vmul.f32 %v7024_v27, %v1862_v43  ;;  %v5667_v31 = vld [vmem:[#allocation17 + $0x58] sm:$0xff]  }
 0x5db   :  { %v1878_v45 = vadd.f32 %v1876_v18, %v1524_v33  ;;  %v5669_v33 = vld [vmem:[#allocation17 + $0x68] sm:$0xff]  }
 0x5f1   :  { %v4947_v46 = vpop.f32.mrb[36].mxu1 }
 0x5f2   :  { %v4948_v21 = vpop.f32.mrb[37].mxu1 }
 0x5f3   :  { %v4949_v47 = vadd.f32 %v4948_v21, %v4947_v46  ;;  %v4950_v48 = vpop.f32.mrb[38].mxu1 }
 0x5f4   :  { %v4951_v49 = vpop.f32.mrb[39].mxu1 }
 0x5f5   :  { %v2211_v14 = vadd.f32 %v4971_v13, %v4949_v47  ;;  %v4952_v50 = vadd.f32 %v4951_v49, %v4950_v48  ;;  %v5673_v48 = vld [vmem:[#allocation16 + $0x48] sm:$0xff]   ;;  %v5674_v49 = vld [vmem:[#allocation16 + $0x50] sm:$0xff]  }
 0x5f7   :  { %v2227_v52 = vmul.f32 %v7027_v51, %v2211_v14  ;;  %v2214_v53 = vadd.f32 %v4974_v22, %v4952_v50  ;;  %v5665_v22 = vld [vmem:[#allocation17 + $0x48] sm:$0xff]   ;;  %v5675_v14 = vld [vmem:[#allocation16 + $0x58] sm:$0xff]   ;;  %v5676_v50 = vld [vmem:[#allocation16 + $0x60] sm:$0xff]  }
 0x5f9   :  { %v2229_v55 = vadd.f32 %v2227_v52, %v1877_v44  ;;  %v2228_v56 = vmul.f32 %v7030_v54, %v2214_v53  ;;  %v5677_v52 = vld [vmem:[#allocation16 + $0x68] sm:$0xff]   ;;  %v5678_v53 = vld [vmem:[#allocation16 + $0x70] sm:$0xff]  }
 0x5fb   :  { %v2230_v58 = vadd.f32 %v2228_v56, %v1878_v45  ;;  %v2238_v59 = vadd.f32 %v4610_v57, %v2229_v55  ;;  %v5679_v55 = vld [vmem:[#allocation16 + $0x78] sm:$0xff]   ;;  %v4640_v56 = vld [vmem:[#allocation19 + $0x1] ss:$0 sm:$0xff] }
 0x5fd   :  { %v2239_v60 = vadd.f32 %v4610_v57, %v2230_v58 }
 0x5ff   :  { %v2240_v61 = vpack.c.bf16 %v2239_v60, %v2238_v59 }
 0x601   :  { %5312 = vmatmul.mubr.bf16.vlgmr.msra.gmra.mrb[40].mxu1 %v2240_v61 }
 0x602   :  { %5317 = vmatprep.mubr.msk.bf16.mxu1 %vm438_vm0, %v5829_v62 }
 0x6d4   :  { %v2346_v9 = vpop.f32.mrb[40].mxu1 }
 0x6d5   :  { %v2347_v10 = vadd.f32 %v4611_v7, %v2346_v9  ;;  %v5313_v11 = vpop.f32.mrb[41].mxu1 }
 0x6d6   :  { %v2349_v12 = vpop.f32.mrb[42].mxu1 }
 0x6d7   :  { %v2350_v13 = vadd.f32 %v4611_v7, %v2349_v12  ;;  %v5314_v15 = vpop.f32.mrb[43].mxu1  ;;  %v2353_v16 = vmax.f32 %v2347_v10, 0.0 }
 0x6d9   :  { %v2354_v17 = vmax.f32 %v2350_v13, 0.0 }
 0x6db   :  { %v7034_v19 = vpack.c.bf16 %v2354_v17, %v2353_v16 }
 0x6dd   :  { %5315 = vmatprep.subr.bf16.mxu1 %v7034_v19  ;;  %5321 = vmatprep.subr.bf16.mxu0 %v7034_v19 }
 0x6de   :  { %5316 = vmatpush3.bf16.msra.mxu1 %v7034_v19  ;;  %5322 = vmatpush3.bf16.msra.mxu0 %v7034_v19 }
 0x6df   :  { %5327 = vmatprep.subr.bf16.mxu0 %v5664_v20  ;;  %5367 = vmatprep.subr.bf16.mxu1 %v6416_v35 }
 0x6e1   :  { %5318 = vmatmul.mubr.msk.bf16.vlgmr.msra.gmra.mrb[44].mxu1 %vm438_vm0, %v5830_v23  ;;  %5324 = vmatmul.mubr.msk.bf16.vlgmr.msra.gmra.mrb[20].mxu0 %vm438_vm0, %v5831_v28  ;;  %v5680_v23 = vld [vmem:[#allocation22 + $0x1c0] sm:$0xff]  }
 0x6e2   :  { %5328 = vmatpush3.bf16.msra.mxu0 %v5664_v20  ;;  %5371 = vmatprep.mubr.msk.bf16.mxu1 %vm6417_vm1, %v6416_v35  ;;  %v5681_v28 = vld [vmem:[#allocation22 + $0x140] sm:$0xff]  }
 0x6e3   :  { %5329 = vmatprep.subr.bf16.mxu0 %v5665_v22 }
 0x6e6   :  { %5330 = vmatpush3.bf16.msra.mxu0 %v5665_v22  ;;  %v5832_v22 = vld [vmem:[#allocation8] sm:$0xff]  }
 0x6e7   :  { %5331 = vmatprep.subr.bf16.mxu0 %v5666_v29 }
 0x6ea   :  { %5332 = vmatpush3.bf16.msra.mxu0 %v5666_v29  ;;  %v5682_v29 = vld [vmem:[#allocation22 + $0x180] sm:$0xff]  }
 0x6eb   :  { %5333 = vmatprep.subr.bf16.mxu0 %v5667_v31 }
 0x6ee   :  { %5334 = vmatpush3.bf16.msra.mxu0 %v5667_v31  ;;  %v5683_v31 = vld [vmem:[#allocation22 + $0x100] sm:$0xff]  }
 0x6ef   :  { %5335 = vmatprep.subr.bf16.mxu0 %v5668_v32 }
 0x6f2   :  { %5336 = vmatpush3.bf16.msra.mxu0 %v5668_v32  ;;  %v5685_v32 = vld [vmem:[#allocation22 + $0x148] sm:$0xff]  }
 0x6f3   :  { %5337 = vmatprep.subr.bf16.mxu0 %v5669_v33 }
 0x6f6   :  { %5338 = vmatpush3.bf16.msra.mxu0 %v5669_v33  ;;  %v5686_v33 = vld [vmem:[#allocation22 + $0x188] sm:$0xff]  }
 0x6f7   :  { %5339 = vmatprep.subr.bf16.mxu0 %v5670_v34 }
 0x6fa   :  { %5340 = vmatpush3.bf16.msra.mxu0 %v5670_v34  ;;  %v5687_v34 = vld [vmem:[#allocation22 + $0x108] sm:$0xff]  }
 0x6fb   :  { %5341 = vmatprep.subr.bf16.mxu0 %v5671_v36 }
 0x6fe   :  { %5342 = vmatpush3.bf16.msra.mxu0 %v5671_v36  ;;  %v5689_v36 = vld [vmem:[#allocation22 + $0x150] sm:$0xff]  }
 0x6ff   :  { %5347 = vmatprep.subr.bf16.mxu0 %v5672_v37 }
 0x7b4   :  { %v5319_v38 = vpop.f32.mrb[44].mxu1  ;;  %v5325_v39 = vpop.f32.mrb[20].mxu0 }
 0x7b5   :  { %v2390_v40 = vpop.f32.mrb[45].mxu1  ;;  %v2439_v41 = vpop.f32.mrb[21].mxu0 }
 0x7b6   :  { %v5320_v42 = vpop.f32.mrb[46].mxu1  ;;  %v5326_v43 = vpop.f32.mrb[22].mxu0 }
 0x7b7   :  { %v2474_v44 = vpack.c.bf16 %v5320_v42, %v5319_v38  ;;  %v2393_v18 = vpop.f32.mrb[47].mxu1  ;;  %v2455_v45 = vpack.c.bf16 %v5326_v43, %v5325_v39  ;;  %v2442_v46 = vpop.f32.mrb[23].mxu0  ;;  %v5692_v38 = vld [vmem:[#allocation22 + $0x1d8] sm:$0xff]   ;;  %v5696_v42 = vld [vmem:[#allocation22 + $0x1e0] sm:$0xff]  }
 0x7b8   :  { %v2473_v21 = vpack.c.bf16 %v2393_v18, %v2390_v40  ;;  %v2454_v47 = vpack.c.bf16 %v2442_v46, %v2439_v41  ;;  %v5693_v39 = vld [vmem:[#allocation22 + $0x158] sm:$0xff]   ;;  %v5697_v43 = vld [vmem:[#allocation22 + $0x160] sm:$0xff]   ;;  %v5701_v46 = vld [vmem:[#allocation22 + $0x168] sm:$0xff]  }
 0x7b9   :  { %v5694_v40 = vld [vmem:[#allocation22 + $0x198] sm:$0xff]   ;;  %v5699_v18 = vld [vmem:[#allocation22 + $0x120] sm:$0xff]  }
 0x7ba   :  { %5343 = vmatprep.mubr.bf16.mxu0 %v2473_v21  ;;  %v5695_v41 = vld [vmem:[#allocation22 + $0x118] sm:$0xff]   ;;  %v5702_v21 = vld [vmem:[#allocation22 + $0x1a8] sm:$0xff]  }
 0x7bb   :  { %5344 = vmatmul.mubr.bf16.vlgmr.msra.gmra.mrb[24].mxu0 %v2474_v44  ;;  %v5698_v44 = vld [vmem:[#allocation22 + $0x1a0] sm:$0xff]  }
 0x7bc   :  { %5348 = vmatpush3.bf16.msra.mxu0 %v5672_v37  ;;  %5363 = vmatprep.mubr.bf16.mxu0 %v2454_v47  ;;  %v5690_v37 = vld [vmem:[#allocation22 + $0x190] sm:$0xff]   ;;  %v5703_v47 = vld [vmem:[#allocation22 + $0x128] sm:$0xff]  }
 0x7bd   :  { %5349 = vmatprep.subr.bf16.mxu0 %v5673_v48 }
 0x7c0   :  { %5350 = vmatpush3.bf16.msra.mxu0 %v5673_v48  ;;  %v5704_v48 = vld [vmem:[#allocation22 + $0x1f0] sm:$0xff]  }
 0x7c1   :  { %5351 = vmatprep.subr.bf16.mxu0 %v5674_v49 }
 0x7c4   :  { %5352 = vmatpush3.bf16.msra.mxu0 %v5674_v49  ;;  %v5705_v49 = vld [vmem:[#allocation22 + $0x170] sm:$0xff]  }
 0x7c5   :  { %5353 = vmatprep.subr.bf16.mxu0 %v5675_v14 }
 0x7c8   :  { %5354 = vmatpush3.bf16.msra.mxu0 %v5675_v14  ;;  %v5706_v14 = vld [vmem:[#allocation22 + $0x1b0] sm:$0xff]  }
 0x7c9   :  { %5355 = vmatprep.subr.bf16.mxu0 %v5676_v50 }
 0x7cc   :  { %5356 = vmatpush3.bf16.msra.mxu0 %v5676_v50  ;;  %v5707_v50 = vld [vmem:[#allocation22 + $0x130] sm:$0xff]  }
 0x7cd   :  { %5357 = vmatprep.subr.bf16.mxu0 %v5677_v52 }
 0x7d0   :  { %5358 = vmatpush3.bf16.msra.mxu0 %v5677_v52  ;;  %v5708_v52 = vld [vmem:[#allocation22 + $0x1f8] sm:$0xff]  }
 0x7d1   :  { %5359 = vmatprep.subr.bf16.mxu0 %v5678_v53 }
 0x7d4   :  { %5360 = vmatpush3.bf16.msra.mxu0 %v5678_v53  ;;  %v5709_v53 = vld [vmem:[#allocation22 + $0x178] sm:$0xff]  }
 0x7d5   :  { %5361 = vmatprep.subr.bf16.mxu0 %v5679_v55 }
 0x7d8   :  { %5362 = vmatpush3.bf16.msra.mxu0 %v5679_v55  ;;  %v5710_v55 = vld [vmem:[#allocation22 + $0x1b8] sm:$0xff]  }
 0x7d9   :  { %5043 = vmatprep.subr.bf16.mxu0 %v5680_v23 }
 0x7db   :  { %5364 = vmatmul.mubr.bf16.vlgmr.msra.gmra.mrb[24].mxu0 %v2455_v45  ;;  %v5700_v45 = vld [vmem:[#allocation22 + $0x1e8] sm:$0xff]  }
 0x7dc   :  { %5044 = vmatpush3.bf16.msra.mxu0 %v5682_v29 }
 0x8ae   :  { %v5365_v57 = vpop.f32.mrb[24].mxu0 }
 0x8af   :  { %v2696_v58 = vadd.f32 %v5365_v57, %v4640_v56  ;;  %v2671_v59 = vpop.f32.mrb[25].mxu0  ;;  %v5712_v57 = vld [vmem:[#allocation23 + $0x140] sm:$0xff]  }
 0x8b0   :  { %v2694_v60 = vadd.f32 %v4640_v56, %v2671_v59  ;;  %v5366_v61 = vpop.f32.mrb[26].mxu0 }
 0x8b1   :  { %v2697_v62 = vadd.f32 %v5366_v61, %v4640_v56  ;;  %v2674_v7 = vpop.f32.mrb[27].mxu0  ;;  %v2702_v10 = vmul.f32 %v2696_v58, %v2696_v58 }
 0x8b2   :  { %v2695_v9 = vadd.f32 %v4640_v56, %v2674_v7  ;;  %v2700_v13 = vmul.f32 %v2694_v60, %v2694_v60  ;;  %v5711_v56 = vld [vmem:[#allocation22 + $0x138] sm:$0xff]  }
 0x8b3   :  { %v2699_v11 = vpack.c.bf16 %v2697_v62, %v2696_v58  ;;  %v2703_v12 = vmul.f32 %v2697_v62, %v2697_v62 }
 0x8b4   :  { %v2698_v15 = vpack.c.bf16 %v2695_v9, %v2694_v60  ;;  %v2701_v16 = vmul.f32 %v2695_v9, %v2695_v9 }
 0x8b5   :  { %v2705_v17 = vpack.c.bf16 %v2703_v12, %v2702_v10 }
 0x8b6   :  { %v2704_v20 = vpack.c.bf16 %v2701_v16, %v2700_v13  ;;  %5368 = vmatpush3.bf16.msra.mxu1 %v2698_v15 }
 0x8b7   :  { %5369 = vmatprep.subr.bf16.mxu1 %v6416_v35 }
 0x8ba   :  { %5370 = vmatpush3.bf16.msra.mxu1 %v2699_v11 }
 0x8bb   :  { %5375 = vmatprep.subr.bf16.mxu1 %v6416_v35 }
 0x8bd   :  { %5372 = vmatmul.mubr.msk.bf16.vlgmr.msra.gmra.mrb[48].mxu1 %vm813_vm4, %v5832_v22 }
 0x8be   :  { %5376 = vmatpush3.bf16.msra.mxu1 %v2704_v20  ;;  %5379 = vmatprep.mubr.msk.bf16.mxu1 %vm6417_vm1, %v6416_v35 }
 0x8bf   :  { %5377 = vmatprep.subr.bf16.mxu1 %v6416_v35 }
 0x8c2   :  { %5378 = vmatpush3.bf16.msra.mxu1 %v2705_v17 }
 0x8c3   :  { %5383 = vmatprep.subr.bf16.mxu1 %v6416_v35 }
 0x8c5   :  { %5380 = vmatmul.mubr.msk.bf16.vlgmr.msra.gmra.mrb[52].mxu1 %vm813_vm4, %v5832_v22 }
 0x8c6   :  { %5384 = vmatpush3.bf16.msra.mxu1 %v2698_v15  ;;  %5387 = vmatprep.mubr.msk.bf16.mxu1 %vm6417_vm1, %v6416_v35 }
 0x8c7   :  { %5385 = vmatprep.subr.bf16.mxu1 %v6416_v35 }
 0x8ca   :  { %5386 = vmatpush3.bf16.msra.mxu1 %v2699_v11 }
 0x8cb   :  { %5021 = vmatprep.subr.bf16.mxu1 %v5681_v28 }
 0x8cd   :  { %5388 = vmatmul.mubr.msk.bf16.vlgmr.msra.gmra.mrb[56].mxu1 %vm813_vm4, %v6923_v24  ;;  %v5684_v24 = vld [vmem:[#allocation22 + $0x1c8] sm:$0xff]  }
 0x8ce   :  { %5391 = vmatprep.mubr.msk.bf16.mxu1 %vm6417_vm1, %v6416_v35  ;;  %5022 = vmatpush3.bf16.msra.mxu1 %v5683_v31 }
 0x8cf   :  { %5045 = vmatprep.subr.bf16.mxu0 %v5684_v24  ;;  %5023 = vmatprep.subr.bf16.mxu1 %v5685_v32 }
 0x8d0   :  { %5046 = vmatpush3.bf16.msra.mxu0 %v5686_v33 }
 0x8d2   :  { %5024 = vmatpush3.bf16.msra.mxu1 %v5687_v34 }
 0x8d3   :  { %5025 = vmatprep.subr.bf16.mxu1 %v5689_v36 }
 0x8d5   :  { %5392 = vmatmul.mubr.msk.bf16.gmra.mrb[60].mxu1 %vm813_vm4, %v6929_v25  ;;  %v5688_v25 = vld [vmem:[#allocation22 + $0x1d0] sm:$0xff]  }
 0x8d6   :  { %5395 = vmatprep.mubr.msk.bf16.mxu1 %vm6417_vm1, %v6416_v35  ;;  %5047 = vmatprep.subr.bf16.mxu0 %v5688_v25 }
 0x8d7   :  { %5048 = vmatpush3.bf16.msra.mxu0 %v5690_v37 }
 0x8d8   :  { %5049 = vmatprep.subr.bf16.mxu0 %v5692_v38 }
 0x8db   :  { %5050 = vmatpush3.bf16.msra.mxu0 %v5694_v40 }
 0x8dc   :  { %5051 = vmatprep.subr.bf16.mxu0 %v5696_v42 }
 0x8dd   :  { %5396 = vmatmul.mubr.msk.bf16.gmra.mrb[64].mxu1 %vm813_vm4, %v6935_v26  ;;  %v5691_v26 = vld [vmem:[#allocation22 + $0x110] sm:$0xff]  }
 0x8de   :  { %5026 = vmatpush3.bf16.msra.mxu1 %v5691_v26 }
 0x8df   :  { %5027 = vmatprep.subr.bf16.mxu1 %v5693_v39  ;;  %5052 = vmatpush3.bf16.msra.mxu0 %v5698_v44 }
 0x8e0   :  { %5053 = vmatprep.subr.bf16.mxu0 %v5700_v45 }
 0x8e2   :  { %5028 = vmatpush3.bf16.msra.mxu1 %v5695_v41 }
 0x8e3   :  { %5029 = vmatprep.subr.bf16.mxu1 %v5697_v43  ;;  %5054 = vmatpush3.bf16.msra.mxu0 %v5702_v21 }
 0x8e4   :  { %5055 = vmatprep.subr.bf16.mxu0 %v5704_v48 }
 0x8e6   :  { %5030 = vmatpush3.bf16.msra.mxu1 %v5699_v18 }
 0x8e7   :  { %5031 = vmatprep.subr.bf16.mxu1 %v5701_v46  ;;  %5056 = vmatpush3.bf16.msra.mxu0 %v5706_v14 }
 0x8e8   :  { %5057 = vmatprep.subr.bf16.mxu0 %v5708_v52 }
 0x8ea   :  { %5032 = vmatpush3.bf16.msra.mxu1 %v5703_v47 }
 0x8eb   :  { %5033 = vmatprep.subr.bf16.mxu1 %v5705_v49  ;;  %5058 = vmatpush3.bf16.msra.mxu0 %v5710_v55 }
 0x8ec   :  { %5074 = vmatprep.subr.bf16.mxu0 %v5712_v57 }
 0x8ee   :  { %5034 = vmatpush3.bf16.msra.mxu1 %v5707_v50 }
 0x8ef   :  { %5035 = vmatprep.subr.bf16.mxu1 %v5709_v53 }
 0x8f2   :  { %5036 = vmatpush3.bf16.msra.mxu1 %v5711_v56 }
 0x8f3   :  { %5399 = vmatprep.subr.bf16.mxu1 %v6416_v35 }
 0x990   :  { %v2740_v58 = vpop.f32.mrb[48].mxu1 }
 0x991   :  { %v5373_v59 = vpop.f32.mrb[49].mxu1  ;;  %v2788_v61 = vmul.f32 %v2740_v58, %v6953_v6 }
 0x992   :  { %v2743_v60 = vpop.f32.mrb[50].mxu1 }
 0x993   :  { %v2789_v62 = vmul.f32 %v2743_v60, %v6955_v8  ;;  %v5374_v7 = vpop.f32.mrb[51].mxu1  ;;  %v2792_v11 = vmul.f32 %v2788_v61, %v2788_v61 }
 0x995   :  { %v7069_v9 = vpack.c.bf16 %v2789_v62, %v2788_v61  ;;  %v2793_v16 = vmul.f32 %v2789_v62, %v2789_v62 }
 0x998   :  { %v2781_v10 = vpop.f32.mrb[52].mxu1 }
 0x999   :  { %v2790_v12 = vmul.f32 %v2781_v10, %v6953_v6  ;;  %v5381_v13 = vpop.f32.mrb[53].mxu1 }
 0x99a   :  { %v2784_v15 = vpop.f32.mrb[54].mxu1  ;;  %v5713_v13 = vld [vmem:[#allocation23 + $0x100] sm:$0xff]  }
 0x99b   :  { %v2794_v17 = vsub.f32 %v2790_v12, %v2792_v11  ;;  %v2791_v20 = vmul.f32 %v2784_v15, %v6955_v8  ;;  %v5382_v22 = vpop.f32.mrb[55].mxu1 }
 0x99c   :  { %v5718_v22 = vld [vmem:[#allocation23 + $0x150] sm:$0xff]  }
 0x99d   :  { %v2796_v23 = vmax.f32 %v2794_v17, 0.0  ;;  %v2795_v28 = vsub.f32 %v2791_v20, %v2793_v16  ;;  %v5714_v16 = vld [vmem:[#allocation20 + $0x40] sm:$0xff]   ;;  %v5715_v17 = vld [vmem:[#allocation23 + $0x148] sm:$0xff]  }
 0x99e   :  { %v5717_v20 = vld [vmem:[#allocation20 + $0x48] sm:$0xff]  }
 0x99f   :  { %v2798_v29 = vadd.f32 1e-05, %v2796_v23  ;;  %v2797_v31 = vmax.f32 %v2795_v28, 0.0  ;;  %v5719_v23 = vld [vmem:[#allocation23 + $0x110] sm:$0xff]  }
 0x9a0   :  { %v2848_v24 = vpop.f32.mrb[56].mxu1  ;;  %v5720_v28 = vld [vmem:[#allocation20 + $0x50] sm:$0xff]  }
 0x9a1   :  { %5824 = vrsqrt.f32 %v2798_v29  ;;  %v2799_v32 = vadd.f32 1e-05, %v2797_v31  ;;  %v5389_v33 = vpop.f32.mrb[57].mxu1  ;;  %v2871_v6 = vadd.f32 %v2848_v24, %v6941_v63  ;;  %v2873_v37 = vsub.f32 %v2848_v24, %v6941_v63  ;;  %v5722_v31 = vld [vmem:[#allocation23 + $0x118] sm:$0xff]  }
 0x9a2   :  { %v2851_v34 = vpop.f32.mrb[58].mxu1  ;;  %vm2802_vm12 = vcmp.eq.f32.partialorder %v2798_v29, inf  ;;  %v2805_v14 = vand.u32 2147483648, %v2798_v29  ;;  %vm2804_vm14 = vcmp.eq.f32.partialorder %v2798_v29, 0.0  ;;  %v5723_v24 = vld [vmem:[#allocation20 + $0x58] sm:$0xff]   ;;  %v5725_v33 = vld [vmem:[#allocation23 + $0x120] sm:$0xff]  }
 0x9a3   :  { %5826 = vrsqrt.f32 %v2799_v32  ;;  %v5390_v25 = vpop.f32.mrb[59].mxu1  ;;  %v2872_v39 = vadd.f32 %v2851_v34, %v6945_v1  ;;  %v2874_v40 = vsub.f32 %v2851_v34, %v6945_v1  ;;  %vm2809_vm13 = vcmp.eq.f32.partialorder %v2799_v32, inf  ;;  %v5726_v34 = vld [vmem:[#allocation20 + $0x60] sm:$0xff]  }
 0x9a4   :  { %v2812_v50 = vand.u32 2147483648, %v2799_v32  ;;  %vm2811_vm15 = vcmp.eq.f32.partialorder %v2799_v32, 0.0  ;;  %v5727_v25 = vld [vmem:[#allocation23 + $0x168] sm:$0xff]  }
 0x9a8   :  { %v2856_v36 = vpop.f32.mrb[60].mxu1 }
 0x9a9   :  { %v2875_v26 = vadd.f32 %v2856_v36, %v6943_v0  ;;  %v2879_v8 = vsub.f32 %v2856_v36, %v6943_v0  ;;  %v5393_v38 = vpop.f32.mrb[61].mxu1  ;;  %v5728_v36 = vld [vmem:[#allocation23 + $0x128] sm:$0xff]  }
 0x9aa   :  { %v2859_v41 = vpop.f32.mrb[62].mxu1  ;;  %v5733_v38 = vld [vmem:[#allocation23 + $0x178] sm:$0xff]  }
 0x9ab   :  { %v5825_v42 = vpop.eup %5824  ;;  %v2877_v43 = vmin.f32 %v2871_v6, %v2875_v26  ;;  %v2881_v44 = vmax.f32 %v2873_v37, %v2879_v8  ;;  %v2876_v18 = vadd.f32 %v2859_v41, %v6947_v3  ;;  %v2880_v45 = vsub.f32 %v2859_v41, %v6947_v3  ;;  %v5394_v46 = vpop.f32.mrb[63].mxu1  ;;  %v5729_v6 = vld [vmem:[#allocation20 + $0x68] sm:$0xff]   ;;  %v5730_v37 = vld [vmem:[#allocation23 + $0x170] sm:$0xff]   ;;  %v5736_v41 = vld [vmem:[#allocation25 + $0x140] sm:$0xff]  }
 0x9ac   :  { %v2801_v21 = vmul.f32 %v5825_v42, %v2798_v29  ;;  %v5731_v26 = vld [vmem:[#allocation23 + $0x130] sm:$0xff]   ;;  %v5737_v42 = vld [vmem:[#allocation23 + $0x1c0] sm:$0xff]   ;;  %v5742_v46 = vld [vmem:[#allocation25 + $0x108] sm:$0xff]  }
 0x9ad   :  { %v5827_v63 = vpop.eup %5826  ;;  %v2878_v47 = vmin.f32 %v2872_v39, %v2876_v18  ;;  %v2882_v48 = vmax.f32 %v2874_v40, %v2880_v45  ;;  %v5732_v8 = vld [vmem:[#allocation20 + $0x70] sm:$0xff]   ;;  %v5734_v39 = vld [vmem:[#allocation23 + $0x138] sm:$0xff]   ;;  %v5740_v18 = vld [vmem:[#allocation25 + $0x148] sm:$0xff]  }
 0x9ae   :  { %v2803_v0 = vsel %vm2802_vm12, %v2798_v29, %v2801_v21  ;;  %v2808_v49 = vmul.f32 %v5827_v63, %v2799_v32  ;;  %v5721_v29 = vld [vmem:[#allocation23 + $0x158] sm:$0xff]   ;;  %v5741_v45 = vld [vmem:[#allocation23 + $0x1c8] sm:$0xff]   ;;  %v5744_v63 = vld [vmem:[#allocation25 + $0x150] sm:$0xff]  }
 0x9af   :  { %v2806_v56 = vsel %vm2804_vm14, %v2805_v14, %v2803_v0  ;;  %v5735_v40 = vld [vmem:[#allocation20 + $0x78] sm:$0xff]   ;;  %v5743_v21 = vld [vmem:[#allocation23 + $0x188] sm:$0xff]   ;;  %v5747_v0 = vld [vmem:[#allocation23 + $0x190] sm:$0xff]  }
 0x9b0   :  { %v2864_v1 = vpop.f32.mrb[64].mxu1  ;;  %v2810_v52 = vsel %vm2809_vm13, %v2799_v32, %v2808_v49  ;;  %v5724_v32 = vld [vmem:[#allocation23 + $0x160] sm:$0xff]   ;;  %v5749_v49 = vld [vmem:[#allocation23 + $0x1d8] sm:$0xff]  }
 0x9b1   :  { %v2883_v53 = vadd.f32 %v2864_v1, %v6949_v4  ;;  %v2887_v55 = vsub.f32 %v2864_v1, %v6949_v4  ;;  %v5397_v3 = vpop.f32.mrb[65].mxu1  ;;  %v2813_v57 = vsel %vm2811_vm15, %v2812_v50, %v2810_v52  ;;  %v5750_v14 = vld [vmem:[#allocation25 + $0x118] sm:$0xff]   ;;  %v5752_v1 = vld [vmem:[#allocation25 + $0x160] sm:$0xff]  }
 0x9b2   :  { %v2867_v58 = vpop.f32.mrb[66].mxu1  ;;  %v7083_v59 = vpack.c.bf16 %v2813_v57, %v2806_v56  ;;  %v5751_v50 = vld [vmem:[#allocation23 + $0x198] sm:$0xff]   ;;  %v5753_v52 = vld [vmem:[#allocation23 + $0x1e0] sm:$0xff]   ;;  %v5756_v3 = vld [vmem:[#allocation25 + $0x168] sm:$0xff]  }
 0x9b3   :  { %v2885_v60 = vmin.f32 %v2877_v43, %v2883_v53  ;;  %v2889_v61 = vmax.f32 %v2881_v44, %v2887_v55  ;;  %v2884_v62 = vadd.f32 %v2867_v58, %v6951_v5  ;;  %v2888_v7 = vsub.f32 %v2867_v58, %v6951_v5  ;;  %v5398_v10 = vpop.f32.mrb[67].mxu1  ;;  %v5716_v5 = vld [vmem:[#allocation23 + $0x108] sm:$0xff]   ;;  %v5738_v43 = vld [vmem:[#allocation25 + $0x100] sm:$0xff]  }
 0x9b4   :  { %3246 = vmatprep.mubr.bf16.mxu0 %v7083_v59  ;;  %v5739_v44 = vld [vmem:[#allocation23 + $0x180] sm:$0xff]   ;;  %v5757_v56 = vld [vmem:[#allocation23 + $0x1e8] sm:$0xff]   ;;  %v5764_v10 = vld [vmem:[#allocation25 + $0x178] sm:$0xff]  }
 0x9b5   :  { %v2886_v11 = vmin.f32 %v2878_v47, %v2884_v62  ;;  %v2890_v12 = vmax.f32 %v2882_v48, %v2888_v7  ;;  %v5745_v47 = vld [vmem:[#allocation23 + $0x1d0] sm:$0xff]   ;;  %v5754_v53 = vld [vmem:[#allocation25 + $0x120] sm:$0xff]   ;;  %v5758_v57 = vld [vmem:[#allocation25 + $0x128] sm:$0xff]  }
 0x9b6   :  { %v5746_v48 = vld [vmem:[#allocation25 + $0x110] sm:$0xff]   ;;  %v5755_v55 = vld [vmem:[#allocation23 + $0x1a0] sm:$0xff]   ;;  %v5759_v58 = vld [vmem:[#allocation23 + $0x1a8] sm:$0xff]  }
 0x9b7   :  { %v7088_v15 = vpack.c.bf16 %v2886_v11, %v2885_v60  ;;  %v7090_v4 = vpack.c.bf16 %v2890_v12, %v2889_v61  ;;  %v5760_v60 = vld [vmem:[#allocation25 + $0x170] sm:$0xff]   ;;  %v5765_v11 = vld [vmem:[#allocation23 + $0x1f8] sm:$0xff]  }
 0x9b8   :  { %v5761_v61 = vld [vmem:[#allocation23 + $0x1f0] sm:$0xff]   ;;  %v5766_v12 = vld [vmem:[#allocation25 + $0x138] sm:$0xff]  }
 0x9b9   :  { %4680 = vmatprep.mubr.msk.bf16.mxu1 %vm6979_vm11, %v7088_v15  ;;  %4683 = vmatmul.mubr.msk.bf16.vlgmr.msra.gmra.mrb[28].mxu0 %vm6979_vm11, %v7090_v4  ;;  %v5762_v62 = vld [vmem:[#allocation25 + $0x130] sm:$0xff]  }
 0x9ba   :  { %5075 = vmatpush3.bf16.msra.mxu0 %v5713_v13  ;;  %3206 = vmatmul.mubr.bf16.vlgmr.msra.gmra.mrb[68].mxu1 %v7069_v9  ;;  %v5763_v7 = vld [vmem:[#allocation23 + $0x1b0] sm:$0xff]   ;;  %v5767_v13 = vld [vmem:[#allocation23 + $0x1b8] sm:$0xff]  }
 0x9bb   :  { %5400 = vmatpush3.bf16.msra.mxu1 %v5714_v16  ;;  %4726 = vmatprep.mubr.msk.bf16.mxu0 %vm6979_vm11, %v7088_v15  ;;  %v5769_v16 = vld [vmem:[#allocation25 + $0x180] sm:$0xff]  }
 0x9bc   :  { %5076 = vmatprep.subr.bf16.mxu0 %v5715_v17  ;;  %5401 = vmatprep.subr.bf16.mxu1 %v6416_v35  ;;  %v5770_v17 = vld [vmem:[#allocation25 + $0x1c8] sm:$0xff]  }
 0x9bd   :  { %5415 = vmatprep.mubr.msk.bf16.mxu1 %vm6417_vm1, %v6416_v35 }
 0x9be   :  { %5077 = vmatpush3.bf16.msra.mxu0 %v5716_v5  ;;  %v5771_v5 = vld [vmem:[#allocation25 + $0x188] sm:$0xff]  }
 0x9bf   :  { %5402 = vmatpush3.bf16.msra.mxu1 %v5717_v20  ;;  %5078 = vmatprep.subr.bf16.mxu0 %v5718_v22  ;;  %v5772_v20 = vld [vmem:[#allocation25 + $0x1d0] sm:$0xff]  }
 0x9c0   :  { %5403 = vmatprep.subr.bf16.mxu1 %v6416_v35  ;;  %v5773_v22 = vld [vmem:[#allocation25 + $0x190] sm:$0xff]  }
 0x9c2   :  { %5079 = vmatpush3.bf16.msra.mxu0 %v5719_v23  ;;  %v5774_v23 = vld [vmem:[#allocation25 + $0x1d8] sm:$0xff]  }
 0x9c3   :  { %5404 = vmatpush3.bf16.msra.mxu1 %v5720_v28  ;;  %5080 = vmatprep.subr.bf16.mxu0 %v5721_v29  ;;  %v5775_v28 = vld [vmem:[#allocation25 + $0x198] sm:$0xff]   ;;  %v5777_v29 = vld [vmem:[#allocation25 + $0x1a0] sm:$0xff]  }
 0x9c4   :  { %5405 = vmatprep.subr.bf16.mxu1 %v6416_v35 }
 0x9c6   :  { %5081 = vmatpush3.bf16.msra.mxu0 %v5722_v31  ;;  %v5778_v31 = vld [vmem:[#allocation25 + $0x1e8] sm:$0xff]  }
 0x9c7   :  { %5406 = vmatpush3.bf16.msra.mxu1 %v5723_v24  ;;  %5082 = vmatprep.subr.bf16.mxu0 %v5724_v32  ;;  %v5779_v24 = vld [vmem:[#allocation25 + $0x1a8] sm:$0xff]   ;;  %v5780_v32 = vld [vmem:[#allocation25 + $0x1f0] sm:$0xff]  }
 0x9c8   :  { %5407 = vmatprep.subr.bf16.mxu1 %v6416_v35 }
 0x9ca   :  { %5083 = vmatpush3.bf16.msra.mxu0 %v5725_v33  ;;  %v5782_v33 = vld [vmem:[#allocation25 + $0x1f8] sm:$0xff]  }
 0x9cb   :  { %5408 = vmatpush3.bf16.msra.mxu1 %v5726_v34  ;;  %5084 = vmatprep.subr.bf16.mxu0 %v5727_v25  ;;  %v5783_v34 = vld [vmem:[#allocation25 + $0x1b8] sm:$0xff]   ;;  %v5784_v25 = vld [vmem:[#allocation28 + $0x40] sm:$0xff]  }
 0x9cc   :  { %5409 = vmatprep.subr.bf16.mxu1 %v6416_v35 }
 0x9ce   :  { %5085 = vmatpush3.bf16.msra.mxu0 %v5728_v36  ;;  %v5785_v36 = vld [vmem:[#allocation28 + $0x48] sm:$0xff]  }
 0x9cf   :  { %5410 = vmatpush3.bf16.msra.mxu1 %v5729_v6  ;;  %5086 = vmatprep.subr.bf16.mxu0 %v5730_v37  ;;  %v5786_v6 = vld [vmem:[#allocation28 + $0x50] sm:$0xff]   ;;  %v5787_v37 = vld [vmem:[#allocation28 + $0x58] sm:$0xff]  }
 0x9d0   :  { %5411 = vmatprep.subr.bf16.mxu1 %v6416_v35 }
 0x9d2   :  { %5087 = vmatpush3.bf16.msra.mxu0 %v5731_v26  ;;  %v5790_v26 = vld [vmem:[#allocation28 + $0x70] sm:$0xff]  }
 0x9d3   :  { %5412 = vmatpush3.bf16.msra.mxu1 %v5732_v8  ;;  %5088 = vmatprep.subr.bf16.mxu0 %v5733_v38  ;;  %v5791_v8 = vld [vmem:[#allocation28 + $0x78] sm:$0xff]  }
 0x9d4   :  { %5413 = vmatprep.subr.bf16.mxu1 %v6416_v35 }
 0x9d6   :  { %5089 = vmatpush3.bf16.msra.mxu0 %v5734_v39 }
 0x9d7   :  { %5414 = vmatpush3.bf16.msra.mxu1 %v5735_v40  ;;  %5118 = vmatprep.subr.bf16.mxu0 %v5736_v41 }
 0x9d8   :  { %5096 = vmatprep.subr.bf16.mxu1 %v5737_v42 }
 0x9d9   :  { %3634 = vmatmul.mubr.bf16.vlgmr.msra.gmra.mrb[32].mxu0 %v7069_v9 }
 0x9da   :  { %5416 = vmatmul.mubr.bf16.vlgmr.msra.gmra.mrb[72].mxu1 %v7034_v19  ;;  %5119 = vmatpush3.bf16.msra.mxu0 %v5738_v43  ;;  %v5748_v19 = vld [vmem:[#allocation25 + $0x158] sm:$0xff]  }
 0x9db   :  { %4764 = vmatprep.mubr.msk.bf16.mxu0 %vm6979_vm11, %v7088_v15  ;;  %5097 = vmatpush3.bf16.msra.mxu1 %v5739_v44  ;;  %v5768_v15 = vld [vmem:[#allocation25 + $0x1c0] sm:$0xff]  }
 0x9dc   :  { %3674 = vmatprep.mubr.bf16.mxu1 %v7083_v59  ;;  %5120 = vmatprep.subr.bf16.mxu0 %v5740_v18 }
 0x9dd   :  { %5098 = vmatprep.subr.bf16.mxu1 %v5741_v45 }
 0x9de   :  { %5121 = vmatpush3.bf16.msra.mxu0 %v5742_v46 }
 0x9df   :  { %5099 = vmatpush3.bf16.msra.mxu1 %v5743_v21  ;;  %5122 = vmatprep.subr.bf16.mxu0 %v5744_v63 }
 0x9e0   :  { %5100 = vmatprep.subr.bf16.mxu1 %v5745_v47 }
 0x9e2   :  { %5123 = vmatpush3.bf16.msra.mxu0 %v5746_v48 }
 0x9e3   :  { %5101 = vmatpush3.bf16.msra.mxu1 %v5747_v0  ;;  %5124 = vmatprep.subr.bf16.mxu0 %v5748_v19 }
 0x9e4   :  { %5102 = vmatprep.subr.bf16.mxu1 %v5749_v49 }
 0x9e6   :  { %5125 = vmatpush3.bf16.msra.mxu0 %v5750_v14 }
 0x9e7   :  { %5103 = vmatpush3.bf16.msra.mxu1 %v5751_v50  ;;  %5126 = vmatprep.subr.bf16.mxu0 %v5752_v1 }
 0x9e8   :  { %5104 = vmatprep.subr.bf16.mxu1 %v5753_v52 }
 0x9ea   :  { %5127 = vmatpush3.bf16.msra.mxu0 %v5754_v53 }
 0x9eb   :  { %5105 = vmatpush3.bf16.msra.mxu1 %v5755_v55  ;;  %5128 = vmatprep.subr.bf16.mxu0 %v5756_v3 }
 0x9ec   :  { %5106 = vmatprep.subr.bf16.mxu1 %v5757_v56 }
 0x9ee   :  { %5129 = vmatpush3.bf16.msra.mxu0 %v5758_v57 }
 0x9ef   :  { %5107 = vmatpush3.bf16.msra.mxu1 %v5759_v58  ;;  %5130 = vmatprep.subr.bf16.mxu0 %v5760_v60 }
 0x9f0   :  { %5108 = vmatprep.subr.bf16.mxu1 %v5761_v61 }
 0x9f2   :  { %5131 = vmatpush3.bf16.msra.mxu0 %v5762_v62 }
 0x9f3   :  { %5109 = vmatpush3.bf16.msra.mxu1 %v5763_v7  ;;  %5132 = vmatprep.subr.bf16.mxu0 %v5764_v10 }
 0x9f4   :  { %5110 = vmatprep.subr.bf16.mxu1 %v5765_v11 }
 0x9f6   :  { %5133 = vmatpush3.bf16.msra.mxu0 %v5766_v12 }
 0x9f7   :  { %5111 = vmatpush3.bf16.msra.mxu1 %v5767_v13  ;;  %5419 = vmatprep.subr.bf16.mxu0 %v6416_v35 }
 0x9f8   :  { %5140 = vmatprep.subr.bf16.mxu1 %v5768_v15 }
 0x9f9   :  { %3977 = vmatmul.mubr.bf16.vlgmr.msra.gmra.mrb[36].mxu0 %v7069_v9  ;;  %v5776_v9 = vld [vmem:[#allocation25 + $0x1e0] sm:$0xff]  }
 0x9fa   :  { %4729 = vmatmul.mubr.msk.bf16.vlgmr.msra.gmra.mrb[76].mxu1 %vm6979_vm11, %v7090_v4  ;;  %5435 = vmatprep.mubr.msk.bf16.mxu0 %vm6417_vm1, %v6416_v35 }
 0x9fb   :  { %5141 = vmatpush3.bf16.msra.mxu1 %v5769_v16  ;;  %4017 = vmatprep.mubr.bf16.mxu1 %v7083_v59  ;;  %v5781_v59 = vld [vmem:[#allocation25 + $0x1b0] sm:$0xff]  }
 0x9fc   :  { %5142 = vmatprep.subr.bf16.mxu1 %v5770_v17  ;;  %5420 = vmatpush3.bf16.msra.mxu0 %v5784_v25 }
 0x9fd   :  { %5421 = vmatprep.subr.bf16.mxu0 %v6416_v35 }
 0x9ff   :  { %5143 = vmatpush3.bf16.msra.mxu1 %v5771_v5 }
 0xa00   :  { %5144 = vmatprep.subr.bf16.mxu1 %v5772_v20  ;;  %5422 = vmatpush3.bf16.msra.mxu0 %v5785_v36 }
 0xa01   :  { %5423 = vmatprep.subr.bf16.mxu0 %v6416_v35 }
 0xa03   :  { %5145 = vmatpush3.bf16.msra.mxu1 %v5773_v22 }
 0xa04   :  { %5146 = vmatprep.subr.bf16.mxu1 %v5774_v23  ;;  %5424 = vmatpush3.bf16.msra.mxu0 %v5786_v6 }
 0xa05   :  { %5425 = vmatprep.subr.bf16.mxu0 %v6416_v35 }
 0xa07   :  { %5147 = vmatpush3.bf16.msra.mxu1 %v5775_v28 }
 0xa08   :  { %5148 = vmatprep.subr.bf16.mxu1 %v5776_v9  ;;  %5426 = vmatpush3.bf16.msra.mxu0 %v5787_v37 }
 0xa09   :  { %5427 = vmatprep.subr.bf16.mxu0 %v6416_v35 }
 0xa0b   :  { %5149 = vmatpush3.bf16.msra.mxu1 %v5777_v29 }
 0xa0c   :  { %5150 = vmatprep.subr.bf16.mxu1 %v5778_v31  ;;  %5428 = vmatpush3.bf16.msra.mxu0 %v5788_v30  ;;  %v4768_v30 = vld [vmem:[#allocation26 + $0x1] ss:$0 sm:$0xff] }
 0xa0d   :  { %5429 = vmatprep.subr.bf16.mxu0 %v6416_v35 }
 0xa0f   :  { %5151 = vmatpush3.bf16.msra.mxu1 %v5779_v24 }
 0xa10   :  { %5152 = vmatprep.subr.bf16.mxu1 %v5780_v32 }
 0xa13   :  { %5153 = vmatpush3.bf16.msra.mxu1 %v5781_v59 }
 0xa14   :  { %5154 = vmatprep.subr.bf16.mxu1 %v5782_v33 }
 0xa17   :  { %5155 = vmatpush3.bf16.msra.mxu1 %v5783_v34 }
 0xa18   :  { %5439 = vmatprep.subr.bf16.mxu1 %v6416_v35 }
 0xa1a   :  { %4767 = vmatmul.mubr.msk.bf16.vlgmr.msra.gmra.mrb[80].mxu1 %vm6979_vm11, %v7090_v4  ;;  %v5789_v4 = vld [vmem:[#allocation28 + $0x68] sm:$0xff]  }
 0xa1b   :  { %5441 = vmatprep.mubr.msk.bf16.mxu1 %vm6417_vm1, %v6416_v35  ;;  %5430 = vmatpush3.bf16.msra.mxu0 %v5789_v4 }
 0xa1c   :  { %5431 = vmatprep.subr.bf16.mxu0 %v6416_v35 }
 0xa1f   :  { %5432 = vmatpush3.bf16.msra.mxu0 %v5790_v26 }
 0xa20   :  { %5433 = vmatprep.subr.bf16.mxu0 %v6416_v35 }
 0xa23   :  { %5434 = vmatpush3.bf16.msra.mxu0 %v5791_v8 }
 0xa24   :  { %5465 = vmatprep.subr.bf16.mxu0 %v6416_v35 }
 0xa8c   :  { %v5059_v38 = vpop.f32.mrb[28].mxu0 }
 0xa8d   :  { %v5037_v39 = vpop.f32.mrb[68].mxu1  ;;  %v5060_v40 = vpop.f32.mrb[29].mxu0 }
 0xa8e   :  { %v5061_v41 = vadd.f32 %v5060_v40, %v5059_v38  ;;  %v5038_v42 = vpop.f32.mrb[69].mxu1  ;;  %v5062_v43 = vpop.f32.mrb[30].mxu0 }
 0xa8f   :  { %v5039_v44 = vadd.f32 %v5038_v42, %v5037_v39  ;;  %v5040_v18 = vpop.f32.mrb[70].mxu1  ;;  %v5063_v45 = vpop.f32.mrb[31].mxu0 }
 0xa90   :  { %v5064_v46 = vadd.f32 %v5063_v45, %v5062_v43  ;;  %v5041_v21 = vpop.f32.mrb[71].mxu1  ;;  %v5792_v45 = vld [vmem:[#allocation32] sm:$0xff]  }
 0xa91   :  { %v5042_v63 = vadd.f32 %v5041_v21, %v5040_v18  ;;  %v3249_v47 = vadd.f32 %v5061_v41, %v5039_v44  ;;  %v5794_v21 = vld [vmem:[#allocation32 + $0x10] sm:$0xff]  }
 0xa93   :  { %v3252_v48 = vadd.f32 %v5064_v46, %v5042_v63  ;;  %v5793_v46 = vld [vmem:[#allocation32 + $0x8] sm:$0xff]   ;;  %v5795_v63 = vld [vmem:[#allocation32 + $0x18] sm:$0xff]  }
 0xaac   :  { %v5090_v0 = vpop.f32.mrb[32].mxu0 }
 0xaad   :  { %v3337_v19 = vpop.f32.mrb[72].mxu1  ;;  %v5091_v49 = vpop.f32.mrb[33].mxu0 }
 0xaae   :  { %v3338_v14 = vadd.f32 %v3337_v19, %v3249_v47  ;;  %v5092_v50 = vadd.f32 %v5091_v49, %v5090_v0  ;;  %v5417_v1 = vpop.f32.mrb[73].mxu1  ;;  %v5093_v52 = vpop.f32.mrb[34].mxu0  ;;  %v5796_v47 = vld [vmem:[#allocation32 + $0x20] sm:$0xff]   ;;  %v5798_v0 = vld [vmem:[#allocation32 + $0x30] sm:$0xff]   ;;  %v5799_v19 = vld [vmem:[#allocation32 + $0x38] sm:$0xff]  }
 0xaaf   :  { %v3340_v53 = vpop.f32.mrb[74].mxu1  ;;  %v5094_v55 = vpop.f32.mrb[35].mxu0  ;;  %v5800_v49 = vld [vmem:[#allocation35] sm:$0xff]   ;;  %v5803_v1 = vld [vmem:[#allocation35 + $0x18] sm:$0xff]  }
 0xab0   :  { %v3341_v3 = vadd.f32 %v3340_v53, %v3252_v48  ;;  %v5095_v56 = vadd.f32 %v5094_v55, %v5093_v52  ;;  %v5418_v57 = vpop.f32.mrb[75].mxu1  ;;  %v5797_v48 = vld [vmem:[#allocation32 + $0x28] sm:$0xff]  }
 0xab1   :  { %v5804_v52 = vld [vmem:[#allocation35 + $0x20] sm:$0xff]   ;;  %v5805_v53 = vld [vmem:[#allocation35 + $0x28] sm:$0xff]  }
 0xacc   :  { %v5134_v58 = vpop.f32.mrb[36].mxu0 }
 0xacd   :  { %v5112_v60 = vpop.f32.mrb[76].mxu1  ;;  %v5135_v61 = vpop.f32.mrb[37].mxu0 }
 0xace   :  { %v5136_v62 = vadd.f32 %v5135_v61, %v5134_v58  ;;  %v5113_v7 = vpop.f32.mrb[77].mxu1  ;;  %v5137_v10 = vpop.f32.mrb[38].mxu0  ;;  %v5807_v61 = vld [vmem:[#allocation35 + $0x38] sm:$0xff]  }
 0xacf   :  { %v5114_v11 = vadd.f32 %v5113_v7, %v5112_v60  ;;  %v5115_v12 = vpop.f32.mrb[78].mxu1  ;;  %v5138_v13 = vpop.f32.mrb[39].mxu0  ;;  %v5806_v60 = vld [vmem:[#allocation35 + $0x30] sm:$0xff]  }
 0xad0   :  { %v5139_v15 = vadd.f32 %v5138_v13, %v5137_v10  ;;  %v5116_v16 = vpop.f32.mrb[79].mxu1 }
 0xad1   :  { %v3677_v17 = vadd.f32 %v5114_v11, %v5092_v50  ;;  %v5117_v5 = vadd.f32 %v5116_v16, %v5115_v12  ;;  %v5802_v50 = vld [vmem:[#allocation35 + $0x10] sm:$0xff]  }
 0xad3   :  { %v3683_v20 = vmul.f32 %v3677_v17, %v7021_v2  ;;  %v3680_v22 = vadd.f32 %v5117_v5, %v5095_v56  ;;  %v4788_v17 = vld [vmem:[#allocation37] ss:$0 sm:$0xff] }
 0xad5   :  { %v3685_v23 = vadd.f32 %v3683_v20, %v3338_v14  ;;  %v3684_v28 = vmul.f32 %v3680_v22, %v7024_v27  ;;  %v4769_v27 = vld [vmem:[#allocation29 + $0x1] ss:$0 sm:$0xff]  ;;  %v5801_v14 = vld [vmem:[#allocation35 + $0x8] sm:$0xff]  }
 0xad7   :  { %v3686_v9 = vadd.f32 %v3684_v28, %v3341_v3 }
 0xaed   :  { %v5156_v29 = vpop.f32.mrb[80].mxu1 }
 0xaee   :  { %v5157_v31 = vpop.f32.mrb[81].mxu1 }
 0xaef   :  { %v5158_v24 = vadd.f32 %v5157_v31, %v5156_v29  ;;  %v5159_v32 = vpop.f32.mrb[82].mxu1 }
 0xaf0   :  { %v5160_v59 = vpop.f32.mrb[83].mxu1 }
 0xaf1   :  { %v4020_v33 = vadd.f32 %v5158_v24, %v5136_v62  ;;  %v5161_v34 = vadd.f32 %v5160_v59, %v5159_v32  ;;  %v4779_v62 = vld [vmem:[#allocation34] ss:$0 sm:$0xff] }
 0xaf3   :  { %v4026_v25 = vmul.f32 %v4020_v33, %v7027_v51  ;;  %v4023_v36 = vadd.f32 %v5161_v34, %v5139_v15 }
 0xaf5   :  { %v4028_v6 = vadd.f32 %v4026_v25, %v3685_v23  ;;  %v4027_v37 = vmul.f32 %v4023_v36, %v7030_v54  ;;  %v4157_v54 = vld [vmem:[#allocation31] sm:$0xf] }
 0xaf7   :  { %v4029_v2 = vadd.f32 %v4027_v37, %v3686_v9  ;;  %v4038_v4 = vadd.f32 %v4768_v30, %v4028_v6 }
 0xaf9   :  { %v4039_v26 = vadd.f32 %v4768_v30, %v4029_v2 }
 0xafb   :  { %v4040_v8 = vpack.c.bf16 %v4039_v26, %v4038_v4 }
 0xafd   :  { %5436 = vmatmul.mubr.bf16.vlgmr.msra.gmra.mrb[40].mxu0 %v4040_v8 }
 0xafe   :  { %5481 = vmatprep.mubr.msk.bf16.mxu0 %vm6417_vm1, %v6416_v35  ;;  %5466 = vmatpush3.bf16.msra.mxu0 %v5800_v49 }
 0xaff   :  { %5467 = vmatprep.subr.bf16.mxu0 %v6416_v35 }
 0xb02   :  { %5468 = vmatpush3.bf16.msra.mxu0 %v5801_v14 }
 0xb03   :  { %5469 = vmatprep.subr.bf16.mxu0 %v6416_v35 }
 0xb06   :  { %5470 = vmatpush3.bf16.msra.mxu0 %v5802_v50 }
 0xb07   :  { %5471 = vmatprep.subr.bf16.mxu0 %v6416_v35 }
 0xb0a   :  { %5472 = vmatpush3.bf16.msra.mxu0 %v5803_v1 }
 0xb0b   :  { %5473 = vmatprep.subr.bf16.mxu0 %v6416_v35 }
 0xb0e   :  { %5474 = vmatpush3.bf16.msra.mxu0 %v5804_v52 }
 0xb0f   :  { %5475 = vmatprep.subr.bf16.mxu0 %v6416_v35 }
 0xb12   :  { %5476 = vmatpush3.bf16.msra.mxu0 %v5805_v53 }
 0xb13   :  { %5477 = vmatprep.subr.bf16.mxu0 %v6416_v35 }
 0xb16   :  { %5478 = vmatpush3.bf16.msra.mxu0 %v5806_v60 }
 0xb17   :  { %5479 = vmatprep.subr.bf16.mxu0 %v6416_v35 }
 0xb1a   :  { %5480 = vmatpush3.bf16.msra.mxu0 %v5807_v61 }
 0xbd0   :  { %v4148_v38 = vpop.f32.mrb[40].mxu0 }
 0xbd1   :  { %v4149_v39 = vadd.f32 %v4769_v27, %v4148_v38  ;;  %v5437_v40 = vpop.f32.mrb[41].mxu0 }
 0xbd2   :  { %v4151_v41 = vpop.f32.mrb[42].mxu0 }
 0xbd3   :  { %v4152_v42 = vadd.f32 %v4769_v27, %v4151_v41  ;;  %v5438_v51 = vpop.f32.mrb[43].mxu0  ;;  %v4155_v43 = vmax.f32 %v4149_v39, 0.0 }
 0xbd5   :  { %v4156_v44 = vmax.f32 %v4152_v42, 0.0 }
 0xbd7   :  { %v4158_v18 = vpack.c.bf16 %v4156_v44, %v4155_v43 }
 0xbd9   :  { %5440 = vmatpush3.bf16.msra.mxu1 %v4158_v18 }
 0xbda   :  { %5445 = vmatprep.subr.bf16.mxu1 %v6416_v35 }
 0xbdc   :  { %5442 = vmatmul.mubr.msk.bf16.vlgmr.msra.gmra.mrb[84].mxu1 %vm438_vm0, %v4157_v54 }
 0xbdd   :  { %5446 = vmatpush3.bf16.msra.mxu1 %v5792_v45  ;;  %5461 = vmatprep.mubr.msk.bf16.mxu1 %vm6417_vm1, %v6416_v35 }
 0xbde   :  { %5447 = vmatprep.subr.bf16.mxu1 %v6416_v35 }
 0xbe1   :  { %5448 = vmatpush3.bf16.msra.mxu1 %v5793_v46 }
 0xbe2   :  { %5449 = vmatprep.subr.bf16.mxu1 %v6416_v35 }
 0xbe5   :  { %5450 = vmatpush3.bf16.msra.mxu1 %v5794_v21 }
 0xbe6   :  { %5451 = vmatprep.subr.bf16.mxu1 %v6416_v35 }
 0xbe9   :  { %5452 = vmatpush3.bf16.msra.mxu1 %v5795_v63 }
 0xbea   :  { %5453 = vmatprep.subr.bf16.mxu1 %v6416_v35 }
 0xbed   :  { %5454 = vmatpush3.bf16.msra.mxu1 %v5796_v47 }
 0xbee   :  { %5455 = vmatprep.subr.bf16.mxu1 %v6416_v35 }
 0xbf1   :  { %5456 = vmatpush3.bf16.msra.mxu1 %v5797_v48 }
 0xbf2   :  { %5457 = vmatprep.subr.bf16.mxu1 %v6416_v35 }
 0xbf5   :  { %5458 = vmatpush3.bf16.msra.mxu1 %v5798_v0 }
 0xbf6   :  { %5459 = vmatprep.subr.bf16.mxu1 %v6416_v35 }
 0xbf9   :  { %5460 = vmatpush3.bf16.msra.mxu1 %v5799_v19 }
 0xcaf   :  { %v4196_v55 = vpop.f32.mrb[84].mxu1 }
 0xcb0   :  { %v4202_v3 = vpack.c.bf16 %v4196_v55, %v4196_v55  ;;  %v5443_v56 = vpop.f32.mrb[85].mxu1 }
 0xcb1   :  { %v4199_v57 = vpop.f32.mrb[86].mxu1 }
 0xcb2   :  { %v5444_v58 = vpop.f32.mrb[87].mxu1  ;;  %5462 = vmatmul.mubr.bf16.vlgmr.msra.gmra.mrb[88].mxu1 %v4202_v3 }
 0xd85   :  { %v4308_v7 = vpop.f32.mrb[88].mxu1 }
 0xd86   :  { %v4309_v10 = vadd.f32 %v4779_v62, %v4308_v7  ;;  %v5463_v11 = vpop.f32.mrb[89].mxu1 }
 0xd87   :  { %v4311_v12 = vpop.f32.mrb[90].mxu1 }
 0xd88   :  { %v4314_v13 = vmax.f32 %v4309_v10, 0.0  ;;  %v5464_v15 = vpop.f32.mrb[91].mxu1 }
 0xd8a   :  { %v4315_v16 = vpack.c.bf16 %v4314_v13, %v4314_v13 }
 0xd8c   :  { %5482 = vmatmul.mubr.bf16.vlgmr.msra.gmra.mrb[44].mxu0 %v4315_v16 }
 0xe5f   :  { %v4421_v5 = vpop.f32.mrb[44].mxu0 }
 0xe60   :  { %v4422_v20 = vadd.f32 %v4788_v17, %v4421_v5  ;;  %v5483_v22 = vpop.f32.mrb[45].mxu0 }
 0xe61   :  { %v4424_v23 = vpop.f32.mrb[46].mxu0 }
 0xe62   :  { %4427 = vst [vmem:[#allocation38] sm:$0xff] %v4422_v20  ;;  %v5484_v35 = vpop.f32.mrb[47].mxu0 }
 0xe63   :  { %6350 = shalt.err (!%p6347_p6)
}
 0xe64   :  { %s7236_s7 = sld [smem:[#allocation62_spill]] }
 0xe6a   :  { %s6351_s11 = scalar_lea.hbm %s7236_s7, 128 }
 0xe6b   :  { %p6352_p7 = scmp.ne.s32.totalorder %s7236_s7, %s6351_s11  ;;  %p6355_p8 = scmp.lt.u32.totalorder %s6351_s11, %s7236_s7 }
 0xe6d   :  { %p6357_p9 = pnand %p6355_p8, %p6352_p7 }
 0xe6f   :  { %6360 = shalt.err (!%p6357_p9)
}
 0xe70   :  { %4437 = dma.vmem_to_hbm [thread:$0]  %s4435_s16, 128, %s7236_s7, [#allocation4]  }
 0xe71   :  { %6385 = dma.done.wait [#allocation4], 128  }
 0xe72   :  { %6386 = vsyncadd [#allocation4], 4294967168 }
 0xe73   :  { %4441 = vsyncpa [#allocation3], 1 }
 0xe74   :  { %4442 = vsyncpa [#allocation6], 1 }
 0xe75   :  { %4443 = vsyncpa [#allocation9], 1 }
 0xe76   :  { %4444 = vsyncpa [#allocation12], 1 }
 0xe77   :  { %4445 = vsyncpa [#allocation15], 1 }
 0xe78   :  { %4446 = vsyncpa [#allocation18], 1 }
 0xe79   :  { %4447 = vsyncpa [#allocation21], 1 }
 0xe7a   :  { %4448 = vsyncpa [#allocation24], 1 }
 0xe7b   :  { %4449 = vsyncpa [#allocation27], 1 }
 0xe7c   :  { %4450 = vsyncpa [#allocation30], 1 }
 0xe7d   :  { %4451 = vsyncpa [#allocation33], 1 }
 0xe7e   :  { %4452 = vsyncpa [#allocation36], 1 }
 0xe7f   :  { %4453 = vsyncpa [#allocation4], 1 }

</bundles_post_ra>
